<compile_context>
chip_gen: v6e
topology: v6e:2x2x1
jax: 0.10.0
libtpu: 0.0.40
codegen_flags: <defaults>
</compile_context>

<pallas_src>
import math
from functools import partial

import jax
import jax.numpy as jnp
from jax import lax
from jax.experimental import pallas as pl
from jax.experimental.pallas import tpu as pltpu


_ENC_KEYS = ('wq', 'bq', 'wk', 'bk', 'wv', 'bv', 'wo', 'bo',
             'w1', 'b1', 'w2', 'b2', 'ln1_g', 'ln1_b', 'ln2_g', 'ln2_b')
_DEC_KEYS = ('swq', 'sbq', 'swk', 'sbk', 'swv', 'sbv', 'swo', 'sbo',
             'cwq', 'cbq', 'cwk', 'cbk', 'cwv', 'cbv', 'cwo', 'cbo',
             'w1', 'b1', 'w2', 'b2',
             'ln1_g', 'ln1_b', 'ln2_g', 'ln2_b', 'ln3_g', 'ln3_b')
_ENC_MATS = ('wq', 'wk', 'wv', 'wo', 'w1', 'w2')
_DEC_MATS = ('swq', 'swk', 'swv', 'swo', 'cwq', 'cwk', 'cwv', 'cwo', 'w1', 'w2')


# ----------------------------- fused forward kernel -----------------------------

def _make_kernel(nlayers, nheads, d_model, bt, s_src, s_tgt, has_tmask, has_mmask, cdt):
    E, H = d_model, nheads
    Dh = E // H
    scale = 1.0 / math.sqrt(Dh)
    n_src = bt * s_src
    n_tgt = bt * s_tgt

    def layernorm(y, g, b):                      # f32 statistics
        mean = jnp.mean(y, axis=-1, keepdims=True)
        c = y - mean
        var = jnp.mean(c * c, axis=-1, keepdims=True)
        return c * lax.rsqrt(var + 1e-5) * g + b

    def mha(q, k, v, wo, bo, mask, sq):
        """q [bt,sq,E] pre-scaled f32; k,v [bt,sk,E] f32; one E-wide output projection."""
        qc = q.astype(cdt)
        kc = k.astype(cdt)
        vc = v.astype(cdt)
        heads = []
        for h in range(H):
            sl = slice(h * Dh, (h + 1) * Dh)
            s = jnp.einsum('bqd,bkd->bqk', qc[..., sl], kc[..., sl],
                           preferred_element_type=jnp.float32)       # [bt, sq, sk]
            if mask is not None:
                s = s + mask                                          # [sq, sk] broadcast
            m = jnp.max(s, axis=-1, keepdims=True)
            p = jnp.exp(s - m)
            p = p * pl.reciprocal(jnp.sum(p, axis=-1, keepdims=True), approx=True)
            heads.append(jnp.einsum('bqk,bkd->bqd', p.astype(cdt), vc[..., sl],
                                    preferred_element_type=jnp.float32))
        o = jnp.concatenate(heads, axis=-1).reshape(bt * sq, E)       # [bt*sq, E]
        return jnp.dot(o.astype(cdt), wo, preferred_element_type=jnp.float32) + bo

    def kernel(*refs):
        it = iter(refs)
        src_ref = next(it)
        tgt_ref = next(it)
        pe_ref = next(it)
        tmask_ref = next(it) if has_tmask else None
        mmask_ref = next(it) if has_mmask else None
        enc_in_w = next(it); enc_in_b = next(it)
        dec_in_w = next(it); dec_in_b = next(it)
        dec_out_w = next(it); dec_out_b = next(it)
        e = {key: next(it) for key in _ENC_KEYS}
        d = {key: next(it) for key in _DEC_KEYS}
        out_ref = next(it)

        tmask = tmask_ref[...] if has_tmask else None
        mmask = mmask_ref[...] if has_mmask else None

        # ---- encoder input mapping + positional encoding (dropout = identity) ----
        x = jnp.dot(src_ref[...].reshape(n_src, -1), enc_in_w[...],
                    preferred_element_type=jnp.float32) + enc_in_b[...]
        x = (x.reshape(bt, s_src, E) + pe_ref[...]).reshape(n_src, E)

        # ---- transformer encoder (post-norm, relu FFN — PyTorch defaults) ----
        def enc_layer(l, x):
            xc = x.astype(cdt)
            q = jnp.dot(xc, e['wq'][l], preferred_element_type=jnp.float32) + e['bq'][l]
            k = jnp.dot(xc, e['wk'][l], preferred_element_type=jnp.float32) + e['bk'][l]
            v = jnp.dot(xc, e['wv'][l], preferred_element_type=jnp.float32) + e['bv'][l]
            a = mha((q * scale).reshape(bt, s_src, E), k.reshape(bt, s_src, E),
                    v.reshape(bt, s_src, E), e['wo'][l], e['bo'][l], None, s_src)
            x = layernorm(x + a, e['ln1_g'][l], e['ln1_b'][l])
            h1 = jnp.maximum(
                jnp.dot(x.astype(cdt), e['w1'][l],
                        preferred_element_type=jnp.float32) + e['b1'][l], 0.0)
            f = jnp.dot(h1.astype(cdt), e['w2'][l],
                        preferred_element_type=jnp.float32) + e['b2'][l]
            return layernorm(x + f, e['ln2_g'][l], e['ln2_b'][l])

        x = lax.fori_loop(0, nlayers, enc_layer, x)
        mem_c = x.astype(cdt)                                         # encoder memory

        # ---- decoder input mapping (no PE on tgt, matching the PyTorch code) ----
        y = jnp.dot(tgt_ref[...].reshape(n_tgt, -1), dec_in_w[...],
                    preferred_element_type=jnp.float32) + dec_in_b[...]

        # ---- transformer decoder ----
        def dec_layer(l, y):
            # self-attention (tgt_mask)
            yc = y.astype(cdt)
            q = jnp.dot(yc, d['swq'][l], preferred_element_type=jnp.float32) + d['sbq'][l]
            k = jnp.dot(yc, d['swk'][l], preferred_element_type=jnp.float32) + d['sbk'][l]
            v = jnp.dot(yc, d['swv'][l], preferred_element_type=jnp.float32) + d['sbv'][l]
            a = mha((q * scale).reshape(bt, s_tgt, E), k.reshape(bt, s_tgt, E),
                    v.reshape(bt, s_tgt, E), d['swo'][l], d['sbo'][l], tmask, s_tgt)
            y = layernorm(y + a, d['ln1_g'][l], d['ln1_b'][l])
            # cross-attention over encoder memory (memory_mask)
            yc = y.astype(cdt)
            q = jnp.dot(yc, d['cwq'][l], preferred_element_type=jnp.float32) + d['cbq'][l]
            k = jnp.dot(mem_c, d['cwk'][l], preferred_element_type=jnp.float32) + d['cbk'][l]
            v = jnp.dot(mem_c, d['cwv'][l], preferred_element_type=jnp.float32) + d['cbv'][l]
            a = mha((q * scale).reshape(bt, s_tgt, E), k.reshape(bt, s_src, E),
                    v.reshape(bt, s_src, E), d['cwo'][l], d['cbo'][l], mmask, s_tgt)
            y = layernorm(y + a, d['ln2_g'][l], d['ln2_b'][l])
            # feed-forward
            h1 = jnp.maximum(
                jnp.dot(y.astype(cdt), d['w1'][l],
                        preferred_element_type=jnp.float32) + d['b1'][l], 0.0)
            f = jnp.dot(h1.astype(cdt), d['w2'][l],
                        preferred_element_type=jnp.float32) + d['b2'][l]
            return layernorm(y + f, d['ln3_g'][l], d['ln3_b'][l])

        y = lax.fori_loop(0, nlayers, dec_layer, y)

        # ---- output mapping (lane-padded to 128; wrapper slices back) ----
        out = jnp.dot(y.astype(cdt), dec_out_w[...],
                      preferred_element_type=jnp.float32) + dec_out_b[...]
        out_ref[...] = out.reshape(bt, s_tgt, -1).astype(out_ref.dtype)

    return kernel


# ----------------------------- wrapper -----------------------------

def _round_up(x, m):
    return (x + m - 1) // m * m


def _prep_mask(mask):
    """bool mask (True = disallowed) -> -1e9 additive; float -> as-is."""
    mask = jnp.asarray(mask)
    if jnp.issubdtype(mask.dtype, jnp.bool_):
        return jnp.where(mask, jnp.float32(-1e9), jnp.float32(0.0))
    return mask.astype(jnp.float32)


def _pick_batch_tile(batch, requested, s_max):
    cap = requested if requested is not None else max(1, 256 // max(s_max, 1))
    cap = max(1, min(batch, cap))
    bt = 1
    for c in range(1, cap + 1):
        if batch % c == 0:
            bt = c
    return bt


def time_series_transformer(params, src, tgt, memory_mask=None, tgt_mask=None, *,
                            nheads, batch_tile=None, compute_dtype=jnp.bfloat16):
    """src: [B, train_win, nvars], tgt: [B, tgt_win, nvars] -> [B, tgt_win, nvars]."""
    B, s_src, nvars = src.shape
    s_tgt = tgt.shape[1]
    E = params['enc_in_w'].shape[1]
    L = params['enc']['wq'].shape[0]
    cdt = compute_dtype

    bt = _pick_batch_tile(B, batch_tile, max(s_src, s_tgt))
    nvp = _round_up(nvars, 128)                      # lane-dense pad of the nvars dim
    pad = nvp - nvars

    # zero-pad nvars lanes (zeros do not change the linear maps); cast matmul operands.
    src_p = jnp.pad(src.astype(cdt), ((0, 0), (0, 0), (0, pad)))
    tgt_p = jnp.pad(tgt.astype(cdt), ((0, 0), (0, 0), (0, pad)))
    enc_in_w = jnp.pad(params['enc_in_w'], ((0, pad), (0, 0))).astype(cdt)
    dec_in_w = jnp.pad(params['dec_in_w'], ((0, pad), (0, 0))).astype(cdt)
    dec_out_w = jnp.pad(params['dec_out_w'], ((0, 0), (0, pad))).astype(cdt)
    dec_out_b = jnp.pad(params['dec_out_b'], ((0, 0), (0, pad))).astype(jnp.float32)
    pe = params['pe'][:s_src].astype(jnp.float32)

    inputs = [src_p, tgt_p, pe]
    if tgt_mask is not None:
        inputs.append(_prep_mask(tgt_mask))          # [s_tgt, s_tgt]
    if memory_mask is not None:
        inputs.append(_prep_mask(memory_mask))       # [s_tgt, s_src]
    inputs += [enc_in_w, params['enc_in_b'].astype(jnp.float32),
               dec_in_w, params['dec_in_b'].astype(jnp.float32),
               dec_out_w, dec_out_b]
    for kname in _ENC_KEYS:
        w = params['enc'][kname]
        inputs.append(w.astype(cdt) if kname in _ENC_MATS else w.astype(jnp.float32))
    for kname in _DEC_KEYS:
        w = params['dec'][kname]
        inputs.append(w.astype(cdt) if kname in _DEC_MATS else w.astype(jnp.float32))

    # per-step blocks over the batch; weights/PE/masks use constant block indices so they
    # stay resident across grid steps (no re-DMA).
    in_specs = [
        pl.BlockSpec((bt, s_src, nvp), lambda b: (b, 0, 0)),
        pl.BlockSpec((bt, s_tgt, nvp), lambda b: (b, 0, 0)),
    ]
    for a in inputs[2:]:
        in_specs.append(pl.BlockSpec(a.shape, lambda b, _n=a.ndim: (0,) * _n))

    # explicit scoped-VMEM budget (review): resident weights + double-buffered seq blocks.
    in_bytes = sum(int(a.size) * a.dtype.itemsize for a in inputs)
    out_block_bytes = bt * s_tgt * nvp * 4
    vmem_limit = int(min(64 << 20,
                         max(32 << 20, 2 * (in_bytes + out_block_bytes) + (8 << 20))))

    kernel = _make_kernel(L, nheads, E, bt, s_src, s_tgt,
                          tgt_mask is not None, memory_mask is not None, cdt)
    out = pl.pallas_call(
        kernel,
        out_shape=jax.ShapeDtypeStruct((B, s_tgt, nvp), jnp.float32),
        grid=(B // bt,),
        in_specs=in_specs,
        out_specs=pl.BlockSpec((bt, s_tgt, nvp), lambda b: (b, 0, 0)),
        compiler_params=pltpu.CompilerParams(
            dimension_semantics=("parallel",),
            vmem_limit_bytes=vmem_limit),
    )(*inputs)
    return out[:, :, :nvars]


# ----------------------------- parameters -----------------------------

def make_positional_encoding(max_seq_len, d_model):
    pos = jnp.arange(max_seq_len, dtype=jnp.float32)[:, None]
    div = jnp.power(10000.0, jnp.arange(0, d_model, 2, dtype=jnp.float32) / d_model)
    pe = jnp.zeros((max_seq_len, d_model), jnp.float32)
    pe = pe.at[:, 0::2].set(jnp.sin(pos / div))
    pe = pe.at[:, 1::2].set(jnp.cos(pos / div))
    return pe


def _uniform(key, shape, scale=0.1):
    return jax.random.uniform(key, shape, jnp.float32, -scale, scale)


def init_params(key, nvars, d_model, d_hid, nheads, nlayers, max_seq_len=5000):
    del nheads
    E, F, L = d_model, d_hid, nlayers
    keys = iter(jax.random.split(key, 4 + 16 * L))
    nxt = lambda: next(keys)

    def wstack(shape):
        return jnp.stack([_uniform(nxt(), shape) for _ in range(L)])

    zE = jnp.zeros((L, 1, E), jnp.float32)
    oE = jnp.ones((L, 1, E), jnp.float32)
    zF = jnp.zeros((L, 1, F), jnp.float32)

    enc = dict(
        wq=wstack((E, E)), bq=zE, wk=wstack((E, E)), bk=zE, wv=wstack((E, E)), bv=zE,
        wo=wstack((E, E)), bo=zE,
        w1=wstack((E, F)), b1=zF, w2=wstack((F, E)), b2=zE,
        ln1_g=oE, ln1_b=zE, ln2_g=oE, ln2_b=zE,
    )
    dec = dict(
        swq=wstack((E, E)), sbq=zE, swk=wstack((E, E)), sbk=zE, swv=wstack((E, E)), sbv=zE,
        swo=wstack((E, E)), sbo=zE,
        cwq=wstack((E, E)), cbq=zE, cwk=wstack((E, E)), cbk=zE, cwv=wstack((E, E)), cbv=zE,
        cwo=wstack((E, E)), cbo=zE,
        w1=wstack((E, F)), b1=zF, w2=wstack((F, E)), b2=zE,
        ln1_g=oE, ln1_b=zE, ln2_g=oE, ln2_b=zE, ln3_g=oE, ln3_b=zE,
    )
    return dict(
        enc_in_w=_uniform(nxt(), (nvars, E)), enc_in_b=jnp.zeros((1, E), jnp.float32),
        dec_in_w=_uniform(nxt(), (nvars, E)), dec_in_b=jnp.zeros((1, E), jnp.float32),
        dec_out_w=_uniform(nxt(), (E, nvars)), dec_out_b=jnp.zeros((1, nvars), jnp.float32),
        pe=make_positional_encoding(max_seq_len, E),
        enc=enc, dec=dec,
    )


# ----------------------------- pure-JAX reference -----------------------------

def reference_forward(params, src, tgt, memory_mask=None, tgt_mask=None, *, nheads):
    E = params['enc_in_w'].shape[1]
    H = nheads
    Dh = E // H
    L = params['enc']['wq'].shape[0]

    def ln(x, g, b):
        mu = x.mean(-1, keepdims=True)
        var = ((x - mu) ** 2).mean(-1, keepdims=True)
        return (x - mu) / jnp.sqrt(var + 1e-5) * g + b

    def mha(xq, xkv, wq, bq, wk, bk, wv, bv, wo, bo, mask):
        q = xq @ wq + bq
        k = xkv @ wk + bk
        v = xkv @ wv + bv
        B, Sq, _ = q.shape
        Sk = k.shape[1]
        q = q.reshape(B, Sq, H, Dh).transpose(0, 2, 1, 3)
        k = k.reshape(B, Sk, H, Dh).transpose(0, 2, 1, 3)
        v = v.reshape(B, Sk, H, Dh).transpose(0, 2, 1, 3)
        s = (q @ k.transpose(0, 1, 3, 2)) / math.sqrt(Dh)
        if mask is not None:
            s = s + mask
        p = jax.nn.softmax(s, axis=-1)
        o = (p @ v).transpose(0, 2, 1, 3).reshape(B, Sq, E)
        return o @ wo + bo

    tmask = None if tgt_mask is None else _prep_mask(tgt_mask)
    mmask = None if memory_mask is None else _prep_mask(memory_mask)

    x = src @ params['enc_in_w'] + params['enc_in_b'] + params['pe'][:src.shape[1]]
    e = params['enc']
    for l in range(L):
        a = mha(x, x, e['wq'][l], e['bq'][l], e['wk'][l], e['bk'][l],
                e['wv'][l], e['bv'][l], e['wo'][l], e['bo'][l], None)
        x = ln(x + a, e['ln1_g'][l], e['ln1_b'][l])
        h = jax.nn.relu(x @ e['w1'][l] + e['b1'][l])
        x = ln(x + h @ e['w2'][l] + e['b2'][l], e['ln2_g'][l], e['ln2_b'][l])
    mem = x

    y = tgt @ params['dec_in_w'] + params['dec_in_b']
    d = params['dec']
    for l in range(L):
        a = mha(y, y, d['swq'][l], d['sbq'][l], d['swk'][l], d['sbk'][l],
                d['swv'][l], d['sbv'][l], d['swo'][l], d['sbo'][l], tmask)
        y = ln(y + a, d['ln1_g'][l], d['ln1_b'][l])
        a = mha(y, mem, d['cwq'][l], d['cbq'][l], d['cwk'][l], d['cbk'][l],
                d['cwv'][l], d['cbv'][l], d['cwo'][l], d['cbo'][l], mmask)
        y = ln(y + a, d['ln2_g'][l], d['ln2_b'][l])
        h = jax.nn.relu(y @ d['w1'][l] + d['b1'][l])
        y = ln(y + h @ d['w2'][l] + d['b2'][l], d['ln3_g'][l], d['ln3_b'][l])
    return y @ params['dec_out_w'] + params['dec_out_b']


# ----------------------------- demo -----------------------------

if __name__ == "__main__":
    NVARS, D_MODEL, D_HID, NHEADS, NLAYERS = 4, 32, 64, 4, 2
    B, S_SRC, S_TGT = 4, 16, 8

    key = jax.random.PRNGKey(0)
    pkey, skey, tkey = jax.random.split(key, 3)
    params = init_params(pkey, NVARS, D_MODEL, D_HID, NHEADS, NLAYERS)
    src = jax.random.normal(skey, (B, S_SRC, NVARS), jnp.float32)
    tgt = jax.random.normal(tkey, (B, S_TGT, NVARS), jnp.float32)

    # batch_tile=2 -> grid=(2,): both v7x TensorCores get a tile, and the projection/FFN
    # matmuls still see 2*S flattened rows per step.
    fwd = jax.jit(partial(time_series_transformer, nheads=NHEADS, batch_tile=2))

    # default call (masks = None, as in the PyTorch forward), bf16 compute path
    out = jax.block_until_ready(fwd(params, src, tgt))
    assert out.shape == (B, S_TGT, NVARS), out.shape
    assert bool(jnp.all(jnp.isfinite(out)))

    # masked path (bool causal tgt mask, True = disallowed)
    causal = jnp.triu(jnp.ones((S_TGT, S_TGT), dtype=bool), k=1)
    out_m = jax.block_until_ready(fwd(params, src, tgt, tgt_mask=causal))
    assert out_m.shape == (B, S_TGT, NVARS)
    assert bool(jnp.all(jnp.isfinite(out_m)))

    # correctness check vs. pure-JAX reference (f32 compute path)
    fwd_f32 = jax.jit(partial(time_series_transformer, nheads=NHEADS, batch_tile=2,
                              compute_dtype=jnp.float32))
    out_f32 = jax.block_until_ready(fwd_f32(params, src, tgt, tgt_mask=causal))
    ref = reference_forward(params, src, tgt, tgt_mask=causal, nheads=NHEADS)
    err = float(jnp.max(jnp.abs(out_f32 - ref)))
    assert jnp.allclose(out_f32, ref, atol=2e-2, rtol=2e-2), err

    print("KERNEL_OK")
</pallas_src>

<mosaic_0001>
module attributes {stable_mosaic.version = 11 : i64} {
  func.func @kernel(%arg0: i32, %arg1: memref<2x16x128xbf16, #tpu.memory_space<vmem>>, %arg2: memref<2x8x128xbf16, #tpu.memory_space<vmem>>, %arg3: memref<16x32xf32, #tpu.memory_space<vmem>>, %arg4: memref<128x32xbf16, #tpu.memory_space<vmem>>, %arg5: memref<1x32xf32, #tpu.memory_space<vmem>>, %arg6: memref<128x32xbf16, #tpu.memory_space<vmem>>, %arg7: memref<1x32xf32, #tpu.memory_space<vmem>>, %arg8: memref<32x128xbf16, #tpu.memory_space<vmem>>, %arg9: memref<1x128xf32, #tpu.memory_space<vmem>>, %arg10: memref<2x32x32xbf16, #tpu.memory_space<vmem>>, %arg11: memref<2x1x32xf32, #tpu.memory_space<vmem>>, %arg12: memref<2x32x32xbf16, #tpu.memory_space<vmem>>, %arg13: memref<2x1x32xf32, #tpu.memory_space<vmem>>, %arg14: memref<2x32x32xbf16, #tpu.memory_space<vmem>>, %arg15: memref<2x1x32xf32, #tpu.memory_space<vmem>>, %arg16: memref<2x32x32xbf16, #tpu.memory_space<vmem>>, %arg17: memref<2x1x32xf32, #tpu.memory_space<vmem>>, %arg18: memref<2x32x64xbf16, #tpu.memory_space<vmem>>, %arg19: memref<2x1x64xf32, #tpu.memory_space<vmem>>, %arg20: memref<2x64x32xbf16, #tpu.memory_space<vmem>>, %arg21: memref<2x1x32xf32, #tpu.memory_space<vmem>>, %arg22: memref<2x1x32xf32, #tpu.memory_space<vmem>>, %arg23: memref<2x1x32xf32, #tpu.memory_space<vmem>>, %arg24: memref<2x1x32xf32, #tpu.memory_space<vmem>>, %arg25: memref<2x1x32xf32, #tpu.memory_space<vmem>>, %arg26: memref<2x32x32xbf16, #tpu.memory_space<vmem>>, %arg27: memref<2x1x32xf32, #tpu.memory_space<vmem>>, %arg28: memref<2x32x32xbf16, #tpu.memory_space<vmem>>, %arg29: memref<2x1x32xf32, #tpu.memory_space<vmem>>, %arg30: memref<2x32x32xbf16, #tpu.memory_space<vmem>>, %arg31: memref<2x1x32xf32, #tpu.memory_space<vmem>>, %arg32: memref<2x32x32xbf16, #tpu.memory_space<vmem>>, %arg33: memref<2x1x32xf32, #tpu.memory_space<vmem>>, %arg34: memref<2x32x32xbf16, #tpu.memory_space<vmem>>, %arg35: memref<2x1x32xf32, #tpu.memory_space<vmem>>, %arg36: memref<2x32x32xbf16, #tpu.memory_space<vmem>>, %arg37: memref<2x1x32xf32, #tpu.memory_space<vmem>>, %arg38: memref<2x32x32xbf16, #tpu.memory_space<vmem>>, %arg39: memref<2x1x32xf32, #tpu.memory_space<vmem>>, %arg40: memref<2x32x32xbf16, #tpu.memory_space<vmem>>, %arg41: memref<2x1x32xf32, #tpu.memory_space<vmem>>, %arg42: memref<2x32x64xbf16, #tpu.memory_space<vmem>>, %arg43: memref<2x1x64xf32, #tpu.memory_space<vmem>>, %arg44: memref<2x64x32xbf16, #tpu.memory_space<vmem>>, %arg45: memref<2x1x32xf32, #tpu.memory_space<vmem>>, %arg46: memref<2x1x32xf32, #tpu.memory_space<vmem>>, %arg47: memref<2x1x32xf32, #tpu.memory_space<vmem>>, %arg48: memref<2x1x32xf32, #tpu.memory_space<vmem>>, %arg49: memref<2x1x32xf32, #tpu.memory_space<vmem>>, %arg50: memref<2x1x32xf32, #tpu.memory_space<vmem>>, %arg51: memref<2x1x32xf32, #tpu.memory_space<vmem>>, %arg52: memref<2x8x128xf32, #tpu.memory_space<vmem>>) attributes {dimension_semantics = [#tpu.dimension_semantics<parallel>], iteration_bounds = array<i64: 2>, scalar_prefetch = 0 : i64, scratch_operands = 0 : i64, tpu.core_type = #tpu.core_type<tc>, window_params = [{transform_indices = @transform_0, window_bounds = array<i64: 2, 16, 128>}, {transform_indices = @transform_1, window_bounds = array<i64: 2, 8, 128>}, {pipeline_mode = #tpu.pipeline_mode<synchronous>, transform_indices = @transform_2, window_bounds = array<i64: 16, 32>}, {pipeline_mode = #tpu.pipeline_mode<synchronous>, transform_indices = @transform_3, window_bounds = array<i64: 128, 32>}, {pipeline_mode = #tpu.pipeline_mode<synchronous>, transform_indices = @transform_4, window_bounds = array<i64: 1, 32>}, {pipeline_mode = #tpu.pipeline_mode<synchronous>, transform_indices = @transform_5, window_bounds = array<i64: 128, 32>}, {pipeline_mode = #tpu.pipeline_mode<synchronous>, transform_indices = @transform_6, window_bounds = array<i64: 1, 32>}, {pipeline_mode = #tpu.pipeline_mode<synchronous>, transform_indices = @transform_7, window_bounds = array<i64: 32, 128>}, {pipeline_mode = #tpu.pipeline_mode<synchronous>, transform_indices = @transform_8, window_bounds = array<i64: 1, 128>}, {pipeline_mode = #tpu.pipeline_mode<synchronous>, transform_indices = @transform_9, window_bounds = array<i64: 2, 32, 32>}, {pipeline_mode = #tpu.pipeline_mode<synchronous>, transform_indices = @transform_10, window_bounds = array<i64: 2, 1, 32>}, {pipeline_mode = #tpu.pipeline_mode<synchronous>, transform_indices = @transform_11, window_bounds = array<i64: 2, 32, 32>}, {pipeline_mode = #tpu.pipeline_mode<synchronous>, transform_indices = @transform_12, window_bounds = array<i64: 2, 1, 32>}, {pipeline_mode = #tpu.pipeline_mode<synchronous>, transform_indices = @transform_13, window_bounds = array<i64: 2, 32, 32>}, {pipeline_mode = #tpu.pipeline_mode<synchronous>, transform_indices = @transform_14, window_bounds = array<i64: 2, 1, 32>}, {pipeline_mode = #tpu.pipeline_mode<synchronous>, transform_indices = @transform_15, window_bounds = array<i64: 2, 32, 32>}, {pipeline_mode = #tpu.pipeline_mode<synchronous>, transform_indices = @transform_16, window_bounds = array<i64: 2, 1, 32>}, {pipeline_mode = #tpu.pipeline_mode<synchronous>, transform_indices = @transform_17, window_bounds = array<i64: 2, 32, 64>}, {pipeline_mode = #tpu.pipeline_mode<synchronous>, transform_indices = @transform_18, window_bounds = array<i64: 2, 1, 64>}, {pipeline_mode = #tpu.pipeline_mode<synchronous>, transform_indices = @transform_19, window_bounds = array<i64: 2, 64, 32>}, {pipeline_mode = #tpu.pipeline_mode<synchronous>, transform_indices = @transform_20, window_bounds = array<i64: 2, 1, 32>}, {pipeline_mode = #tpu.pipeline_mode<synchronous>, transform_indices = @transform_21, window_bounds = array<i64: 2, 1, 32>}, {pipeline_mode = #tpu.pipeline_mode<synchronous>, transform_indices = @transform_22, window_bounds = array<i64: 2, 1, 32>}, {pipeline_mode = #tpu.pipeline_mode<synchronous>, transform_indices = @transform_23, window_bounds = array<i64: 2, 1, 32>}, {pipeline_mode = #tpu.pipeline_mode<synchronous>, transform_indices = @transform_24, window_bounds = array<i64: 2, 1, 32>}, {pipeline_mode = #tpu.pipeline_mode<synchronous>, transform_indices = @transform_25, window_bounds = array<i64: 2, 32, 32>}, {pipeline_mode = #tpu.pipeline_mode<synchronous>, transform_indices = @transform_26, window_bounds = array<i64: 2, 1, 32>}, {pipeline_mode = #tpu.pipeline_mode<synchronous>, transform_indices = @transform_27, window_bounds = array<i64: 2, 32, 32>}, {pipeline_mode = #tpu.pipeline_mode<synchronous>, transform_indices = @transform_28, window_bounds = array<i64: 2, 1, 32>}, {pipeline_mode = #tpu.pipeline_mode<synchronous>, transform_indices = @transform_29, window_bounds = array<i64: 2, 32, 32>}, {pipeline_mode = #tpu.pipeline_mode<synchronous>, transform_indices = @transform_30, window_bounds = array<i64: 2, 1, 32>}, {pipeline_mode = #tpu.pipeline_mode<synchronous>, transform_indices = @transform_31, window_bounds = array<i64: 2, 32, 32>}, {pipeline_mode = #tpu.pipeline_mode<synchronous>, transform_indices = @transform_32, window_bounds = array<i64: 2, 1, 32>}, {pipeline_mode = #tpu.pipeline_mode<synchronous>, transform_indices = @transform_33, window_bounds = array<i64: 2, 32, 32>}, {pipeline_mode = #tpu.pipeline_mode<synchronous>, transform_indices = @transform_34, window_bounds = array<i64: 2, 1, 32>}, {pipeline_mode = #tpu.pipeline_mode<synchronous>, transform_indices = @transform_35, window_bounds = array<i64: 2, 32, 32>}, {pipeline_mode = #tpu.pipeline_mode<synchronous>, transform_indices = @transform_36, window_bounds = array<i64: 2, 1, 32>}, {pipeline_mode = #tpu.pipeline_mode<synchronous>, transform_indices = @transform_37, window_bounds = array<i64: 2, 32, 32>}, {pipeline_mode = #tpu.pipeline_mode<synchronous>, transform_indices = @transform_38, window_bounds = array<i64: 2, 1, 32>}, {pipeline_mode = #tpu.pipeline_mode<synchronous>, transform_indices = @transform_39, window_bounds = array<i64: 2, 32, 32>}, {pipeline_mode = #tpu.pipeline_mode<synchronous>, transform_indices = @transform_40, window_bounds = array<i64: 2, 1, 32>}, {pipeline_mode = #tpu.pipeline_mode<synchronous>, transform_indices = @transform_41, window_bounds = array<i64: 2, 32, 64>}, {pipeline_mode = #tpu.pipeline_mode<synchronous>, transform_indices = @transform_42, window_bounds = array<i64: 2, 1, 64>}, {pipeline_mode = #tpu.pipeline_mode<synchronous>, transform_indices = @transform_43, window_bounds = array<i64: 2, 64, 32>}, {pipeline_mode = #tpu.pipeline_mode<synchronous>, transform_indices = @transform_44, window_bounds = array<i64: 2, 1, 32>}, {pipeline_mode = #tpu.pipeline_mode<synchronous>, transform_indices = @transform_45, window_bounds = array<i64: 2, 1, 32>}, {pipeline_mode = #tpu.pipeline_mode<synchronous>, transform_indices = @transform_46, window_bounds = array<i64: 2, 1, 32>}, {pipeline_mode = #tpu.pipeline_mode<synchronous>, transform_indices = @transform_47, window_bounds = array<i64: 2, 1, 32>}, {pipeline_mode = #tpu.pipeline_mode<synchronous>, transform_indices = @transform_48, window_bounds = array<i64: 2, 1, 32>}, {pipeline_mode = #tpu.pipeline_mode<synchronous>, transform_indices = @transform_49, window_bounds = array<i64: 2, 1, 32>}, {pipeline_mode = #tpu.pipeline_mode<synchronous>, transform_indices = @transform_50, window_bounds = array<i64: 2, 1, 32>}, {transform_indices = @transform_51, window_bounds = array<i64: 2, 8, 128>}]} {
    %c0 = arith.constant 0 : index
    %c0_0 = arith.constant 0 : index
    %c0_1 = arith.constant 0 : index
    %0 = vector.load %arg1[%c0, %c0_0, %c0_1] : memref<2x16x128xbf16, #tpu.memory_space<vmem>>, vector<2x16x128xbf16>
    %1 = vector.shape_cast %0 : vector<2x16x128xbf16> to vector<32x128xbf16>
    %c0_2 = arith.constant 0 : index
    %c0_3 = arith.constant 0 : index
    %2 = vector.load %arg4[%c0_2, %c0_3] : memref<128x32xbf16, #tpu.memory_space<vmem>>, vector<128x32xbf16>
    %cst = arith.constant dense<0.000000e+00> : vector<32x32xf32>
    %3 = tpu.matmul %1, %2, %cst {dimension_numbers = #tpu.dot_dimension_numbers<[1], [0], [0], [1], [0, 0, 1, 1], [], []>} : vector<32x128xbf16>, vector<128x32xbf16>, vector<32x32xf32> -> vector<32x32xf32>
    %c0_4 = arith.constant 0 : index
    %c0_5 = arith.constant 0 : index
    %4 = vector.load %arg5[%c0_4, %c0_5] : memref<1x32xf32, #tpu.memory_space<vmem>>, vector<1x32xf32>
    %5 = vector.broadcast %4 : vector<1x32xf32> to vector<32x32xf32>
    %6 = arith.addf %3, %5 : vector<32x32xf32>
    %7 = vector.shape_cast %6 : vector<32x32xf32> to vector<2x16x32xf32>
    %c0_6 = arith.constant 0 : index
    %c0_7 = arith.constant 0 : index
    %8 = vector.load %arg3[%c0_6, %c0_7] : memref<16x32xf32, #tpu.memory_space<vmem>>, vector<16x32xf32>
    %9 = vector.shape_cast %8 : vector<16x32xf32> to vector<1x16x32xf32>
    %10 = vector.broadcast %9 : vector<1x16x32xf32> to vector<2x16x32xf32>
    %11 = arith.addf %7, %10 : vector<2x16x32xf32>
    %12 = vector.shape_cast %11 : vector<2x16x32xf32> to vector<32x32xf32>
    %c0_i32 = arith.constant 0 : i32
    %c2_i32 = arith.constant 2 : i32
    %13 = arith.addi %c0_i32, %c2_i32 : i32
    %c1_i32 = arith.constant 1 : i32
    %14 = scf.for %arg53 = %c0_i32 to %13 step %c1_i32 iter_args(%arg54 = %12) -> (vector<32x32xf32>)  : i32 {
      %33 = arith.truncf %arg54 : vector<32x32xf32> to vector<32x32xbf16>
      %34 = arith.index_cast %arg53 : i32 to index
      %c0_29 = arith.constant 0 : index
      %c0_30 = arith.constant 0 : index
      %35 = vector.load %arg10[%34, %c0_29, %c0_30] : memref<2x32x32xbf16, #tpu.memory_space<vmem>>, vector<1x32x32xbf16>
      %36 = vector.shape_cast %35 : vector<1x32x32xbf16> to vector<32x32xbf16>
      %cst_31 = arith.constant dense<0.000000e+00> : vector<32x32xf32>
      %37 = tpu.matmul %33, %36, %cst_31 {dimension_numbers = #tpu.dot_dimension_numbers<[1], [0], [0], [1], [0, 0, 1, 1], [], []>} : vector<32x32xbf16>, vector<32x32xbf16>, vector<32x32xf32> -> vector<32x32xf32>
      %38 = arith.index_cast %arg53 : i32 to index
      %c0_32 = arith.constant 0 : index
      %c0_33 = arith.constant 0 : index
      %39 = vector.load %arg11[%38, %c0_32, %c0_33] : memref<2x1x32xf32, #tpu.memory_space<vmem>>, vector<1x1x32xf32>
      %40 = vector.shape_cast %39 : vector<1x1x32xf32> to vector<1x32xf32>
      %41 = vector.broadcast %40 : vector<1x32xf32> to vector<32x32xf32>
      %42 = arith.addf %37, %41 : vector<32x32xf32>
      %43 = arith.index_cast %arg53 : i32 to index
      %c0_34 = arith.constant 0 : index
      %c0_35 = arith.constant 0 : index
      %44 = vector.load %arg12[%43, %c0_34, %c0_35] : memref<2x32x32xbf16, #tpu.memory_space<vmem>>, vector<1x32x32xbf16>
      %45 = vector.shape_cast %44 : vector<1x32x32xbf16> to vector<32x32xbf16>
      %cst_36 = arith.constant dense<0.000000e+00> : vector<32x32xf32>
      %46 = tpu.matmul %33, %45, %cst_36 {dimension_numbers = #tpu.dot_dimension_numbers<[1], [0], [0], [1], [0, 0, 1, 1], [], []>} : vector<32x32xbf16>, vector<32x32xbf16>, vector<32x32xf32> -> vector<32x32xf32>
      %47 = arith.index_cast %arg53 : i32 to index
      %c0_37 = arith.constant 0 : index
      %c0_38 = arith.constant 0 : index
      %48 = vector.load %arg13[%47, %c0_37, %c0_38] : memref<2x1x32xf32, #tpu.memory_space<vmem>>, vector<1x1x32xf32>
      %49 = vector.shape_cast %48 : vector<1x1x32xf32> to vector<1x32xf32>
      %50 = vector.broadcast %49 : vector<1x32xf32> to vector<32x32xf32>
      %51 = arith.addf %46, %50 : vector<32x32xf32>
      %52 = arith.index_cast %arg53 : i32 to index
      %c0_39 = arith.constant 0 : index
      %c0_40 = arith.constant 0 : index
      %53 = vector.load %arg14[%52, %c0_39, %c0_40] : memref<2x32x32xbf16, #tpu.memory_space<vmem>>, vector<1x32x32xbf16>
      %54 = vector.shape_cast %53 : vector<1x32x32xbf16> to vector<32x32xbf16>
      %cst_41 = arith.constant dense<0.000000e+00> : vector<32x32xf32>
      %55 = tpu.matmul %33, %54, %cst_41 {dimension_numbers = #tpu.dot_dimension_numbers<[1], [0], [0], [1], [0, 0, 1, 1], [], []>} : vector<32x32xbf16>, vector<32x32xbf16>, vector<32x32xf32> -> vector<32x32xf32>
      %56 = arith.index_cast %arg53 : i32 to index
      %c0_42 = arith.constant 0 : index
      %c0_43 = arith.constant 0 : index
      %57 = vector.load %arg15[%56, %c0_42, %c0_43] : memref<2x1x32xf32, #tpu.memory_space<vmem>>, vector<1x1x32xf32>
      %58 = vector.shape_cast %57 : vector<1x1x32xf32> to vector<1x32xf32>
      %59 = vector.broadcast %58 : vector<1x32xf32> to vector<32x32xf32>
      %60 = arith.addf %55, %59 : vector<32x32xf32>
      %cst_44 = arith.constant 0.353553385 : f32
      %61 = vector.broadcast %cst_44 : f32 to vector<32x32xf32>
      %62 = arith.mulf %42, %61 : vector<32x32xf32>
      %63 = vector.shape_cast %62 : vector<32x32xf32> to vector<2x16x32xf32>
      %64 = vector.shape_cast %51 : vector<32x32xf32> to vector<2x16x32xf32>
      %65 = vector.shape_cast %60 : vector<32x32xf32> to vector<2x16x32xf32>
      %66 = arith.index_cast %arg53 : i32 to index
      %c0_45 = arith.constant 0 : index
      %c0_46 = arith.constant 0 : index
      %67 = vector.load %arg16[%66, %c0_45, %c0_46] : memref<2x32x32xbf16, #tpu.memory_space<vmem>>, vector<1x32x32xbf16>
      %68 = vector.shape_cast %67 : vector<1x32x32xbf16> to vector<32x32xbf16>
      %69 = arith.index_cast %arg53 : i32 to index
      %c0_47 = arith.constant 0 : index
      %c0_48 = arith.constant 0 : index
      %70 = vector.load %arg17[%69, %c0_47, %c0_48] : memref<2x1x32xf32, #tpu.memory_space<vmem>>, vector<1x1x32xf32>
      %71 = vector.shape_cast %70 : vector<1x1x32xf32> to vector<1x32xf32>
      %72 = arith.truncf %63 : vector<2x16x32xf32> to vector<2x16x32xbf16>
      %73 = arith.truncf %64 : vector<2x16x32xf32> to vector<2x16x32xbf16>
      %74 = arith.truncf %65 : vector<2x16x32xf32> to vector<2x16x32xbf16>
      %75 = vector.extract_strided_slice %72 {offsets = [0, 0, 0], sizes = [2, 16, 8], strides = [1, 1, 1]} : vector<2x16x32xbf16> to vector<2x16x8xbf16>
      %76 = vector.extract_strided_slice %73 {offsets = [0, 0, 0], sizes = [2, 16, 8], strides = [1, 1, 1]} : vector<2x16x32xbf16> to vector<2x16x8xbf16>
      "tpu.trace_start"() <{level = 10 : i32, message = "bqd,bkd->bqk"}> : () -> ()
      %cst_49 = arith.constant dense<0.000000e+00> : vector<2x16x16xf32>
      %77 = tpu.matmul %75, %76, %cst_49 {dimension_numbers = #tpu.dot_dimension_numbers<[2], [2], [1], [1], [0, 0, 0, 1, 1, 1], [0], [0]>} : vector<2x16x8xbf16>, vector<2x16x8xbf16>, vector<2x16x16xf32> -> vector<2x16x16xf32>
      "tpu.trace_stop"() : () -> ()
      %cst_50 = arith.constant dense<0xFF800000> : vector<2x16xf32>
      %78 = vector.multi_reduction <maximumf>, %77, %cst_50 [2] : vector<2x16x16xf32> to vector<2x16xf32>
      %79 = vector.shape_cast %78 : vector<2x16xf32> to vector<2x16x1xf32>
      %80 = vector.broadcast %79 : vector<2x16x1xf32> to vector<2x16x16xf32>
      %81 = arith.subf %77, %80 : vector<2x16x16xf32>
      %82 = math.exp %81 : vector<2x16x16xf32>
      %cst_51 = arith.constant dense<0.000000e+00> : vector<2x16xf32>
      %83 = vector.multi_reduction <add>, %82, %cst_51 [2] : vector<2x16x16xf32> to vector<2x16xf32>
      %84 = vector.shape_cast %83 : vector<2x16xf32> to vector<2x16x1xf32>
      %85 = tpu.reciprocal %84 {approx = true} : vector<2x16x1xf32> -> vector<2x16x1xf32>
      %86 = vector.broadcast %85 : vector<2x16x1xf32> to vector<2x16x16xf32>
      %87 = arith.mulf %82, %86 : vector<2x16x16xf32>
      %88 = arith.truncf %87 : vector<2x16x16xf32> to vector<2x16x16xbf16>
      %89 = vector.extract_strided_slice %74 {offsets = [0, 0, 0], sizes = [2, 16, 8], strides = [1, 1, 1]} : vector<2x16x32xbf16> to vector<2x16x8xbf16>
      "tpu.trace_start"() <{level = 10 : i32, message = "bqk,bkd->bqd"}> : () -> ()
      %cst_52 = arith.constant dense<0.000000e+00> : vector<2x16x8xf32>
      %90 = tpu.matmul %88, %89, %cst_52 {dimension_numbers = #tpu.dot_dimension_numbers<[2], [1], [1], [2], [0, 0, 0, 1, 1, 2], [0], [0]>} : vector<2x16x16xbf16>, vector<2x16x8xbf16>, vector<2x16x8xf32> -> vector<2x16x8xf32>
      "tpu.trace_stop"() : () -> ()
      %91 = vector.extract_strided_slice %72 {offsets = [0, 0, 8], sizes = [2, 16, 8], strides = [1, 1, 1]} : vector<2x16x32xbf16> to vector<2x16x8xbf16>
      %92 = vector.extract_strided_slice %73 {offsets = [0, 0, 8], sizes = [2, 16, 8], strides = [1, 1, 1]} : vector<2x16x32xbf16> to vector<2x16x8xbf16>
      "tpu.trace_start"() <{level = 10 : i32, message = "bqd,bkd->bqk"}> : () -> ()
      %cst_53 = arith.constant dense<0.000000e+00> : vector<2x16x16xf32>
      %93 = tpu.matmul %91, %92, %cst_53 {dimension_numbers = #tpu.dot_dimension_numbers<[2], [2], [1], [1], [0, 0, 0, 1, 1, 1], [0], [0]>} : vector<2x16x8xbf16>, vector<2x16x8xbf16>, vector<2x16x16xf32> -> vector<2x16x16xf32>
      "tpu.trace_stop"() : () -> ()
      %cst_54 = arith.constant dense<0xFF800000> : vector<2x16xf32>
      %94 = vector.multi_reduction <maximumf>, %93, %cst_54 [2] : vector<2x16x16xf32> to vector<2x16xf32>
      %95 = vector.shape_cast %94 : vector<2x16xf32> to vector<2x16x1xf32>
      %96 = vector.broadcast %95 : vector<2x16x1xf32> to vector<2x16x16xf32>
      %97 = arith.subf %93, %96 : vector<2x16x16xf32>
      %98 = math.exp %97 : vector<2x16x16xf32>
      %cst_55 = arith.constant dense<0.000000e+00> : vector<2x16xf32>
      %99 = vector.multi_reduction <add>, %98, %cst_55 [2] : vector<2x16x16xf32> to vector<2x16xf32>
      %100 = vector.shape_cast %99 : vector<2x16xf32> to vector<2x16x1xf32>
      %101 = tpu.reciprocal %100 {approx = true} : vector<2x16x1xf32> -> vector<2x16x1xf32>
      %102 = vector.broadcast %101 : vector<2x16x1xf32> to vector<2x16x16xf32>
      %103 = arith.mulf %98, %102 : vector<2x16x16xf32>
      %104 = arith.truncf %103 : vector<2x16x16xf32> to vector<2x16x16xbf16>
      %105 = vector.extract_strided_slice %74 {offsets = [0, 0, 8], sizes = [2, 16, 8], strides = [1, 1, 1]} : vector<2x16x32xbf16> to vector<2x16x8xbf16>
      "tpu.trace_start"() <{level = 10 : i32, message = "bqk,bkd->bqd"}> : () -> ()
      %cst_56 = arith.constant dense<0.000000e+00> : vector<2x16x8xf32>
      %106 = tpu.matmul %104, %105, %cst_56 {dimension_numbers = #tpu.dot_dimension_numbers<[2], [1], [1], [2], [0, 0, 0, 1, 1, 2], [0], [0]>} : vector<2x16x16xbf16>, vector<2x16x8xbf16>, vector<2x16x8xf32> -> vector<2x16x8xf32>
      "tpu.trace_stop"() : () -> ()
      %107 = vector.extract_strided_slice %72 {offsets = [0, 0, 16], sizes = [2, 16, 8], strides = [1, 1, 1]} : vector<2x16x32xbf16> to vector<2x16x8xbf16>
      %108 = vector.extract_strided_slice %73 {offsets = [0, 0, 16], sizes = [2, 16, 8], strides = [1, 1, 1]} : vector<2x16x32xbf16> to vector<2x16x8xbf16>
      "tpu.trace_start"() <{level = 10 : i32, message = "bqd,bkd->bqk"}> : () -> ()
      %cst_57 = arith.constant dense<0.000000e+00> : vector<2x16x16xf32>
      %109 = tpu.matmul %107, %108, %cst_57 {dimension_numbers = #tpu.dot_dimension_numbers<[2], [2], [1], [1], [0, 0, 0, 1, 1, 1], [0], [0]>} : vector<2x16x8xbf16>, vector<2x16x8xbf16>, vector<2x16x16xf32> -> vector<2x16x16xf32>
      "tpu.trace_stop"() : () -> ()
      %cst_58 = arith.constant dense<0xFF800000> : vector<2x16xf32>
      %110 = vector.multi_reduction <maximumf>, %109, %cst_58 [2] : vector<2x16x16xf32> to vector<2x16xf32>
      %111 = vector.shape_cast %110 : vector<2x16xf32> to vector<2x16x1xf32>
      %112 = vector.broadcast %111 : vector<2x16x1xf32> to vector<2x16x16xf32>
      %113 = arith.subf %109, %112 : vector<2x16x16xf32>
      %114 = math.exp %113 : vector<2x16x16xf32>
      %cst_59 = arith.constant dense<0.000000e+00> : vector<2x16xf32>
      %115 = vector.multi_reduction <add>, %114, %cst_59 [2] : vector<2x16x16xf32> to vector<2x16xf32>
      %116 = vector.shape_cast %115 : vector<2x16xf32> to vector<2x16x1xf32>
      %117 = tpu.reciprocal %116 {approx = true} : vector<2x16x1xf32> -> vector<2x16x1xf32>
      %118 = vector.broadcast %117 : vector<2x16x1xf32> to vector<2x16x16xf32>
      %119 = arith.mulf %114, %118 : vector<2x16x16xf32>
      %120 = arith.truncf %119 : vector<2x16x16xf32> to vector<2x16x16xbf16>
      %121 = vector.extract_strided_slice %74 {offsets = [0, 0, 16], sizes = [2, 16, 8], strides = [1, 1, 1]} : vector<2x16x32xbf16> to vector<2x16x8xbf16>
      "tpu.trace_start"() <{level = 10 : i32, message = "bqk,bkd->bqd"}> : () -> ()
      %cst_60 = arith.constant dense<0.000000e+00> : vector<2x16x8xf32>
      %122 = tpu.matmul %120, %121, %cst_60 {dimension_numbers = #tpu.dot_dimension_numbers<[2], [1], [1], [2], [0, 0, 0, 1, 1, 2], [0], [0]>} : vector<2x16x16xbf16>, vector<2x16x8xbf16>, vector<2x16x8xf32> -> vector<2x16x8xf32>
      "tpu.trace_stop"() : () -> ()
      %123 = vector.extract_strided_slice %72 {offsets = [0, 0, 24], sizes = [2, 16, 8], strides = [1, 1, 1]} : vector<2x16x32xbf16> to vector<2x16x8xbf16>
      %124 = vector.extract_strided_slice %73 {offsets = [0, 0, 24], sizes = [2, 16, 8], strides = [1, 1, 1]} : vector<2x16x32xbf16> to vector<2x16x8xbf16>
      "tpu.trace_start"() <{level = 10 : i32, message = "bqd,bkd->bqk"}> : () -> ()
      %cst_61 = arith.constant dense<0.000000e+00> : vector<2x16x16xf32>
      %125 = tpu.matmul %123, %124, %cst_61 {dimension_numbers = #tpu.dot_dimension_numbers<[2], [2], [1], [1], [0, 0, 0, 1, 1, 1], [0], [0]>} : vector<2x16x8xbf16>, vector<2x16x8xbf16>, vector<2x16x16xf32> -> vector<2x16x16xf32>
      "tpu.trace_stop"() : () -> ()
      %cst_62 = arith.constant dense<0xFF800000> : vector<2x16xf32>
      %126 = vector.multi_reduction <maximumf>, %125, %cst_62 [2] : vector<2x16x16xf32> to vector<2x16xf32>
      %127 = vector.shape_cast %126 : vector<2x16xf32> to vector<2x16x1xf32>
      %128 = vector.broadcast %127 : vector<2x16x1xf32> to vector<2x16x16xf32>
      %129 = arith.subf %125, %128 : vector<2x16x16xf32>
      %130 = math.exp %129 : vector<2x16x16xf32>
      %cst_63 = arith.constant dense<0.000000e+00> : vector<2x16xf32>
      %131 = vector.multi_reduction <add>, %130, %cst_63 [2] : vector<2x16x16xf32> to vector<2x16xf32>
      %132 = vector.shape_cast %131 : vector<2x16xf32> to vector<2x16x1xf32>
      %133 = tpu.reciprocal %132 {approx = true} : vector<2x16x1xf32> -> vector<2x16x1xf32>
      %134 = vector.broadcast %133 : vector<2x16x1xf32> to vector<2x16x16xf32>
      %135 = arith.mulf %130, %134 : vector<2x16x16xf32>
      %136 = arith.truncf %135 : vector<2x16x16xf32> to vector<2x16x16xbf16>
      %137 = vector.extract_strided_slice %74 {offsets = [0, 0, 24], sizes = [2, 16, 8], strides = [1, 1, 1]} : vector<2x16x32xbf16> to vector<2x16x8xbf16>
      "tpu.trace_start"() <{level = 10 : i32, message = "bqk,bkd->bqd"}> : () -> ()
      %cst_64 = arith.constant dense<0.000000e+00> : vector<2x16x8xf32>
      %138 = tpu.matmul %136, %137, %cst_64 {dimension_numbers = #tpu.dot_dimension_numbers<[2], [1], [1], [2], [0, 0, 0, 1, 1, 2], [0], [0]>} : vector<2x16x16xbf16>, vector<2x16x8xbf16>, vector<2x16x8xf32> -> vector<2x16x8xf32>
      "tpu.trace_stop"() : () -> ()
      %139 = tpu.concatenate %90, %106, %122, %138 in 2 : vector<2x16x8xf32>, vector<2x16x8xf32>, vector<2x16x8xf32>, vector<2x16x8xf32> -> vector<2x16x32xf32>
      %140 = vector.shape_cast %139 : vector<2x16x32xf32> to vector<32x32xf32>
      %141 = arith.truncf %140 : vector<32x32xf32> to vector<32x32xbf16>
      %cst_65 = arith.constant dense<0.000000e+00> : vector<32x32xf32>
      %142 = tpu.matmul %141, %68, %cst_65 {dimension_numbers = #tpu.dot_dimension_numbers<[1], [0], [0], [1], [0, 0, 1, 1], [], []>} : vector<32x32xbf16>, vector<32x32xbf16>, vector<32x32xf32> -> vector<32x32xf32>
      %143 = vector.broadcast %71 : vector<1x32xf32> to vector<32x32xf32>
      %144 = arith.addf %142, %143 : vector<32x32xf32>
      %145 = arith.addf %arg54, %144 : vector<32x32xf32>
      %146 = arith.index_cast %arg53 : i32 to index
      %c0_66 = arith.constant 0 : index
      %c0_67 = arith.constant 0 : index
      %147 = vector.load %arg22[%146, %c0_66, %c0_67] : memref<2x1x32xf32, #tpu.memory_space<vmem>>, vector<1x1x32xf32>
      %148 = vector.shape_cast %147 : vector<1x1x32xf32> to vector<1x32xf32>
      %149 = arith.index_cast %arg53 : i32 to index
      %c0_68 = arith.constant 0 : index
      %c0_69 = arith.constant 0 : index
      %150 = vector.load %arg23[%149, %c0_68, %c0_69] : memref<2x1x32xf32, #tpu.memory_space<vmem>>, vector<1x1x32xf32>
      %151 = vector.shape_cast %150 : vector<1x1x32xf32> to vector<1x32xf32>
      %cst_70 = arith.constant dense<0.000000e+00> : vector<32xf32>
      %152 = vector.multi_reduction <add>, %145, %cst_70 [1] : vector<32x32xf32> to vector<32xf32>
      %153 = vector.shape_cast %152 : vector<32xf32> to vector<32x1xf32>
      %cst_71 = arith.constant 3.200000e+01 : f32
      %154 = vector.broadcast %cst_71 : f32 to vector<32x1xf32>
      %155 = arith.divf %153, %154 : vector<32x1xf32>
      %156 = vector.broadcast %155 : vector<32x1xf32> to vector<32x32xf32>
      %157 = arith.subf %145, %156 : vector<32x32xf32>
      %158 = arith.mulf %157, %157 : vector<32x32xf32>
      %cst_72 = arith.constant dense<0.000000e+00> : vector<32xf32>
      %159 = vector.multi_reduction <add>, %158, %cst_72 [1] : vector<32x32xf32> to vector<32xf32>
      %160 = vector.shape_cast %159 : vector<32xf32> to vector<32x1xf32>
      %cst_73 = arith.constant 3.200000e+01 : f32
      %161 = vector.broadcast %cst_73 : f32 to vector<32x1xf32>
      %162 = arith.divf %160, %161 : vector<32x1xf32>
      %cst_74 = arith.constant 9.99999974E-6 : f32
      %163 = vector.broadcast %cst_74 : f32 to vector<32x1xf32>
      %164 = arith.addf %162, %163 : vector<32x1xf32>
      %165 = math.rsqrt %164 : vector<32x1xf32>
      %166 = vector.broadcast %165 : vector<32x1xf32> to vector<32x32xf32>
      %167 = arith.mulf %157, %166 : vector<32x32xf32>
      %168 = vector.broadcast %148 : vector<1x32xf32> to vector<32x32xf32>
      %169 = arith.mulf %167, %168 : vector<32x32xf32>
      %170 = vector.broadcast %151 : vector<1x32xf32> to vector<32x32xf32>
      %171 = arith.addf %169, %170 : vector<32x32xf32>
      %172 = arith.truncf %171 : vector<32x32xf32> to vector<32x32xbf16>
      %173 = arith.index_cast %arg53 : i32 to index
      %c0_75 = arith.constant 0 : index
      %c0_76 = arith.constant 0 : index
      %174 = vector.load %arg18[%173, %c0_75, %c0_76] : memref<2x32x64xbf16, #tpu.memory_space<vmem>>, vector<1x32x64xbf16>
      %175 = vector.shape_cast %174 : vector<1x32x64xbf16> to vector<32x64xbf16>
      %cst_77 = arith.constant dense<0.000000e+00> : vector<32x64xf32>
      %176 = tpu.matmul %172, %175, %cst_77 {dimension_numbers = #tpu.dot_dimension_numbers<[1], [0], [0], [1], [0, 0, 1, 1], [], []>} : vector<32x32xbf16>, vector<32x64xbf16>, vector<32x64xf32> -> vector<32x64xf32>
      %177 = arith.index_cast %arg53 : i32 to index
      %c0_78 = arith.constant 0 : index
      %c0_79 = arith.constant 0 : index
      %178 = vector.load %arg19[%177, %c0_78, %c0_79] : memref<2x1x64xf32, #tpu.memory_space<vmem>>, vector<1x1x64xf32>
      %179 = vector.shape_cast %178 : vector<1x1x64xf32> to vector<1x64xf32>
      %180 = vector.broadcast %179 : vector<1x64xf32> to vector<32x64xf32>
      %181 = arith.addf %176, %180 : vector<32x64xf32>
      %cst_80 = arith.constant 0.000000e+00 : f32
      %182 = vector.broadcast %cst_80 : f32 to vector<32x64xf32>
      %183 = arith.maximumf %181, %182 : vector<32x64xf32>
      %184 = arith.truncf %183 : vector<32x64xf32> to vector<32x64xbf16>
      %185 = arith.index_cast %arg53 : i32 to index
      %c0_81 = arith.constant 0 : index
      %c0_82 = arith.constant 0 : index
      %186 = vector.load %arg20[%185, %c0_81, %c0_82] : memref<2x64x32xbf16, #tpu.memory_space<vmem>>, vector<1x64x32xbf16>
      %187 = vector.shape_cast %186 : vector<1x64x32xbf16> to vector<64x32xbf16>
      %cst_83 = arith.constant dense<0.000000e+00> : vector<32x32xf32>
      %188 = tpu.matmul %184, %187, %cst_83 {dimension_numbers = #tpu.dot_dimension_numbers<[1], [0], [0], [1], [0, 0, 1, 1], [], []>} : vector<32x64xbf16>, vector<64x32xbf16>, vector<32x32xf32> -> vector<32x32xf32>
      %189 = arith.index_cast %arg53 : i32 to index
      %c0_84 = arith.constant 0 : index
      %c0_85 = arith.constant 0 : index
      %190 = vector.load %arg21[%189, %c0_84, %c0_85] : memref<2x1x32xf32, #tpu.memory_space<vmem>>, vector<1x1x32xf32>
      %191 = vector.shape_cast %190 : vector<1x1x32xf32> to vector<1x32xf32>
      %192 = vector.broadcast %191 : vector<1x32xf32> to vector<32x32xf32>
      %193 = arith.addf %188, %192 : vector<32x32xf32>
      %194 = arith.addf %171, %193 : vector<32x32xf32>
      %195 = arith.index_cast %arg53 : i32 to index
      %c0_86 = arith.constant 0 : index
      %c0_87 = arith.constant 0 : index
      %196 = vector.load %arg24[%195, %c0_86, %c0_87] : memref<2x1x32xf32, #tpu.memory_space<vmem>>, vector<1x1x32xf32>
      %197 = vector.shape_cast %196 : vector<1x1x32xf32> to vector<1x32xf32>
      %198 = arith.index_cast %arg53 : i32 to index
      %c0_88 = arith.constant 0 : index
      %c0_89 = arith.constant 0 : index
      %199 = vector.load %arg25[%198, %c0_88, %c0_89] : memref<2x1x32xf32, #tpu.memory_space<vmem>>, vector<1x1x32xf32>
      %200 = vector.shape_cast %199 : vector<1x1x32xf32> to vector<1x32xf32>
      %cst_90 = arith.constant dense<0.000000e+00> : vector<32xf32>
      %201 = vector.multi_reduction <add>, %194, %cst_90 [1] : vector<32x32xf32> to vector<32xf32>
      %202 = vector.shape_cast %201 : vector<32xf32> to vector<32x1xf32>
      %cst_91 = arith.constant 3.200000e+01 : f32
      %203 = vector.broadcast %cst_91 : f32 to vector<32x1xf32>
      %204 = arith.divf %202, %203 : vector<32x1xf32>
      %205 = vector.broadcast %204 : vector<32x1xf32> to vector<32x32xf32>
      %206 = arith.subf %194, %205 : vector<32x32xf32>
      %207 = arith.mulf %206, %206 : vector<32x32xf32>
      %cst_92 = arith.constant dense<0.000000e+00> : vector<32xf32>
      %208 = vector.multi_reduction <add>, %207, %cst_92 [1] : vector<32x32xf32> to vector<32xf32>
      %209 = vector.shape_cast %208 : vector<32xf32> to vector<32x1xf32>
      %cst_93 = arith.constant 3.200000e+01 : f32
      %210 = vector.broadcast %cst_93 : f32 to vector<32x1xf32>
      %211 = arith.divf %209, %210 : vector<32x1xf32>
      %cst_94 = arith.constant 9.99999974E-6 : f32
      %212 = vector.broadcast %cst_94 : f32 to vector<32x1xf32>
      %213 = arith.addf %211, %212 : vector<32x1xf32>
      %214 = math.rsqrt %213 : vector<32x1xf32>
      %215 = vector.broadcast %214 : vector<32x1xf32> to vector<32x32xf32>
      %216 = arith.mulf %206, %215 : vector<32x32xf32>
      %217 = vector.broadcast %197 : vector<1x32xf32> to vector<32x32xf32>
      %218 = arith.mulf %216, %217 : vector<32x32xf32>
      %219 = vector.broadcast %200 : vector<1x32xf32> to vector<32x32xf32>
      %220 = arith.addf %218, %219 : vector<32x32xf32>
      scf.yield %220 : vector<32x32xf32>
    }
    %c2_i32_8 = arith.constant 2 : i32
    %15 = arith.truncf %14 : vector<32x32xf32> to vector<32x32xbf16>
    %c0_9 = arith.constant 0 : index
    %c0_10 = arith.constant 0 : index
    %c0_11 = arith.constant 0 : index
    %16 = vector.load %arg2[%c0_9, %c0_10, %c0_11] : memref<2x8x128xbf16, #tpu.memory_space<vmem>>, vector<2x8x128xbf16>
    %17 = vector.shape_cast %16 : vector<2x8x128xbf16> to vector<16x128xbf16>
    %c0_12 = arith.constant 0 : index
    %c0_13 = arith.constant 0 : index
    %18 = vector.load %arg6[%c0_12, %c0_13] : memref<128x32xbf16, #tpu.memory_space<vmem>>, vector<128x32xbf16>
    %cst_14 = arith.constant dense<0.000000e+00> : vector<16x32xf32>
    %19 = tpu.matmul %17, %18, %cst_14 {dimension_numbers = #tpu.dot_dimension_numbers<[1], [0], [0], [1], [0, 0, 1, 1], [], []>} : vector<16x128xbf16>, vector<128x32xbf16>, vector<16x32xf32> -> vector<16x32xf32>
    %c0_15 = arith.constant 0 : index
    %c0_16 = arith.constant 0 : index
    %20 = vector.load %arg7[%c0_15, %c0_16] : memref<1x32xf32, #tpu.memory_space<vmem>>, vector<1x32xf32>
    %21 = vector.broadcast %20 : vector<1x32xf32> to vector<16x32xf32>
    %22 = arith.addf %19, %21 : vector<16x32xf32>
    %c0_i32_17 = arith.constant 0 : i32
    %c2_i32_18 = arith.constant 2 : i32
    %23 = arith.addi %c0_i32_17, %c2_i32_18 : i32
    %c1_i32_19 = arith.constant 1 : i32
    %24 = scf.for %arg53 = %c0_i32_17 to %23 step %c1_i32_19 iter_args(%arg54 = %22) -> (vector<16x32xf32>)  : i32 {
      %33 = arith.truncf %arg54 : vector<16x32xf32> to vector<16x32xbf16>
      %34 = arith.index_cast %arg53 : i32 to index
      %c0_29 = arith.constant 0 : index
      %c0_30 = arith.constant 0 : index
      %35 = vector.load %arg26[%34, %c0_29, %c0_30] : memref<2x32x32xbf16, #tpu.memory_space<vmem>>, vector<1x32x32xbf16>
      %36 = vector.shape_cast %35 : vector<1x32x32xbf16> to vector<32x32xbf16>
      %cst_31 = arith.constant dense<0.000000e+00> : vector<16x32xf32>
      %37 = tpu.matmul %33, %36, %cst_31 {dimension_numbers = #tpu.dot_dimension_numbers<[1], [0], [0], [1], [0, 0, 1, 1], [], []>} : vector<16x32xbf16>, vector<32x32xbf16>, vector<16x32xf32> -> vector<16x32xf32>
      %38 = arith.index_cast %arg53 : i32 to index
      %c0_32 = arith.constant 0 : index
      %c0_33 = arith.constant 0 : index
      %39 = vector.load %arg27[%38, %c0_32, %c0_33] : memref<2x1x32xf32, #tpu.memory_space<vmem>>, vector<1x1x32xf32>
      %40 = vector.shape_cast %39 : vector<1x1x32xf32> to vector<1x32xf32>
      %41 = vector.broadcast %40 : vector<1x32xf32> to vector<16x32xf32>
      %42 = arith.addf %37, %41 : vector<16x32xf32>
      %43 = arith.index_cast %arg53 : i32 to index
      %c0_34 = arith.constant 0 : index
      %c0_35 = arith.constant 0 : index
      %44 = vector.load %arg28[%43, %c0_34, %c0_35] : memref<2x32x32xbf16, #tpu.memory_space<vmem>>, vector<1x32x32xbf16>
      %45 = vector.shape_cast %44 : vector<1x32x32xbf16> to vector<32x32xbf16>
      %cst_36 = arith.constant dense<0.000000e+00> : vector<16x32xf32>
      %46 = tpu.matmul %33, %45, %cst_36 {dimension_numbers = #tpu.dot_dimension_numbers<[1], [0], [0], [1], [0, 0, 1, 1], [], []>} : vector<16x32xbf16>, vector<32x32xbf16>, vector<16x32xf32> -> vector<16x32xf32>
      %47 = arith.index_cast %arg53 : i32 to index
      %c0_37 = arith.constant 0 : index
      %c0_38 = arith.constant 0 : index
      %48 = vector.load %arg29[%47, %c0_37, %c0_38] : memref<2x1x32xf32, #tpu.memory_space<vmem>>, vector<1x1x32xf32>
      %49 = vector.shape_cast %48 : vector<1x1x32xf32> to vector<1x32xf32>
      %50 = vector.broadcast %49 : vector<1x32xf32> to vector<16x32xf32>
      %51 = arith.addf %46, %50 : vector<16x32xf32>
      %52 = arith.index_cast %arg53 : i32 to index
      %c0_39 = arith.constant 0 : index
      %c0_40 = arith.constant 0 : index
      %53 = vector.load %arg30[%52, %c0_39, %c0_40] : memref<2x32x32xbf16, #tpu.memory_space<vmem>>, vector<1x32x32xbf16>
      %54 = vector.shape_cast %53 : vector<1x32x32xbf16> to vector<32x32xbf16>
      %cst_41 = arith.constant dense<0.000000e+00> : vector<16x32xf32>
      %55 = tpu.matmul %33, %54, %cst_41 {dimension_numbers = #tpu.dot_dimension_numbers<[1], [0], [0], [1], [0, 0, 1, 1], [], []>} : vector<16x32xbf16>, vector<32x32xbf16>, vector<16x32xf32> -> vector<16x32xf32>
      %56 = arith.index_cast %arg53 : i32 to index
      %c0_42 = arith.constant 0 : index
      %c0_43 = arith.constant 0 : index
      %57 = vector.load %arg31[%56, %c0_42, %c0_43] : memref<2x1x32xf32, #tpu.memory_space<vmem>>, vector<1x1x32xf32>
      %58 = vector.shape_cast %57 : vector<1x1x32xf32> to vector<1x32xf32>
      %59 = vector.broadcast %58 : vector<1x32xf32> to vector<16x32xf32>
      %60 = arith.addf %55, %59 : vector<16x32xf32>
      %cst_44 = arith.constant 0.353553385 : f32
      %61 = vector.broadcast %cst_44 : f32 to vector<16x32xf32>
      %62 = arith.mulf %42, %61 : vector<16x32xf32>
      %63 = vector.shape_cast %62 : vector<16x32xf32> to vector<2x8x32xf32>
      %64 = vector.shape_cast %51 : vector<16x32xf32> to vector<2x8x32xf32>
      %65 = vector.shape_cast %60 : vector<16x32xf32> to vector<2x8x32xf32>
      %66 = arith.index_cast %arg53 : i32 to index
      %c0_45 = arith.constant 0 : index
      %c0_46 = arith.constant 0 : index
      %67 = vector.load %arg32[%66, %c0_45, %c0_46] : memref<2x32x32xbf16, #tpu.memory_space<vmem>>, vector<1x32x32xbf16>
      %68 = vector.shape_cast %67 : vector<1x32x32xbf16> to vector<32x32xbf16>
      %69 = arith.index_cast %arg53 : i32 to index
      %c0_47 = arith.constant 0 : index
      %c0_48 = arith.constant 0 : index
      %70 = vector.load %arg33[%69, %c0_47, %c0_48] : memref<2x1x32xf32, #tpu.memory_space<vmem>>, vector<1x1x32xf32>
      %71 = vector.shape_cast %70 : vector<1x1x32xf32> to vector<1x32xf32>
      %72 = arith.truncf %63 : vector<2x8x32xf32> to vector<2x8x32xbf16>
      %73 = arith.truncf %64 : vector<2x8x32xf32> to vector<2x8x32xbf16>
      %74 = arith.truncf %65 : vector<2x8x32xf32> to vector<2x8x32xbf16>
      %75 = vector.extract_strided_slice %72 {offsets = [0, 0, 0], sizes = [2, 8, 8], strides = [1, 1, 1]} : vector<2x8x32xbf16> to vector<2x8x8xbf16>
      %76 = vector.extract_strided_slice %73 {offsets = [0, 0, 0], sizes = [2, 8, 8], strides = [1, 1, 1]} : vector<2x8x32xbf16> to vector<2x8x8xbf16>
      "tpu.trace_start"() <{level = 10 : i32, message = "bqd,bkd->bqk"}> : () -> ()
      %cst_49 = arith.constant dense<0.000000e+00> : vector<2x8x8xf32>
      %77 = tpu.matmul %75, %76, %cst_49 {dimension_numbers = #tpu.dot_dimension_numbers<[2], [2], [1], [1], [0, 0, 0, 1, 1, 1], [0], [0]>} : vector<2x8x8xbf16>, vector<2x8x8xbf16>, vector<2x8x8xf32> -> vector<2x8x8xf32>
      "tpu.trace_stop"() : () -> ()
      %cst_50 = arith.constant dense<0xFF800000> : vector<2x8xf32>
      %78 = vector.multi_reduction <maximumf>, %77, %cst_50 [2] : vector<2x8x8xf32> to vector<2x8xf32>
      %79 = vector.shape_cast %78 : vector<2x8xf32> to vector<2x8x1xf32>
      %80 = vector.broadcast %79 : vector<2x8x1xf32> to vector<2x8x8xf32>
      %81 = arith.subf %77, %80 : vector<2x8x8xf32>
      %82 = math.exp %81 : vector<2x8x8xf32>
      %cst_51 = arith.constant dense<0.000000e+00> : vector<2x8xf32>
      %83 = vector.multi_reduction <add>, %82, %cst_51 [2] : vector<2x8x8xf32> to vector<2x8xf32>
      %84 = vector.shape_cast %83 : vector<2x8xf32> to vector<2x8x1xf32>
      %85 = tpu.reciprocal %84 {approx = true} : vector<2x8x1xf32> -> vector<2x8x1xf32>
      %86 = vector.broadcast %85 : vector<2x8x1xf32> to vector<2x8x8xf32>
      %87 = arith.mulf %82, %86 : vector<2x8x8xf32>
      %88 = arith.truncf %87 : vector<2x8x8xf32> to vector<2x8x8xbf16>
      %89 = vector.extract_strided_slice %74 {offsets = [0, 0, 0], sizes = [2, 8, 8], strides = [1, 1, 1]} : vector<2x8x32xbf16> to vector<2x8x8xbf16>
      "tpu.trace_start"() <{level = 10 : i32, message = "bqk,bkd->bqd"}> : () -> ()
      %cst_52 = arith.constant dense<0.000000e+00> : vector<2x8x8xf32>
      %90 = tpu.matmul %88, %89, %cst_52 {dimension_numbers = #tpu.dot_dimension_numbers<[2], [1], [1], [2], [0, 0, 0, 1, 1, 2], [0], [0]>} : vector<2x8x8xbf16>, vector<2x8x8xbf16>, vector<2x8x8xf32> -> vector<2x8x8xf32>
      "tpu.trace_stop"() : () -> ()
      %91 = vector.extract_strided_slice %72 {offsets = [0, 0, 8], sizes = [2, 8, 8], strides = [1, 1, 1]} : vector<2x8x32xbf16> to vector<2x8x8xbf16>
      %92 = vector.extract_strided_slice %73 {offsets = [0, 0, 8], sizes = [2, 8, 8], strides = [1, 1, 1]} : vector<2x8x32xbf16> to vector<2x8x8xbf16>
      "tpu.trace_start"() <{level = 10 : i32, message = "bqd,bkd->bqk"}> : () -> ()
      %cst_53 = arith.constant dense<0.000000e+00> : vector<2x8x8xf32>
      %93 = tpu.matmul %91, %92, %cst_53 {dimension_numbers = #tpu.dot_dimension_numbers<[2], [2], [1], [1], [0, 0, 0, 1, 1, 1], [0], [0]>} : vector<2x8x8xbf16>, vector<2x8x8xbf16>, vector<2x8x8xf32> -> vector<2x8x8xf32>
      "tpu.trace_stop"() : () -> ()
      %cst_54 = arith.constant dense<0xFF800000> : vector<2x8xf32>
      %94 = vector.multi_reduction <maximumf>, %93, %cst_54 [2] : vector<2x8x8xf32> to vector<2x8xf32>
      %95 = vector.shape_cast %94 : vector<2x8xf32> to vector<2x8x1xf32>
      %96 = vector.broadcast %95 : vector<2x8x1xf32> to vector<2x8x8xf32>
      %97 = arith.subf %93, %96 : vector<2x8x8xf32>
      %98 = math.exp %97 : vector<2x8x8xf32>
      %cst_55 = arith.constant dense<0.000000e+00> : vector<2x8xf32>
      %99 = vector.multi_reduction <add>, %98, %cst_55 [2] : vector<2x8x8xf32> to vector<2x8xf32>
      %100 = vector.shape_cast %99 : vector<2x8xf32> to vector<2x8x1xf32>
      %101 = tpu.reciprocal %100 {approx = true} : vector<2x8x1xf32> -> vector<2x8x1xf32>
      %102 = vector.broadcast %101 : vector<2x8x1xf32> to vector<2x8x8xf32>
      %103 = arith.mulf %98, %102 : vector<2x8x8xf32>
      %104 = arith.truncf %103 : vector<2x8x8xf32> to vector<2x8x8xbf16>
      %105 = vector.extract_strided_slice %74 {offsets = [0, 0, 8], sizes = [2, 8, 8], strides = [1, 1, 1]} : vector<2x8x32xbf16> to vector<2x8x8xbf16>
      "tpu.trace_start"() <{level = 10 : i32, message = "bqk,bkd->bqd"}> : () -> ()
      %cst_56 = arith.constant dense<0.000000e+00> : vector<2x8x8xf32>
      %106 = tpu.matmul %104, %105, %cst_56 {dimension_numbers = #tpu.dot_dimension_numbers<[2], [1], [1], [2], [0, 0, 0, 1, 1, 2], [0], [0]>} : vector<2x8x8xbf16>, vector<2x8x8xbf16>, vector<2x8x8xf32> -> vector<2x8x8xf32>
      "tpu.trace_stop"() : () -> ()
      %107 = vector.extract_strided_slice %72 {offsets = [0, 0, 16], sizes = [2, 8, 8], strides = [1, 1, 1]} : vector<2x8x32xbf16> to vector<2x8x8xbf16>
      %108 = vector.extract_strided_slice %73 {offsets = [0, 0, 16], sizes = [2, 8, 8], strides = [1, 1, 1]} : vector<2x8x32xbf16> to vector<2x8x8xbf16>
      "tpu.trace_start"() <{level = 10 : i32, message = "bqd,bkd->bqk"}> : () -> ()
      %cst_57 = arith.constant dense<0.000000e+00> : vector<2x8x8xf32>
      %109 = tpu.matmul %107, %108, %cst_57 {dimension_numbers = #tpu.dot_dimension_numbers<[2], [2], [1], [1], [0, 0, 0, 1, 1, 1], [0], [0]>} : vector<2x8x8xbf16>, vector<2x8x8xbf16>, vector<2x8x8xf32> -> vector<2x8x8xf32>
      "tpu.trace_stop"() : () -> ()
      %cst_58 = arith.constant dense<0xFF800000> : vector<2x8xf32>
      %110 = vector.multi_reduction <maximumf>, %109, %cst_58 [2] : vector<2x8x8xf32> to vector<2x8xf32>
      %111 = vector.shape_cast %110 : vector<2x8xf32> to vector<2x8x1xf32>
      %112 = vector.broadcast %111 : vector<2x8x1xf32> to vector<2x8x8xf32>
      %113 = arith.subf %109, %112 : vector<2x8x8xf32>
      %114 = math.exp %113 : vector<2x8x8xf32>
      %cst_59 = arith.constant dense<0.000000e+00> : vector<2x8xf32>
      %115 = vector.multi_reduction <add>, %114, %cst_59 [2] : vector<2x8x8xf32> to vector<2x8xf32>
      %116 = vector.shape_cast %115 : vector<2x8xf32> to vector<2x8x1xf32>
      %117 = tpu.reciprocal %116 {approx = true} : vector<2x8x1xf32> -> vector<2x8x1xf32>
      %118 = vector.broadcast %117 : vector<2x8x1xf32> to vector<2x8x8xf32>
      %119 = arith.mulf %114, %118 : vector<2x8x8xf32>
      %120 = arith.truncf %119 : vector<2x8x8xf32> to vector<2x8x8xbf16>
      %121 = vector.extract_strided_slice %74 {offsets = [0, 0, 16], sizes = [2, 8, 8], strides = [1, 1, 1]} : vector<2x8x32xbf16> to vector<2x8x8xbf16>
      "tpu.trace_start"() <{level = 10 : i32, message = "bqk,bkd->bqd"}> : () -> ()
      %cst_60 = arith.constant dense<0.000000e+00> : vector<2x8x8xf32>
      %122 = tpu.matmul %120, %121, %cst_60 {dimension_numbers = #tpu.dot_dimension_numbers<[2], [1], [1], [2], [0, 0, 0, 1, 1, 2], [0], [0]>} : vector<2x8x8xbf16>, vector<2x8x8xbf16>, vector<2x8x8xf32> -> vector<2x8x8xf32>
      "tpu.trace_stop"() : () -> ()
      %123 = vector.extract_strided_slice %72 {offsets = [0, 0, 24], sizes = [2, 8, 8], strides = [1, 1, 1]} : vector<2x8x32xbf16> to vector<2x8x8xbf16>
      %124 = vector.extract_strided_slice %73 {offsets = [0, 0, 24], sizes = [2, 8, 8], strides = [1, 1, 1]} : vector<2x8x32xbf16> to vector<2x8x8xbf16>
      "tpu.trace_start"() <{level = 10 : i32, message = "bqd,bkd->bqk"}> : () -> ()
      %cst_61 = arith.constant dense<0.000000e+00> : vector<2x8x8xf32>
      %125 = tpu.matmul %123, %124, %cst_61 {dimension_numbers = #tpu.dot_dimension_numbers<[2], [2], [1], [1], [0, 0, 0, 1, 1, 1], [0], [0]>} : vector<2x8x8xbf16>, vector<2x8x8xbf16>, vector<2x8x8xf32> -> vector<2x8x8xf32>
      "tpu.trace_stop"() : () -> ()
      %cst_62 = arith.constant dense<0xFF800000> : vector<2x8xf32>
      %126 = vector.multi_reduction <maximumf>, %125, %cst_62 [2] : vector<2x8x8xf32> to vector<2x8xf32>
      %127 = vector.shape_cast %126 : vector<2x8xf32> to vector<2x8x1xf32>
      %128 = vector.broadcast %127 : vector<2x8x1xf32> to vector<2x8x8xf32>
      %129 = arith.subf %125, %128 : vector<2x8x8xf32>
      %130 = math.exp %129 : vector<2x8x8xf32>
      %cst_63 = arith.constant dense<0.000000e+00> : vector<2x8xf32>
      %131 = vector.multi_reduction <add>, %130, %cst_63 [2] : vector<2x8x8xf32> to vector<2x8xf32>
      %132 = vector.shape_cast %131 : vector<2x8xf32> to vector<2x8x1xf32>
      %133 = tpu.reciprocal %132 {approx = true} : vector<2x8x1xf32> -> vector<2x8x1xf32>
      %134 = vector.broadcast %133 : vector<2x8x1xf32> to vector<2x8x8xf32>
      %135 = arith.mulf %130, %134 : vector<2x8x8xf32>
      %136 = arith.truncf %135 : vector<2x8x8xf32> to vector<2x8x8xbf16>
      %137 = vector.extract_strided_slice %74 {offsets = [0, 0, 24], sizes = [2, 8, 8], strides = [1, 1, 1]} : vector<2x8x32xbf16> to vector<2x8x8xbf16>
      "tpu.trace_start"() <{level = 10 : i32, message = "bqk,bkd->bqd"}> : () -> ()
      %cst_64 = arith.constant dense<0.000000e+00> : vector<2x8x8xf32>
      %138 = tpu.matmul %136, %137, %cst_64 {dimension_numbers = #tpu.dot_dimension_numbers<[2], [1], [1], [2], [0, 0, 0, 1, 1, 2], [0], [0]>} : vector<2x8x8xbf16>, vector<2x8x8xbf16>, vector<2x8x8xf32> -> vector<2x8x8xf32>
      "tpu.trace_stop"() : () -> ()
      %139 = tpu.concatenate %90, %106, %122, %138 in 2 : vector<2x8x8xf32>, vector<2x8x8xf32>, vector<2x8x8xf32>, vector<2x8x8xf32> -> vector<2x8x32xf32>
      %140 = vector.shape_cast %139 : vector<2x8x32xf32> to vector<16x32xf32>
      %141 = arith.truncf %140 : vector<16x32xf32> to vector<16x32xbf16>
      %cst_65 = arith.constant dense<0.000000e+00> : vector<16x32xf32>
      %142 = tpu.matmul %141, %68, %cst_65 {dimension_numbers = #tpu.dot_dimension_numbers<[1], [0], [0], [1], [0, 0, 1, 1], [], []>} : vector<16x32xbf16>, vector<32x32xbf16>, vector<16x32xf32> -> vector<16x32xf32>
      %143 = vector.broadcast %71 : vector<1x32xf32> to vector<16x32xf32>
      %144 = arith.addf %142, %143 : vector<16x32xf32>
      %145 = arith.addf %arg54, %144 : vector<16x32xf32>
      %146 = arith.index_cast %arg53 : i32 to index
      %c0_66 = arith.constant 0 : index
      %c0_67 = arith.constant 0 : index
      %147 = vector.load %arg46[%146, %c0_66, %c0_67] : memref<2x1x32xf32, #tpu.memory_space<vmem>>, vector<1x1x32xf32>
      %148 = vector.shape_cast %147 : vector<1x1x32xf32> to vector<1x32xf32>
      %149 = arith.index_cast %arg53 : i32 to index
      %c0_68 = arith.constant 0 : index
      %c0_69 = arith.constant 0 : index
      %150 = vector.load %arg47[%149, %c0_68, %c0_69] : memref<2x1x32xf32, #tpu.memory_space<vmem>>, vector<1x1x32xf32>
      %151 = vector.shape_cast %150 : vector<1x1x32xf32> to vector<1x32xf32>
      %cst_70 = arith.constant dense<0.000000e+00> : vector<16xf32>
      %152 = vector.multi_reduction <add>, %145, %cst_70 [1] : vector<16x32xf32> to vector<16xf32>
      %153 = vector.shape_cast %152 : vector<16xf32> to vector<16x1xf32>
      %cst_71 = arith.constant 3.200000e+01 : f32
      %154 = vector.broadcast %cst_71 : f32 to vector<16x1xf32>
      %155 = arith.divf %153, %154 : vector<16x1xf32>
      %156 = vector.broadcast %155 : vector<16x1xf32> to vector<16x32xf32>
      %157 = arith.subf %145, %156 : vector<16x32xf32>
      %158 = arith.mulf %157, %157 : vector<16x32xf32>
      %cst_72 = arith.constant dense<0.000000e+00> : vector<16xf32>
      %159 = vector.multi_reduction <add>, %158, %cst_72 [1] : vector<16x32xf32> to vector<16xf32>
      %160 = vector.shape_cast %159 : vector<16xf32> to vector<16x1xf32>
      %cst_73 = arith.constant 3.200000e+01 : f32
      %161 = vector.broadcast %cst_73 : f32 to vector<16x1xf32>
      %162 = arith.divf %160, %161 : vector<16x1xf32>
      %cst_74 = arith.constant 9.99999974E-6 : f32
      %163 = vector.broadcast %cst_74 : f32 to vector<16x1xf32>
      %164 = arith.addf %162, %163 : vector<16x1xf32>
      %165 = math.rsqrt %164 : vector<16x1xf32>
      %166 = vector.broadcast %165 : vector<16x1xf32> to vector<16x32xf32>
      %167 = arith.mulf %157, %166 : vector<16x32xf32>
      %168 = vector.broadcast %148 : vector<1x32xf32> to vector<16x32xf32>
      %169 = arith.mulf %167, %168 : vector<16x32xf32>
      %170 = vector.broadcast %151 : vector<1x32xf32> to vector<16x32xf32>
      %171 = arith.addf %169, %170 : vector<16x32xf32>
      %172 = arith.truncf %171 : vector<16x32xf32> to vector<16x32xbf16>
      %173 = arith.index_cast %arg53 : i32 to index
      %c0_75 = arith.constant 0 : index
      %c0_76 = arith.constant 0 : index
      %174 = vector.load %arg34[%173, %c0_75, %c0_76] : memref<2x32x32xbf16, #tpu.memory_space<vmem>>, vector<1x32x32xbf16>
      %175 = vector.shape_cast %174 : vector<1x32x32xbf16> to vector<32x32xbf16>
      %cst_77 = arith.constant dense<0.000000e+00> : vector<16x32xf32>
      %176 = tpu.matmul %172, %175, %cst_77 {dimension_numbers = #tpu.dot_dimension_numbers<[1], [0], [0], [1], [0, 0, 1, 1], [], []>} : vector<16x32xbf16>, vector<32x32xbf16>, vector<16x32xf32> -> vector<16x32xf32>
      %177 = arith.index_cast %arg53 : i32 to index
      %c0_78 = arith.constant 0 : index
      %c0_79 = arith.constant 0 : index
      %178 = vector.load %arg35[%177, %c0_78, %c0_79] : memref<2x1x32xf32, #tpu.memory_space<vmem>>, vector<1x1x32xf32>
      %179 = vector.shape_cast %178 : vector<1x1x32xf32> to vector<1x32xf32>
      %180 = vector.broadcast %179 : vector<1x32xf32> to vector<16x32xf32>
      %181 = arith.addf %176, %180 : vector<16x32xf32>
      %182 = arith.index_cast %arg53 : i32 to index
      %c0_80 = arith.constant 0 : index
      %c0_81 = arith.constant 0 : index
      %183 = vector.load %arg36[%182, %c0_80, %c0_81] : memref<2x32x32xbf16, #tpu.memory_space<vmem>>, vector<1x32x32xbf16>
      %184 = vector.shape_cast %183 : vector<1x32x32xbf16> to vector<32x32xbf16>
      %cst_82 = arith.constant dense<0.000000e+00> : vector<32x32xf32>
      %185 = tpu.matmul %15, %184, %cst_82 {dimension_numbers = #tpu.dot_dimension_numbers<[1], [0], [0], [1], [0, 0, 1, 1], [], []>} : vector<32x32xbf16>, vector<32x32xbf16>, vector<32x32xf32> -> vector<32x32xf32>
      %186 = arith.index_cast %arg53 : i32 to index
      %c0_83 = arith.constant 0 : index
      %c0_84 = arith.constant 0 : index
      %187 = vector.load %arg37[%186, %c0_83, %c0_84] : memref<2x1x32xf32, #tpu.memory_space<vmem>>, vector<1x1x32xf32>
      %188 = vector.shape_cast %187 : vector<1x1x32xf32> to vector<1x32xf32>
      %189 = vector.broadcast %188 : vector<1x32xf32> to vector<32x32xf32>
      %190 = arith.addf %185, %189 : vector<32x32xf32>
      %191 = arith.index_cast %arg53 : i32 to index
      %c0_85 = arith.constant 0 : index
      %c0_86 = arith.constant 0 : index
      %192 = vector.load %arg38[%191, %c0_85, %c0_86] : memref<2x32x32xbf16, #tpu.memory_space<vmem>>, vector<1x32x32xbf16>
      %193 = vector.shape_cast %192 : vector<1x32x32xbf16> to vector<32x32xbf16>
      %cst_87 = arith.constant dense<0.000000e+00> : vector<32x32xf32>
      %194 = tpu.matmul %15, %193, %cst_87 {dimension_numbers = #tpu.dot_dimension_numbers<[1], [0], [0], [1], [0, 0, 1, 1], [], []>} : vector<32x32xbf16>, vector<32x32xbf16>, vector<32x32xf32> -> vector<32x32xf32>
      %195 = arith.index_cast %arg53 : i32 to index
      %c0_88 = arith.constant 0 : index
      %c0_89 = arith.constant 0 : index
      %196 = vector.load %arg39[%195, %c0_88, %c0_89] : memref<2x1x32xf32, #tpu.memory_space<vmem>>, vector<1x1x32xf32>
      %197 = vector.shape_cast %196 : vector<1x1x32xf32> to vector<1x32xf32>
      %198 = vector.broadcast %197 : vector<1x32xf32> to vector<32x32xf32>
      %199 = arith.addf %194, %198 : vector<32x32xf32>
      %cst_90 = arith.constant 0.353553385 : f32
      %200 = vector.broadcast %cst_90 : f32 to vector<16x32xf32>
      %201 = arith.mulf %181, %200 : vector<16x32xf32>
      %202 = vector.shape_cast %201 : vector<16x32xf32> to vector<2x8x32xf32>
      %203 = vector.shape_cast %190 : vector<32x32xf32> to vector<2x16x32xf32>
      %204 = vector.shape_cast %199 : vector<32x32xf32> to vector<2x16x32xf32>
      %205 = arith.index_cast %arg53 : i32 to index
      %c0_91 = arith.constant 0 : index
      %c0_92 = arith.constant 0 : index
      %206 = vector.load %arg40[%205, %c0_91, %c0_92] : memref<2x32x32xbf16, #tpu.memory_space<vmem>>, vector<1x32x32xbf16>
      %207 = vector.shape_cast %206 : vector<1x32x32xbf16> to vector<32x32xbf16>
      %208 = arith.index_cast %arg53 : i32 to index
      %c0_93 = arith.constant 0 : index
      %c0_94 = arith.constant 0 : index
      %209 = vector.load %arg41[%208, %c0_93, %c0_94] : memref<2x1x32xf32, #tpu.memory_space<vmem>>, vector<1x1x32xf32>
      %210 = vector.shape_cast %209 : vector<1x1x32xf32> to vector<1x32xf32>
      %211 = arith.truncf %202 : vector<2x8x32xf32> to vector<2x8x32xbf16>
      %212 = arith.truncf %203 : vector<2x16x32xf32> to vector<2x16x32xbf16>
      %213 = arith.truncf %204 : vector<2x16x32xf32> to vector<2x16x32xbf16>
      %214 = vector.extract_strided_slice %211 {offsets = [0, 0, 0], sizes = [2, 8, 8], strides = [1, 1, 1]} : vector<2x8x32xbf16> to vector<2x8x8xbf16>
      %215 = vector.extract_strided_slice %212 {offsets = [0, 0, 0], sizes = [2, 16, 8], strides = [1, 1, 1]} : vector<2x16x32xbf16> to vector<2x16x8xbf16>
      "tpu.trace_start"() <{level = 10 : i32, message = "bqd,bkd->bqk"}> : () -> ()
      %cst_95 = arith.constant dense<0.000000e+00> : vector<2x8x16xf32>
      %216 = tpu.matmul %214, %215, %cst_95 {dimension_numbers = #tpu.dot_dimension_numbers<[2], [2], [1], [1], [0, 0, 0, 1, 1, 1], [0], [0]>} : vector<2x8x8xbf16>, vector<2x16x8xbf16>, vector<2x8x16xf32> -> vector<2x8x16xf32>
      "tpu.trace_stop"() : () -> ()
      %cst_96 = arith.constant dense<0xFF800000> : vector<2x8xf32>
      %217 = vector.multi_reduction <maximumf>, %216, %cst_96 [2] : vector<2x8x16xf32> to vector<2x8xf32>
      %218 = vector.shape_cast %217 : vector<2x8xf32> to vector<2x8x1xf32>
      %219 = vector.broadcast %218 : vector<2x8x1xf32> to vector<2x8x16xf32>
      %220 = arith.subf %216, %219 : vector<2x8x16xf32>
      %221 = math.exp %220 : vector<2x8x16xf32>
      %cst_97 = arith.constant dense<0.000000e+00> : vector<2x8xf32>
      %222 = vector.multi_reduction <add>, %221, %cst_97 [2] : vector<2x8x16xf32> to vector<2x8xf32>
      %223 = vector.shape_cast %222 : vector<2x8xf32> to vector<2x8x1xf32>
      %224 = tpu.reciprocal %223 {approx = true} : vector<2x8x1xf32> -> vector<2x8x1xf32>
      %225 = vector.broadcast %224 : vector<2x8x1xf32> to vector<2x8x16xf32>
      %226 = arith.mulf %221, %225 : vector<2x8x16xf32>
      %227 = arith.truncf %226 : vector<2x8x16xf32> to vector<2x8x16xbf16>
      %228 = vector.extract_strided_slice %213 {offsets = [0, 0, 0], sizes = [2, 16, 8], strides = [1, 1, 1]} : vector<2x16x32xbf16> to vector<2x16x8xbf16>
      "tpu.trace_start"() <{level = 10 : i32, message = "bqk,bkd->bqd"}> : () -> ()
      %cst_98 = arith.constant dense<0.000000e+00> : vector<2x8x8xf32>
      %229 = tpu.matmul %227, %228, %cst_98 {dimension_numbers = #tpu.dot_dimension_numbers<[2], [1], [1], [2], [0, 0, 0, 1, 1, 2], [0], [0]>} : vector<2x8x16xbf16>, vector<2x16x8xbf16>, vector<2x8x8xf32> -> vector<2x8x8xf32>
      "tpu.trace_stop"() : () -> ()
      %230 = vector.extract_strided_slice %211 {offsets = [0, 0, 8], sizes = [2, 8, 8], strides = [1, 1, 1]} : vector<2x8x32xbf16> to vector<2x8x8xbf16>
      %231 = vector.extract_strided_slice %212 {offsets = [0, 0, 8], sizes = [2, 16, 8], strides = [1, 1, 1]} : vector<2x16x32xbf16> to vector<2x16x8xbf16>
      "tpu.trace_start"() <{level = 10 : i32, message = "bqd,bkd->bqk"}> : () -> ()
      %cst_99 = arith.constant dense<0.000000e+00> : vector<2x8x16xf32>
      %232 = tpu.matmul %230, %231, %cst_99 {dimension_numbers = #tpu.dot_dimension_numbers<[2], [2], [1], [1], [0, 0, 0, 1, 1, 1], [0], [0]>} : vector<2x8x8xbf16>, vector<2x16x8xbf16>, vector<2x8x16xf32> -> vector<2x8x16xf32>
      "tpu.trace_stop"() : () -> ()
      %cst_100 = arith.constant dense<0xFF800000> : vector<2x8xf32>
      %233 = vector.multi_reduction <maximumf>, %232, %cst_100 [2] : vector<2x8x16xf32> to vector<2x8xf32>
      %234 = vector.shape_cast %233 : vector<2x8xf32> to vector<2x8x1xf32>
      %235 = vector.broadcast %234 : vector<2x8x1xf32> to vector<2x8x16xf32>
      %236 = arith.subf %232, %235 : vector<2x8x16xf32>
      %237 = math.exp %236 : vector<2x8x16xf32>
      %cst_101 = arith.constant dense<0.000000e+00> : vector<2x8xf32>
      %238 = vector.multi_reduction <add>, %237, %cst_101 [2] : vector<2x8x16xf32> to vector<2x8xf32>
      %239 = vector.shape_cast %238 : vector<2x8xf32> to vector<2x8x1xf32>
      %240 = tpu.reciprocal %239 {approx = true} : vector<2x8x1xf32> -> vector<2x8x1xf32>
      %241 = vector.broadcast %240 : vector<2x8x1xf32> to vector<2x8x16xf32>
      %242 = arith.mulf %237, %241 : vector<2x8x16xf32>
      %243 = arith.truncf %242 : vector<2x8x16xf32> to vector<2x8x16xbf16>
      %244 = vector.extract_strided_slice %213 {offsets = [0, 0, 8], sizes = [2, 16, 8], strides = [1, 1, 1]} : vector<2x16x32xbf16> to vector<2x16x8xbf16>
      "tpu.trace_start"() <{level = 10 : i32, message = "bqk,bkd->bqd"}> : () -> ()
      %cst_102 = arith.constant dense<0.000000e+00> : vector<2x8x8xf32>
      %245 = tpu.matmul %243, %244, %cst_102 {dimension_numbers = #tpu.dot_dimension_numbers<[2], [1], [1], [2], [0, 0, 0, 1, 1, 2], [0], [0]>} : vector<2x8x16xbf16>, vector<2x16x8xbf16>, vector<2x8x8xf32> -> vector<2x8x8xf32>
      "tpu.trace_stop"() : () -> ()
      %246 = vector.extract_strided_slice %211 {offsets = [0, 0, 16], sizes = [2, 8, 8], strides = [1, 1, 1]} : vector<2x8x32xbf16> to vector<2x8x8xbf16>
      %247 = vector.extract_strided_slice %212 {offsets = [0, 0, 16], sizes = [2, 16, 8], strides = [1, 1, 1]} : vector<2x16x32xbf16> to vector<2x16x8xbf16>
      "tpu.trace_start"() <{level = 10 : i32, message = "bqd,bkd->bqk"}> : () -> ()
      %cst_103 = arith.constant dense<0.000000e+00> : vector<2x8x16xf32>
      %248 = tpu.matmul %246, %247, %cst_103 {dimension_numbers = #tpu.dot_dimension_numbers<[2], [2], [1], [1], [0, 0, 0, 1, 1, 1], [0], [0]>} : vector<2x8x8xbf16>, vector<2x16x8xbf16>, vector<2x8x16xf32> -> vector<2x8x16xf32>
      "tpu.trace_stop"() : () -> ()
      %cst_104 = arith.constant dense<0xFF800000> : vector<2x8xf32>
      %249 = vector.multi_reduction <maximumf>, %248, %cst_104 [2] : vector<2x8x16xf32> to vector<2x8xf32>
      %250 = vector.shape_cast %249 : vector<2x8xf32> to vector<2x8x1xf32>
      %251 = vector.broadcast %250 : vector<2x8x1xf32> to vector<2x8x16xf32>
      %252 = arith.subf %248, %251 : vector<2x8x16xf32>
      %253 = math.exp %252 : vector<2x8x16xf32>
      %cst_105 = arith.constant dense<0.000000e+00> : vector<2x8xf32>
      %254 = vector.multi_reduction <add>, %253, %cst_105 [2] : vector<2x8x16xf32> to vector<2x8xf32>
      %255 = vector.shape_cast %254 : vector<2x8xf32> to vector<2x8x1xf32>
      %256 = tpu.reciprocal %255 {approx = true} : vector<2x8x1xf32> -> vector<2x8x1xf32>
      %257 = vector.broadcast %256 : vector<2x8x1xf32> to vector<2x8x16xf32>
      %258 = arith.mulf %253, %257 : vector<2x8x16xf32>
      %259 = arith.truncf %258 : vector<2x8x16xf32> to vector<2x8x16xbf16>
      %260 = vector.extract_strided_slice %213 {offsets = [0, 0, 16], sizes = [2, 16, 8], strides = [1, 1, 1]} : vector<2x16x32xbf16> to vector<2x16x8xbf16>
      "tpu.trace_start"() <{level = 10 : i32, message = "bqk,bkd->bqd"}> : () -> ()
      %cst_106 = arith.constant dense<0.000000e+00> : vector<2x8x8xf32>
      %261 = tpu.matmul %259, %260, %cst_106 {dimension_numbers = #tpu.dot_dimension_numbers<[2], [1], [1], [2], [0, 0, 0, 1, 1, 2], [0], [0]>} : vector<2x8x16xbf16>, vector<2x16x8xbf16>, vector<2x8x8xf32> -> vector<2x8x8xf32>
      "tpu.trace_stop"() : () -> ()
      %262 = vector.extract_strided_slice %211 {offsets = [0, 0, 24], sizes = [2, 8, 8], strides = [1, 1, 1]} : vector<2x8x32xbf16> to vector<2x8x8xbf16>
      %263 = vector.extract_strided_slice %212 {offsets = [0, 0, 24], sizes = [2, 16, 8], strides = [1, 1, 1]} : vector<2x16x32xbf16> to vector<2x16x8xbf16>
      "tpu.trace_start"() <{level = 10 : i32, message = "bqd,bkd->bqk"}> : () -> ()
      %cst_107 = arith.constant dense<0.000000e+00> : vector<2x8x16xf32>
      %264 = tpu.matmul %262, %263, %cst_107 {dimension_numbers = #tpu.dot_dimension_numbers<[2], [2], [1], [1], [0, 0, 0, 1, 1, 1], [0], [0]>} : vector<2x8x8xbf16>, vector<2x16x8xbf16>, vector<2x8x16xf32> -> vector<2x8x16xf32>
      "tpu.trace_stop"() : () -> ()
      %cst_108 = arith.constant dense<0xFF800000> : vector<2x8xf32>
      %265 = vector.multi_reduction <maximumf>, %264, %cst_108 [2] : vector<2x8x16xf32> to vector<2x8xf32>
      %266 = vector.shape_cast %265 : vector<2x8xf32> to vector<2x8x1xf32>
      %267 = vector.broadcast %266 : vector<2x8x1xf32> to vector<2x8x16xf32>
      %268 = arith.subf %264, %267 : vector<2x8x16xf32>
      %269 = math.exp %268 : vector<2x8x16xf32>
      %cst_109 = arith.constant dense<0.000000e+00> : vector<2x8xf32>
      %270 = vector.multi_reduction <add>, %269, %cst_109 [2] : vector<2x8x16xf32> to vector<2x8xf32>
      %271 = vector.shape_cast %270 : vector<2x8xf32> to vector<2x8x1xf32>
      %272 = tpu.reciprocal %271 {approx = true} : vector<2x8x1xf32> -> vector<2x8x1xf32>
      %273 = vector.broadcast %272 : vector<2x8x1xf32> to vector<2x8x16xf32>
      %274 = arith.mulf %269, %273 : vector<2x8x16xf32>
      %275 = arith.truncf %274 : vector<2x8x16xf32> to vector<2x8x16xbf16>
      %276 = vector.extract_strided_slice %213 {offsets = [0, 0, 24], sizes = [2, 16, 8], strides = [1, 1, 1]} : vector<2x16x32xbf16> to vector<2x16x8xbf16>
      "tpu.trace_start"() <{level = 10 : i32, message = "bqk,bkd->bqd"}> : () -> ()
      %cst_110 = arith.constant dense<0.000000e+00> : vector<2x8x8xf32>
      %277 = tpu.matmul %275, %276, %cst_110 {dimension_numbers = #tpu.dot_dimension_numbers<[2], [1], [1], [2], [0, 0, 0, 1, 1, 2], [0], [0]>} : vector<2x8x16xbf16>, vector<2x16x8xbf16>, vector<2x8x8xf32> -> vector<2x8x8xf32>
      "tpu.trace_stop"() : () -> ()
      %278 = tpu.concatenate %229, %245, %261, %277 in 2 : vector<2x8x8xf32>, vector<2x8x8xf32>, vector<2x8x8xf32>, vector<2x8x8xf32> -> vector<2x8x32xf32>
      %279 = vector.shape_cast %278 : vector<2x8x32xf32> to vector<16x32xf32>
      %280 = arith.truncf %279 : vector<16x32xf32> to vector<16x32xbf16>
      %cst_111 = arith.constant dense<0.000000e+00> : vector<16x32xf32>
      %281 = tpu.matmul %280, %207, %cst_111 {dimension_numbers = #tpu.dot_dimension_numbers<[1], [0], [0], [1], [0, 0, 1, 1], [], []>} : vector<16x32xbf16>, vector<32x32xbf16>, vector<16x32xf32> -> vector<16x32xf32>
      %282 = vector.broadcast %210 : vector<1x32xf32> to vector<16x32xf32>
      %283 = arith.addf %281, %282 : vector<16x32xf32>
      %284 = arith.addf %171, %283 : vector<16x32xf32>
      %285 = arith.index_cast %arg53 : i32 to index
      %c0_112 = arith.constant 0 : index
      %c0_113 = arith.constant 0 : index
      %286 = vector.load %arg48[%285, %c0_112, %c0_113] : memref<2x1x32xf32, #tpu.memory_space<vmem>>, vector<1x1x32xf32>
      %287 = vector.shape_cast %286 : vector<1x1x32xf32> to vector<1x32xf32>
      %288 = arith.index_cast %arg53 : i32 to index
      %c0_114 = arith.constant 0 : index
      %c0_115 = arith.constant 0 : index
      %289 = vector.load %arg49[%288, %c0_114, %c0_115] : memref<2x1x32xf32, #tpu.memory_space<vmem>>, vector<1x1x32xf32>
      %290 = vector.shape_cast %289 : vector<1x1x32xf32> to vector<1x32xf32>
      %cst_116 = arith.constant dense<0.000000e+00> : vector<16xf32>
      %291 = vector.multi_reduction <add>, %284, %cst_116 [1] : vector<16x32xf32> to vector<16xf32>
      %292 = vector.shape_cast %291 : vector<16xf32> to vector<16x1xf32>
      %cst_117 = arith.constant 3.200000e+01 : f32
      %293 = vector.broadcast %cst_117 : f32 to vector<16x1xf32>
      %294 = arith.divf %292, %293 : vector<16x1xf32>
      %295 = vector.broadcast %294 : vector<16x1xf32> to vector<16x32xf32>
      %296 = arith.subf %284, %295 : vector<16x32xf32>
      %297 = arith.mulf %296, %296 : vector<16x32xf32>
      %cst_118 = arith.constant dense<0.000000e+00> : vector<16xf32>
      %298 = vector.multi_reduction <add>, %297, %cst_118 [1] : vector<16x32xf32> to vector<16xf32>
      %299 = vector.shape_cast %298 : vector<16xf32> to vector<16x1xf32>
      %cst_119 = arith.constant 3.200000e+01 : f32
      %300 = vector.broadcast %cst_119 : f32 to vector<16x1xf32>
      %301 = arith.divf %299, %300 : vector<16x1xf32>
      %cst_120 = arith.constant 9.99999974E-6 : f32
      %302 = vector.broadcast %cst_120 : f32 to vector<16x1xf32>
      %303 = arith.addf %301, %302 : vector<16x1xf32>
      %304 = math.rsqrt %303 : vector<16x1xf32>
      %305 = vector.broadcast %304 : vector<16x1xf32> to vector<16x32xf32>
      %306 = arith.mulf %296, %305 : vector<16x32xf32>
      %307 = vector.broadcast %287 : vector<1x32xf32> to vector<16x32xf32>
      %308 = arith.mulf %306, %307 : vector<16x32xf32>
      %309 = vector.broadcast %290 : vector<1x32xf32> to vector<16x32xf32>
      %310 = arith.addf %308, %309 : vector<16x32xf32>
      %311 = arith.truncf %310 : vector<16x32xf32> to vector<16x32xbf16>
      %312 = arith.index_cast %arg53 : i32 to index
      %c0_121 = arith.constant 0 : index
      %c0_122 = arith.constant 0 : index
      %313 = vector.load %arg42[%312, %c0_121, %c0_122] : memref<2x32x64xbf16, #tpu.memory_space<vmem>>, vector<1x32x64xbf16>
      %314 = vector.shape_cast %313 : vector<1x32x64xbf16> to vector<32x64xbf16>
      %cst_123 = arith.constant dense<0.000000e+00> : vector<16x64xf32>
      %315 = tpu.matmul %311, %314, %cst_123 {dimension_numbers = #tpu.dot_dimension_numbers<[1], [0], [0], [1], [0, 0, 1, 1], [], []>} : vector<16x32xbf16>, vector<32x64xbf16>, vector<16x64xf32> -> vector<16x64xf32>
      %316 = arith.index_cast %arg53 : i32 to index
      %c0_124 = arith.constant 0 : index
      %c0_125 = arith.constant 0 : index
      %317 = vector.load %arg43[%316, %c0_124, %c0_125] : memref<2x1x64xf32, #tpu.memory_space<vmem>>, vector<1x1x64xf32>
      %318 = vector.shape_cast %317 : vector<1x1x64xf32> to vector<1x64xf32>
      %319 = vector.broadcast %318 : vector<1x64xf32> to vector<16x64xf32>
      %320 = arith.addf %315, %319 : vector<16x64xf32>
      %cst_126 = arith.constant 0.000000e+00 : f32
      %321 = vector.broadcast %cst_126 : f32 to vector<16x64xf32>
      %322 = arith.maximumf %320, %321 : vector<16x64xf32>
      %323 = arith.truncf %322 : vector<16x64xf32> to vector<16x64xbf16>
      %324 = arith.index_cast %arg53 : i32 to index
      %c0_127 = arith.constant 0 : index
      %c0_128 = arith.constant 0 : index
      %325 = vector.load %arg44[%324, %c0_127, %c0_128] : memref<2x64x32xbf16, #tpu.memory_space<vmem>>, vector<1x64x32xbf16>
      %326 = vector.shape_cast %325 : vector<1x64x32xbf16> to vector<64x32xbf16>
      %cst_129 = arith.constant dense<0.000000e+00> : vector<16x32xf32>
      %327 = tpu.matmul %323, %326, %cst_129 {dimension_numbers = #tpu.dot_dimension_numbers<[1], [0], [0], [1], [0, 0, 1, 1], [], []>} : vector<16x64xbf16>, vector<64x32xbf16>, vector<16x32xf32> -> vector<16x32xf32>
      %328 = arith.index_cast %arg53 : i32 to index
      %c0_130 = arith.constant 0 : index
      %c0_131 = arith.constant 0 : index
      %329 = vector.load %arg45[%328, %c0_130, %c0_131] : memref<2x1x32xf32, #tpu.memory_space<vmem>>, vector<1x1x32xf32>
      %330 = vector.shape_cast %329 : vector<1x1x32xf32> to vector<1x32xf32>
      %331 = vector.broadcast %330 : vector<1x32xf32> to vector<16x32xf32>
      %332 = arith.addf %327, %331 : vector<16x32xf32>
      %333 = arith.addf %310, %332 : vector<16x32xf32>
      %334 = arith.index_cast %arg53 : i32 to index
      %c0_132 = arith.constant 0 : index
      %c0_133 = arith.constant 0 : index
      %335 = vector.load %arg50[%334, %c0_132, %c0_133] : memref<2x1x32xf32, #tpu.memory_space<vmem>>, vector<1x1x32xf32>
      %336 = vector.shape_cast %335 : vector<1x1x32xf32> to vector<1x32xf32>
      %337 = arith.index_cast %arg53 : i32 to index
      %c0_134 = arith.constant 0 : index
      %c0_135 = arith.constant 0 : index
      %338 = vector.load %arg51[%337, %c0_134, %c0_135] : memref<2x1x32xf32, #tpu.memory_space<vmem>>, vector<1x1x32xf32>
      %339 = vector.shape_cast %338 : vector<1x1x32xf32> to vector<1x32xf32>
      %cst_136 = arith.constant dense<0.000000e+00> : vector<16xf32>
      %340 = vector.multi_reduction <add>, %333, %cst_136 [1] : vector<16x32xf32> to vector<16xf32>
      %341 = vector.shape_cast %340 : vector<16xf32> to vector<16x1xf32>
      %cst_137 = arith.constant 3.200000e+01 : f32
      %342 = vector.broadcast %cst_137 : f32 to vector<16x1xf32>
      %343 = arith.divf %341, %342 : vector<16x1xf32>
      %344 = vector.broadcast %343 : vector<16x1xf32> to vector<16x32xf32>
      %345 = arith.subf %333, %344 : vector<16x32xf32>
      %346 = arith.mulf %345, %345 : vector<16x32xf32>
      %cst_138 = arith.constant dense<0.000000e+00> : vector<16xf32>
      %347 = vector.multi_reduction <add>, %346, %cst_138 [1] : vector<16x32xf32> to vector<16xf32>
      %348 = vector.shape_cast %347 : vector<16xf32> to vector<16x1xf32>
      %cst_139 = arith.constant 3.200000e+01 : f32
      %349 = vector.broadcast %cst_139 : f32 to vector<16x1xf32>
      %350 = arith.divf %348, %349 : vector<16x1xf32>
      %cst_140 = arith.constant 9.99999974E-6 : f32
      %351 = vector.broadcast %cst_140 : f32 to vector<16x1xf32>
      %352 = arith.addf %350, %351 : vector<16x1xf32>
      %353 = math.rsqrt %352 : vector<16x1xf32>
      %354 = vector.broadcast %353 : vector<16x1xf32> to vector<16x32xf32>
      %355 = arith.mulf %345, %354 : vector<16x32xf32>
      %356 = vector.broadcast %336 : vector<1x32xf32> to vector<16x32xf32>
      %357 = arith.mulf %355, %356 : vector<16x32xf32>
      %358 = vector.broadcast %339 : vector<1x32xf32> to vector<16x32xf32>
      %359 = arith.addf %357, %358 : vector<16x32xf32>
      scf.yield %359 : vector<16x32xf32>
    }
    %c2_i32_20 = arith.constant 2 : i32
    %25 = arith.truncf %24 : vector<16x32xf32> to vector<16x32xbf16>
    %c0_21 = arith.constant 0 : index
    %c0_22 = arith.constant 0 : index
    %26 = vector.load %arg8[%c0_21, %c0_22] : memref<32x128xbf16, #tpu.memory_space<vmem>>, vector<32x128xbf16>
    %cst_23 = arith.constant dense<0.000000e+00> : vector<16x128xf32>
    %27 = tpu.matmul %25, %26, %cst_23 {dimension_numbers = #tpu.dot_dimension_numbers<[1], [0], [0], [1], [0, 0, 1, 1], [], []>} : vector<16x32xbf16>, vector<32x128xbf16>, vector<16x128xf32> -> vector<16x128xf32>
    %c0_24 = arith.constant 0 : index
    %c0_25 = arith.constant 0 : index
    %28 = vector.load %arg9[%c0_24, %c0_25] : memref<1x128xf32, #tpu.memory_space<vmem>>, vector<1x128xf32>
    %29 = vector.broadcast %28 : vector<1x128xf32> to vector<16x128xf32>
    %30 = arith.addf %27, %29 : vector<16x128xf32>
    %31 = vector.shape_cast %30 : vector<16x128xf32> to vector<2x8x128xf32>
    %c0_26 = arith.constant 0 : index
    %c0_27 = arith.constant 0 : index
    %c0_28 = arith.constant 0 : index
    %32 = vector.load %arg52[%c0_26, %c0_27, %c0_28] : memref<2x8x128xf32, #tpu.memory_space<vmem>>, vector<2x8x128xf32>
    tpu.vector_store %arg52[%c0_26, %c0_27, %c0_28], %31 {strides = array<i32>} : memref<2x8x128xf32, #tpu.memory_space<vmem>>, vector<2x8x128xf32>,
    return
  }
  func.func @transform_0(%arg0: i32) -> (i32, i32, i32) {
    %c0_i32 = arith.constant 0 : i32
    %c0_i32_0 = arith.constant 0 : i32
    %c0_i32_1 = arith.constant 0 : i32
    return %arg0, %c0_i32, %c0_i32_0 : i32, i32, i32
  }
  func.func @transform_1(%arg0: i32) -> (i32, i32, i32) {
    %c0_i32 = arith.constant 0 : i32
    %c0_i32_0 = arith.constant 0 : i32
    %c0_i32_1 = arith.constant 0 : i32
    return %arg0, %c0_i32, %c0_i32_0 : i32, i32, i32
  }
  func.func @transform_2(%arg0: i32) -> (i32, i32) {
    %c0_i32 = arith.constant 0 : i32
    %c0_i32_0 = arith.constant 0 : i32
    %c0_i32_1 = arith.constant 0 : i32
    return %c0_i32, %c0_i32_0 : i32, i32
  }
  func.func @transform_3(%arg0: i32) -> (i32, i32) {
    %c0_i32 = arith.constant 0 : i32
    %c0_i32_0 = arith.constant 0 : i32
    %c0_i32_1 = arith.constant 0 : i32
    return %c0_i32, %c0_i32_0 : i32, i32
  }
  func.func @transform_4(%arg0: i32) -> (i32, i32) {
    %c0_i32 = arith.constant 0 : i32
    %c0_i32_0 = arith.constant 0 : i32
    %c0_i32_1 = arith.constant 0 : i32
    return %c0_i32, %c0_i32_0 : i32, i32
  }
  func.func @transform_5(%arg0: i32) -> (i32, i32) {
    %c0_i32 = arith.constant 0 : i32
    %c0_i32_0 = arith.constant 0 : i32
    %c0_i32_1 = arith.constant 0 : i32
    return %c0_i32, %c0_i32_0 : i32, i32
  }
  func.func @transform_6(%arg0: i32) -> (i32, i32) {
    %c0_i32 = arith.constant 0 : i32
    %c0_i32_0 = arith.constant 0 : i32
    %c0_i32_1 = arith.constant 0 : i32
    return %c0_i32, %c0_i32_0 : i32, i32
  }
  func.func @transform_7(%arg0: i32) -> (i32, i32) {
    %c0_i32 = arith.constant 0 : i32
    %c0_i32_0 = arith.constant 0 : i32
    %c0_i32_1 = arith.constant 0 : i32
    return %c0_i32, %c0_i32_0 : i32, i32
  }
  func.func @transform_8(%arg0: i32) -> (i32, i32) {
    %c0_i32 = arith.constant 0 : i32
    %c0_i32_0 = arith.constant 0 : i32
    %c0_i32_1 = arith.constant 0 : i32
    return %c0_i32, %c0_i32_0 : i32, i32
  }
  func.func @transform_9(%arg0: i32) -> (i32, i32, i32) {
    %c0_i32 = arith.constant 0 : i32
    %c0_i32_0 = arith.constant 0 : i32
    %c0_i32_1 = arith.constant 0 : i32
    %c0_i32_2 = arith.constant 0 : i32
    return %c0_i32, %c0_i32_0, %c0_i32_1 : i32, i32, i32
  }
  func.func @transform_10(%arg0: i32) -> (i32, i32, i32) {
    %c0_i32 = arith.constant 0 : i32
    %c0_i32_0 = arith.constant 0 : i32
    %c0_i32_1 = arith.constant 0 : i32
    %c0_i32_2 = arith.constant 0 : i32
    return %c0_i32, %c0_i32_0, %c0_i32_1 : i32, i32, i32
  }
  func.func @transform_11(%arg0: i32) -> (i32, i32, i32) {
    %c0_i32 = arith.constant 0 : i32
    %c0_i32_0 = arith.constant 0 : i32
    %c0_i32_1 = arith.constant 0 : i32
    %c0_i32_2 = arith.constant 0 : i32
    return %c0_i32, %c0_i32_0, %c0_i32_1 : i32, i32, i32
  }
  func.func @transform_12(%arg0: i32) -> (i32, i32, i32) {
    %c0_i32 = arith.constant 0 : i32
    %c0_i32_0 = arith.constant 0 : i32
    %c0_i32_1 = arith.constant 0 : i32
    %c0_i32_2 = arith.constant 0 : i32
    return %c0_i32, %c0_i32_0, %c0_i32_1 : i32, i32, i32
  }
  func.func @transform_13(%arg0: i32) -> (i32, i32, i32) {
    %c0_i32 = arith.constant 0 : i32
    %c0_i32_0 = arith.constant 0 : i32
    %c0_i32_1 = arith.constant 0 : i32
    %c0_i32_2 = arith.constant 0 : i32
    return %c0_i32, %c0_i32_0, %c0_i32_1 : i32, i32, i32
  }
  func.func @transform_14(%arg0: i32) -> (i32, i32, i32) {
    %c0_i32 = arith.constant 0 : i32
    %c0_i32_0 = arith.constant 0 : i32
    %c0_i32_1 = arith.constant 0 : i32
    %c0_i32_2 = arith.constant 0 : i32
    return %c0_i32, %c0_i32_0, %c0_i32_1 : i32, i32, i32
  }
  func.func @transform_15(%arg0: i32) -> (i32, i32, i32) {
    %c0_i32 = arith.constant 0 : i32
    %c0_i32_0 = arith.constant 0 : i32
    %c0_i32_1 = arith.constant 0 : i32
    %c0_i32_2 = arith.constant 0 : i32
    return %c0_i32, %c0_i32_0, %c0_i32_1 : i32, i32, i32
  }
  func.func @transform_16(%arg0: i32) -> (i32, i32, i32) {
    %c0_i32 = arith.constant 0 : i32
    %c0_i32_0 = arith.constant 0 : i32
    %c0_i32_1 = arith.constant 0 : i32
    %c0_i32_2 = arith.constant 0 : i32
    return %c0_i32, %c0_i32_0, %c0_i32_1 : i32, i32, i32
  }
  func.func @transform_17(%arg0: i32) -> (i32, i32, i32) {
    %c0_i32 = arith.constant 0 : i32
    %c0_i32_0 = arith.constant 0 : i32
    %c0_i32_1 = arith.constant 0 : i32
    %c0_i32_2 = arith.constant 0 : i32
    return %c0_i32, %c0_i32_0, %c0_i32_1 : i32, i32, i32
  }
  func.func @transform_18(%arg0: i32) -> (i32, i32, i32) {
    %c0_i32 = arith.constant 0 : i32
    %c0_i32_0 = arith.constant 0 : i32
    %c0_i32_1 = arith.constant 0 : i32
    %c0_i32_2 = arith.constant 0 : i32
    return %c0_i32, %c0_i32_0, %c0_i32_1 : i32, i32, i32
  }
  func.func @transform_19(%arg0: i32) -> (i32, i32, i32) {
    %c0_i32 = arith.constant 0 : i32
    %c0_i32_0 = arith.constant 0 : i32
    %c0_i32_1 = arith.constant 0 : i32
    %c0_i32_2 = arith.constant 0 : i32
    return %c0_i32, %c0_i32_0, %c0_i32_1 : i32, i32, i32
  }
  func.func @transform_20(%arg0: i32) -> (i32, i32, i32) {
    %c0_i32 = arith.constant 0 : i32
    %c0_i32_0 = arith.constant 0 : i32
    %c0_i32_1 = arith.constant 0 : i32
    %c0_i32_2 = arith.constant 0 : i32
    return %c0_i32, %c0_i32_0, %c0_i32_1 : i32, i32, i32
  }
  func.func @transform_21(%arg0: i32) -> (i32, i32, i32) {
    %c0_i32 = arith.constant 0 : i32
    %c0_i32_0 = arith.constant 0 : i32
    %c0_i32_1 = arith.constant 0 : i32
    %c0_i32_2 = arith.constant 0 : i32
    return %c0_i32, %c0_i32_0, %c0_i32_1 : i32, i32, i32
  }
  func.func @transform_22(%arg0: i32) -> (i32, i32, i32) {
    %c0_i32 = arith.constant 0 : i32
    %c0_i32_0 = arith.constant 0 : i32
    %c0_i32_1 = arith.constant 0 : i32
    %c0_i32_2 = arith.constant 0 : i32
    return %c0_i32, %c0_i32_0, %c0_i32_1 : i32, i32, i32
  }
  func.func @transform_23(%arg0: i32) -> (i32, i32, i32) {
    %c0_i32 = arith.constant 0 : i32
    %c0_i32_0 = arith.constant 0 : i32
    %c0_i32_1 = arith.constant 0 : i32
    %c0_i32_2 = arith.constant 0 : i32
    return %c0_i32, %c0_i32_0, %c0_i32_1 : i32, i32, i32
  }
  func.func @transform_24(%arg0: i32) -> (i32, i32, i32) {
    %c0_i32 = arith.constant 0 : i32
    %c0_i32_0 = arith.constant 0 : i32
    %c0_i32_1 = arith.constant 0 : i32
    %c0_i32_2 = arith.constant 0 : i32
    return %c0_i32, %c0_i32_0, %c0_i32_1 : i32, i32, i32
  }
  func.func @transform_25(%arg0: i32) -> (i32, i32, i32) {
    %c0_i32 = arith.constant 0 : i32
    %c0_i32_0 = arith.constant 0 : i32
    %c0_i32_1 = arith.constant 0 : i32
    %c0_i32_2 = arith.constant 0 : i32
    return %c0_i32, %c0_i32_0, %c0_i32_1 : i32, i32, i32
  }
  func.func @transform_26(%arg0: i32) -> (i32, i32, i32) {
    %c0_i32 = arith.constant 0 : i32
    %c0_i32_0 = arith.constant 0 : i32
    %c0_i32_1 = arith.constant 0 : i32
    %c0_i32_2 = arith.constant 0 : i32
    return %c0_i32, %c0_i32_0, %c0_i32_1 : i32, i32, i32
  }
  func.func @transform_27(%arg0: i32) -> (i32, i32, i32) {
    %c0_i32 = arith.constant 0 : i32
    %c0_i32_0 = arith.constant 0 : i32
    %c0_i32_1 = arith.constant 0 : i32
    %c0_i32_2 = arith.constant 0 : i32
    return %c0_i32, %c0_i32_0, %c0_i32_1 : i32, i32, i32
  }
  func.func @transform_28(%arg0: i32) -> (i32, i32, i32) {
    %c0_i32 = arith.constant 0 : i32
    %c0_i32_0 = arith.constant 0 : i32
    %c0_i32_1 = arith.constant 0 : i32
    %c0_i32_2 = arith.constant 0 : i32
    return %c0_i32, %c0_i32_0, %c0_i32_1 : i32, i32, i32
  }
  func.func @transform_29(%arg0: i32) -> (i32, i32, i32) {
    %c0_i32 = arith.constant 0 : i32
    %c0_i32_0 = arith.constant 0 : i32
    %c0_i32_1 = arith.constant 0 : i32
    %c0_i32_2 = arith.constant 0 : i32
    return %c0_i32, %c0_i32_0, %c0_i32_1 : i32, i32, i32
  }
  func.func @transform_30(%arg0: i32) -> (i32, i32, i32) {
    %c0_i32 = arith.constant 0 : i32
    %c0_i32_0 = arith.constant 0 : i32
    %c0_i32_1 = arith.constant 0 : i32
    %c0_i32_2 = arith.constant 0 : i32
    return %c0_i32, %c0_i32_0, %c0_i32_1 : i32, i32, i32
  }
  func.func @transform_31(%arg0: i32) -> (i32, i32, i32) {
    %c0_i32 = arith.constant 0 : i32
    %c0_i32_0 = arith.constant 0 : i32
    %c0_i32_1 = arith.constant 0 : i32
    %c0_i32_2 = arith.constant 0 : i32
    return %c0_i32, %c0_i32_0, %c0_i32_1 : i32, i32, i32
  }
  func.func @transform_32(%arg0: i32) -> (i32, i32, i32) {
    %c0_i32 = arith.constant 0 : i32
    %c0_i32_0 = arith.constant 0 : i32
    %c0_i32_1 = arith.constant 0 : i32
    %c0_i32_2 = arith.constant 0 : i32
    return %c0_i32, %c0_i32_0, %c0_i32_1 : i32, i32, i32
  }
  func.func @transform_33(%arg0: i32) -> (i32, i32, i32) {
    %c0_i32 = arith.constant 0 : i32
    %c0_i32_0 = arith.constant 0 : i32
    %c0_i32_1 = arith.constant 0 : i32
    %c0_i32_2 = arith.constant 0 : i32
    return %c0_i32, %c0_i32_0, %c0_i32_1 : i32, i32, i32
  }
  func.func @transform_34(%arg0: i32) -> (i32, i32, i32) {
    %c0_i32 = arith.constant 0 : i32
    %c0_i32_0 = arith.constant 0 : i32
    %c0_i32_1 = arith.constant 0 : i32
    %c0_i32_2 = arith.constant 0 : i32
    return %c0_i32, %c0_i32_0, %c0_i32_1 : i32, i32, i32
  }
  func.func @transform_35(%arg0: i32) -> (i32, i32, i32) {
    %c0_i32 = arith.constant 0 : i32
    %c0_i32_0 = arith.constant 0 : i32
    %c0_i32_1 = arith.constant 0 : i32
    %c0_i32_2 = arith.constant 0 : i32
    return %c0_i32, %c0_i32_0, %c0_i32_1 : i32, i32, i32
  }
  func.func @transform_36(%arg0: i32) -> (i32, i32, i32) {
    %c0_i32 = arith.constant 0 : i32
    %c0_i32_0 = arith.constant 0 : i32
    %c0_i32_1 = arith.constant 0 : i32
    %c0_i32_2 = arith.constant 0 : i32
    return %c0_i32, %c0_i32_0, %c0_i32_1 : i32, i32, i32
  }
  func.func @transform_37(%arg0: i32) -> (i32, i32, i32) {
    %c0_i32 = arith.constant 0 : i32
    %c0_i32_0 = arith.constant 0 : i32
    %c0_i32_1 = arith.constant 0 : i32
    %c0_i32_2 = arith.constant 0 : i32
    return %c0_i32, %c0_i32_0, %c0_i32_1 : i32, i32, i32
  }
  func.func @transform_38(%arg0: i32) -> (i32, i32, i32) {
    %c0_i32 = arith.constant 0 : i32
    %c0_i32_0 = arith.constant 0 : i32
    %c0_i32_1 = arith.constant 0 : i32
    %c0_i32_2 = arith.constant 0 : i32
    return %c0_i32, %c0_i32_0, %c0_i32_1 : i32, i32, i32
  }
  func.func @transform_39(%arg0: i32) -> (i32, i32, i32) {
    %c0_i32 = arith.constant 0 : i32
    %c0_i32_0 = arith.constant 0 : i32
    %c0_i32_1 = arith.constant 0 : i32
    %c0_i32_2 = arith.constant 0 : i32
    return %c0_i32, %c0_i32_0, %c0_i32_1 : i32, i32, i32
  }
  func.func @transform_40(%arg0: i32) -> (i32, i32, i32) {
    %c0_i32 = arith.constant 0 : i32
    %c0_i32_0 = arith.constant 0 : i32
    %c0_i32_1 = arith.constant 0 : i32
    %c0_i32_2 = arith.constant 0 : i32
    return %c0_i32, %c0_i32_0, %c0_i32_1 : i32, i32, i32
  }
  func.func @transform_41(%arg0: i32) -> (i32, i32, i32) {
    %c0_i32 = arith.constant 0 : i32
    %c0_i32_0 = arith.constant 0 : i32
    %c0_i32_1 = arith.constant 0 : i32
    %c0_i32_2 = arith.constant 0 : i32
    return %c0_i32, %c0_i32_0, %c0_i32_1 : i32, i32, i32
  }
  func.func @transform_42(%arg0: i32) -> (i32, i32, i32) {
    %c0_i32 = arith.constant 0 : i32
    %c0_i32_0 = arith.constant 0 : i32
    %c0_i32_1 = arith.constant 0 : i32
    %c0_i32_2 = arith.constant 0 : i32
    return %c0_i32, %c0_i32_0, %c0_i32_1 : i32, i32, i32
  }
  func.func @transform_43(%arg0: i32) -> (i32, i32, i32) {
    %c0_i32 = arith.constant 0 : i32
    %c0_i32_0 = arith.constant 0 : i32
    %c0_i32_1 = arith.constant 0 : i32
    %c0_i32_2 = arith.constant 0 : i32
    return %c0_i32, %c0_i32_0, %c0_i32_1 : i32, i32, i32
  }
  func.func @transform_44(%arg0: i32) -> (i32, i32, i32) {
    %c0_i32 = arith.constant 0 : i32
    %c0_i32_0 = arith.constant 0 : i32
    %c0_i32_1 = arith.constant 0 : i32
    %c0_i32_2 = arith.constant 0 : i32
    return %c0_i32, %c0_i32_0, %c0_i32_1 : i32, i32, i32
  }
  func.func @transform_45(%arg0: i32) -> (i32, i32, i32) {
    %c0_i32 = arith.constant 0 : i32
    %c0_i32_0 = arith.constant 0 : i32
    %c0_i32_1 = arith.constant 0 : i32
    %c0_i32_2 = arith.constant 0 : i32
    return %c0_i32, %c0_i32_0, %c0_i32_1 : i32, i32, i32
  }
  func.func @transform_46(%arg0: i32) -> (i32, i32, i32) {
    %c0_i32 = arith.constant 0 : i32
    %c0_i32_0 = arith.constant 0 : i32
    %c0_i32_1 = arith.constant 0 : i32
    %c0_i32_2 = arith.constant 0 : i32
    return %c0_i32, %c0_i32_0, %c0_i32_1 : i32, i32, i32
  }
  func.func @transform_47(%arg0: i32) -> (i32, i32, i32) {
    %c0_i32 = arith.constant 0 : i32
    %c0_i32_0 = arith.constant 0 : i32
    %c0_i32_1 = arith.constant 0 : i32
    %c0_i32_2 = arith.constant 0 : i32
    return %c0_i32, %c0_i32_0, %c0_i32_1 : i32, i32, i32
  }
  func.func @transform_48(%arg0: i32) -> (i32, i32, i32) {
    %c0_i32 = arith.constant 0 : i32
    %c0_i32_0 = arith.constant 0 : i32
    %c0_i32_1 = arith.constant 0 : i32
    %c0_i32_2 = arith.constant 0 : i32
    return %c0_i32, %c0_i32_0, %c0_i32_1 : i32, i32, i32
  }
  func.func @transform_49(%arg0: i32) -> (i32, i32, i32) {
    %c0_i32 = arith.constant 0 : i32
    %c0_i32_0 = arith.constant 0 : i32
    %c0_i32_1 = arith.constant 0 : i32
    %c0_i32_2 = arith.constant 0 : i32
    return %c0_i32, %c0_i32_0, %c0_i32_1 : i32, i32, i32
  }
  func.func @transform_50(%arg0: i32) -> (i32, i32, i32) {
    %c0_i32 = arith.constant 0 : i32
    %c0_i32_0 = arith.constant 0 : i32
    %c0_i32_1 = arith.constant 0 : i32
    %c0_i32_2 = arith.constant 0 : i32
    return %c0_i32, %c0_i32_0, %c0_i32_1 : i32, i32, i32
  }
  func.func @transform_51(%arg0: i32) -> (i32, i32, i32) {
    %c0_i32 = arith.constant 0 : i32
    %c0_i32_0 = arith.constant 0 : i32
    %c0_i32_1 = arith.constant 0 : i32
    return %arg0, %c0_i32, %c0_i32_0 : i32, i32, i32
  }
}

</mosaic_0001>

<bundles_post_ra>
// kernel: time_series_transformer.1
= control target key start
LH: loop header
LB: loop body
LE: loop exit
PB: predicated region body
PF: predicated region fallthrough
CT: control target
= control target key end

     0   :  { %s7845_s6 = smov 1   ;;  %s7846_s10 = smov 2   ;;  %s9052_s0 = inlined_call_operand.smem [shape: u32[52], index: -1, kind: input, shape index: {}] }
   0x1   :  { %s7922_s5 = sld [smem:[%s9052_s0]]   ;;  %s7847_s14 = smov 3  }
   0x2   :  { %s7927_s9 = sld [smem:[%s9052_s0 + %s7845_s6]]   ;;  %s7848_s18 = smov 4  }
   0x3   :  { %s7932_s13 = sld [smem:[%s9052_s0 + %s7846_s10]]   ;;  %s7849_s22 = smov 5  }
   0x4   :  { %s7937_s17 = sld [smem:[%s9052_s0 + %s7847_s14]]   ;;  %s7850_s26 = smov 6  }
   0x5   :  { %s7942_s21 = sld [smem:[%s9052_s0 + %s7848_s18]]   ;;  %s7851_s30 = smov 7  }
   0x6   :  { %s7947_s25 = sld [smem:[%s9052_s0 + %s7849_s22]]   ;;  %s7852_s4 = smov 8  }
   0x7   :  { %s7952_s29 = sld [smem:[%s9052_s0 + %s7850_s26]]   ;;  %s7853_s10 = smov 9  }
   0x8   :  { %s7957_s3 = sld [smem:[%s9052_s0 + %s7851_s30]]   ;;  %s7854_s15 = smov 10  }
   0x9   :  { %s7962_s8 = sld [smem:[%s9052_s0 + %s7852_s4]]   ;;  %s7855_s20 = smov 11  }
   0xa   :  { %s7967_s14 = sld [smem:[%s9052_s0 + %s7853_s10]]   ;;  %s7856_s26 = smov 12  }
   0xb   :  { %s7972_s19 = sld [smem:[%s9052_s0 + %s7854_s15]]   ;;  %s7857_s1 = smov 13  }
   0xc   :  { %9062 = sst [smem:[#allocation2_spill]] %s7947_s25  ;;  %s7858_s7 = smov 14  }
   0xd   :  { %9063 = sst [smem:[#allocation3_spill]] %s7952_s29  ;;  %s7859_s15 = smov 15  }
   0xe   :  { %9064 = sst [smem:[#allocation4_spill]] %s7957_s3  ;;  %s7860_s22 = smov 16  }
   0xf   :  { %9065 = sst [smem:[#allocation5_spill]] %s7962_s8  ;;  %s7861_s28 = smov 17  }
  0x10   :  { %s7977_s24 = sld [smem:[%s9052_s0 + %s7855_s20]]  }
  0x11   :  { %s7982_s30 = sld [smem:[%s9052_s0 + %s7856_s26]]  }
  0x12   :  { %s7987_s6 = sld [smem:[%s9052_s0 + %s7857_s1]]  }
  0x13   :  { %s7992_s12 = sld [smem:[%s9052_s0 + %s7858_s7]]   ;;  %s7862_s7 = smov 18  }
  0x14   :  { %s7997_s20 = sld [smem:[%s9052_s0 + %s7859_s15]]   ;;  %s7863_s15 = smov 19  }
  0x15   :  { %s8002_s27 = sld [smem:[%s9052_s0 + %s7860_s22]]   ;;  %s7864_s22 = smov 20  }
  0x16   :  { %s8007_s4 = sld [smem:[%s9052_s0 + %s7861_s28]]   ;;  %s7865_s28 = smov 21  }
  0x17   :  { %s8012_s8 = sld [smem:[%s9052_s0 + %s7862_s7]]   ;;  %s7866_s7 = smov 22  }
  0x18   :  { %s8017_s3 = sld [smem:[%s9052_s0 + %s7863_s15]]   ;;  %s7867_s15 = smov 23  }
  0x19   :  { %s8022_s29 = sld [smem:[%s9052_s0 + %s7864_s22]]   ;;  %s7868_s22 = smov 24  }
  0x1a   :  { %s8027_s25 = sld [smem:[%s9052_s0 + %s7865_s28]]   ;;  %s7869_s28 = smov 25  }
  0x1d   :  { %9066 = sst [smem:[#allocation6_spill]] %s8012_s8 }
  0x1e   :  { %9067 = sst [smem:[#allocation7_spill]] %s8017_s3 }
  0x1f   :  { %9068 = sst [smem:[#allocation8_spill]] %s8022_s29 }
  0x20   :  { %9069 = sst [smem:[#allocation9_spill]] %s8027_s25 }
  0x21   :  { %s8032_s8 = sld [smem:[%s9052_s0 + %s7866_s7]]   ;;  %s7870_s7 = smov 26  }
  0x22   :  { %s8037_s3 = sld [smem:[%s9052_s0 + %s7867_s15]]   ;;  %s7871_s15 = smov 27  }
  0x23   :  { %s8042_s29 = sld [smem:[%s9052_s0 + %s7868_s22]]   ;;  %s7872_s22 = smov 28  }
  0x24   :  { %s8047_s25 = sld [smem:[%s9052_s0 + %s7869_s28]]   ;;  %s7873_s28 = smov 29  }
  0x27   :  { %9070 = sst [smem:[#allocation10_spill]] %s8032_s8 }
  0x28   :  { %9071 = sst [smem:[#allocation11_spill]] %s8037_s3 }
  0x29   :  { %9072 = sst [smem:[#allocation12_spill]] %s8042_s29 }
  0x2a   :  { %9073 = sst [smem:[#allocation13_spill]] %s8047_s25 }
  0x2b   :  { %s8052_s8 = sld [smem:[%s9052_s0 + %s7870_s7]]   ;;  %s7874_s7 = smov 30  }
  0x2c   :  { %s8057_s3 = sld [smem:[%s9052_s0 + %s7871_s15]]   ;;  %s7875_s15 = smov 31  }
  0x2d   :  { %s8062_s29 = sld [smem:[%s9052_s0 + %s7872_s22]]   ;;  %s7876_s22 = smov 32  }
  0x2e   :  { %s8067_s25 = sld [smem:[%s9052_s0 + %s7873_s28]]   ;;  %s7877_s28 = smov 33  }
  0x31   :  { %9074 = sst [smem:[#allocation14_spill]] %s8052_s8 }
  0x32   :  { %9075 = sst [smem:[#allocation15_spill]] %s8057_s3 }
  0x33   :  { %9076 = sst [smem:[#allocation16_spill]] %s8062_s29 }
  0x34   :  { %9077 = sst [smem:[#allocation17_spill]] %s8067_s25 }
  0x35   :  { %s8072_s8 = sld [smem:[%s9052_s0 + %s7874_s7]]   ;;  %s7878_s7 = smov 34  }
  0x36   :  { %s8077_s3 = sld [smem:[%s9052_s0 + %s7875_s15]]   ;;  %s7879_s15 = smov 35  }
  0x37   :  { %s8082_s29 = sld [smem:[%s9052_s0 + %s7876_s22]]   ;;  %s7880_s22 = smov 36  }
  0x38   :  { %s8087_s25 = sld [smem:[%s9052_s0 + %s7877_s28]]   ;;  %s7881_s28 = smov 37  }
  0x3b   :  { %9078 = sst [smem:[#allocation18_spill]] %s8072_s8 }
  0x3c   :  { %9079 = sst [smem:[#allocation19_spill]] %s8077_s3 }
  0x3d   :  { %9080 = sst [smem:[#allocation20_spill]] %s8082_s29 }
  0x3e   :  { %9081 = sst [smem:[#allocation21_spill]] %s8087_s25 }
  0x3f   :  { %s8092_s8 = sld [smem:[%s9052_s0 + %s7878_s7]]   ;;  %s7882_s7 = smov 38  }
  0x40   :  { %s8097_s3 = sld [smem:[%s9052_s0 + %s7879_s15]]   ;;  %s7883_s15 = smov 39  }
  0x41   :  { %s8102_s29 = sld [smem:[%s9052_s0 + %s7880_s22]]   ;;  %s7884_s22 = smov 40  }
  0x42   :  { %s8107_s25 = sld [smem:[%s9052_s0 + %s7881_s28]]   ;;  %s7885_s28 = smov 41  }
  0x45   :  { %9082 = sst [smem:[#allocation22_spill]] %s8092_s8 }
  0x46   :  { %9083 = sst [smem:[#allocation23_spill]] %s8097_s3 }
  0x47   :  { %9084 = sst [smem:[#allocation24_spill]] %s8102_s29 }
  0x48   :  { %9085 = sst [smem:[#allocation25_spill]] %s8107_s25 }
  0x49   :  { %s8112_s8 = sld [smem:[%s9052_s0 + %s7882_s7]]   ;;  %s7886_s7 = smov 42  }
  0x4a   :  { %s8117_s3 = sld [smem:[%s9052_s0 + %s7883_s15]]   ;;  %s7887_s15 = smov 43  }
  0x4b   :  { %s8122_s29 = sld [smem:[%s9052_s0 + %s7884_s22]]   ;;  %s7888_s22 = smov 44  }
  0x4c   :  { %s8127_s25 = sld [smem:[%s9052_s0 + %s7885_s28]]   ;;  %s7889_s28 = smov 45  }
  0x4f   :  { %9086 = sst [smem:[#allocation26_spill]] %s8112_s8 }
  0x50   :  { %9087 = sst [smem:[#allocation27_spill]] %s8117_s3 }
  0x51   :  { %9088 = sst [smem:[#allocation28_spill]] %s8122_s29 }
  0x52   :  { %9089 = sst [smem:[#allocation29_spill]] %s8127_s25 }
  0x53   :  { %s8132_s8 = sld [smem:[%s9052_s0 + %s7886_s7]]   ;;  %s7890_s7 = smov 46  }
  0x54   :  { %s8137_s3 = sld [smem:[%s9052_s0 + %s7887_s15]]   ;;  %s7891_s15 = smov 47  }
  0x55   :  { %s8142_s29 = sld [smem:[%s9052_s0 + %s7888_s22]]   ;;  %s7892_s22 = smov 48  }
  0x56   :  { %s8147_s25 = sld [smem:[%s9052_s0 + %s7889_s28]]   ;;  %s7893_s28 = smov 49  }
  0x59   :  { %9090 = sst [smem:[#allocation30_spill]] %s8132_s8 }
  0x5a   :  { %9091 = sst [smem:[#allocation31_spill]] %s8137_s3 }
  0x5b   :  { %9092 = sst [smem:[#allocation32_spill]] %s8142_s29 }
  0x5c   :  { %9093 = sst [smem:[#allocation33_spill]] %s8147_s25 }
  0x5d   :  { %s8152_s8 = sld [smem:[%s9052_s0 + %s7890_s7]]   ;;  %s7894_s7 = smov 50  }
  0x5e   :  { %s8157_s3 = sld [smem:[%s9052_s0 + %s7891_s15]]   ;;  %s7895_s15 = smov 51  }
  0x5f   :  { %s8162_s29 = sld [smem:[%s9052_s0 + %s7892_s22]]   ;;  %s8179_s22 = smov 0  }
  0x60   :  { %s8167_s25 = sld [smem:[%s9052_s0 + %s7893_s28]]  }
  0x63   :  { %9094 = sst [smem:[#allocation34_spill]] %s8152_s8 }
  0x64   :  { %9095 = sst [smem:[#allocation35_spill]] %s8157_s3 }
  0x65   :  { %s8172_s8 = sld [smem:[%s9052_s0 + %s7894_s7]]  }
  0x66   :  { %s8177_s3 = sld [smem:[%s9052_s0 + %s7895_s15]]  }
  0x67 LB: > { %s6499_s23 = sadd.s32 4294967295, %s7811_s22   ;;  %p6503_p0 = scmp.ge.s32.totalorder %s7811_s22, 1  ;;  %s7811_s22 = sphi %s8179_s22, %s113_s22  }
  0x68   : > { %p1402_p1 = scmp.lt.s32.totalorder %s7811_s22, 3 }
  0x6a   : > { %p1403_p2 = pnand %p6503_p0, %p1402_p1 }
  0x6b   : > { %s6504_s0 = sshll.u32 (!%p1403_p2), %s6499_s23, 1  ;;  %s8213_s10 = smov (!%p1403_p2), 0  }
  0x6c   : > { %1406 = sbr.rel (%p1403_p2) target bundleno = 11543 (0x2d17), region = 224  ;;  %p1529_p3 = scmp.lt.s32.totalorder (!%p1403_p2), %s6504_s0, 3 }
  0x71   : > { %v7500_v0 = vld [vmem:[%s7937_s17 + $0x38] sm:$0xff]   ;;  %v7501_v1 = vld [vmem:[%s7937_s17 + $0x30] sm:$0xff]   ;;  %s9142_s0 = smov (!%p1529_p3, %s6504_s0), 3  ;;  %v7502_v2 = vld [vmem:[%s7937_s17 + $0x28] sm:$0xff]  }
  0x72   : > { %6887 = vmatprep.subr.bf16.mxu0 %v7500_v0  ;;  %s6692_s26 = sshll.u32 %s9142_s0, 3  ;;  %s6508_s1 = sshll.u32 %s9142_s0, 2  ;;  %v7503_v3 = vld [vmem:[%s7937_s17 + $0x20] sm:$0xff]   ;;  %v7504_v5 = vld [vmem:[%s7937_s17 + $0x18] sm:$0xff]   ;;  %v7505_v6 = vld [vmem:[%s7937_s17 + $0x10] sm:$0xff]  }
  0x73   : > { %6888 = vmatpush3.bf16.msra.mxu0 %v7500_v0  ;;  %s1533_s28 = scalar_lea.vmem %s7922_s5, %s6692_s26  ;;  %s8193_s2 = scalar_lea.vmem %s7927_s9, %s6508_s1  ;;  %v7506_v7 = vld [vmem:[%s7937_s17 + $0x8] sm:$0xff]   ;;  %v7507_v8 = vld [vmem:[%s7937_s17] sm:$0xff]  }
  0x74   : > { %6889 = vmatprep.subr.bf16.mxu0 %v7501_v1  ;;  %s8196_s7 = scalar_lea.vmem %s8177_s3, %s6692_s26  ;;  %v7508_v4 = vld [vmem:[%s1533_s28] sm:$0xff]   ;;  %v7509_v9 = vld [vmem:[%s1533_s28 + $0x8] sm:$0xff]  }
  0x75   : > { %6903 = vmatprep.mubr.bf16.mxu0 %v7508_v4  ;;  %v6511_v10 = vld [vmem:[%s7942_s21] ss:$0 sm:$0xff]  ;;  %v1685_v18 = vld [vmem:[%s7932_s13 + $0x8] sm:$0xff] }
  0x76   : > { %v1684_v12 = vld [vmem:[%s7932_s13] sm:$0xff] }
  0x77   : > { %6890 = vmatpush3.bf16.msra.mxu0 %v7501_v1 }
  0x78   : > { %6891 = vmatprep.subr.bf16.mxu0 %v7502_v2 }
  0x7b   : > { %6892 = vmatpush3.bf16.msra.mxu0 %v7502_v2 }
  0x7c   : > { %6893 = vmatprep.subr.bf16.mxu0 %v7503_v3 }
  0x7f   : > { %6894 = vmatpush3.bf16.msra.mxu0 %v7503_v3 }
  0x80   : > { %6895 = vmatprep.subr.bf16.mxu0 %v7504_v5 }
  0x83   : > { %6896 = vmatpush3.bf16.msra.mxu0 %v7504_v5 }
  0x84   : > { %6897 = vmatprep.subr.bf16.mxu0 %v7505_v6 }
  0x87   : > { %6898 = vmatpush3.bf16.msra.mxu0 %v7505_v6 }
  0x88   : > { %6899 = vmatprep.subr.bf16.mxu0 %v7506_v7 }
  0x8b   : > { %6900 = vmatpush3.bf16.msra.mxu0 %v7506_v7 }
  0x8c   : > { %6901 = vmatprep.subr.bf16.mxu0 %v7507_v8 }
  0x8f   : > { %6902 = vmatpush3.bf16.msra.mxu0 %v7507_v8 }
  0x92   : > { %6904 = vmatmul.mubr.bf16.vlgmr.msra.gmra.mxu0 %v7509_v9 }
 0x152   : > { %v6905_v11 = vpop.f32.mrf.mxu0 }
 0x153   : > { %v1678_v13 = vadd.f32 %v6905_v11, %v6511_v10 }
 0x154   : > { %v1669_v14 = vpop.f32.mrf.mxu0 }
 0x155   : > { %v1688_v15 = vadd.f32 %v1684_v12, %v1678_v13   ;;  %v1670_v16 = vadd.f32 %v6511_v10, %v1669_v14 }
 0x156   : > { %v6906_v17 = vpop.f32.mrf.mxu0 }
 0x157   : > { %v1686_v19 = vadd.f32 %v1684_v12, %v1670_v16   ;;  %v1681_v20 = vadd.f32 %v6906_v17, %v6511_v10 }
 0x158   : > { %v1672_v21 = vpop.f32.mrf.mxu0 }
 0x159   : > { %v1689_v22 = vadd.f32 %v1685_v18, %v1681_v20   ;;  %v1673_v23 = vadd.f32 %v6511_v10, %v1672_v21 }
 0x15b   : > { %v1687_v24 = vadd.f32 %v1685_v18, %v1673_v23  }
 0x15c LB: >> { %vm1729_vm0 = vcmask 261120   ;;  %s8231_s11 = sshll.u32 %s7831_s10, 4  ;;  %v1700_v25 = vpack.c.bf16 %v7823_v24, %v7827_v19  ;;  %v1701_v31 = vpack.c.bf16 %v7815_v22, %v7819_v15  ;;  %v7896_v33 = vmov 0.0   ;;  %s1791_s23 = scalar_lea.vmem %s7982_s30, %s7831_s10  ;;  %s7831_s10 = sphi %s8213_s10, %s1695_s10   ;;  %v7827_v19 = vphi %v1686_v19, %v9106_v19   ;;  %v7823_v24 = vphi %v1687_v24, %v9105_v24   ;;  %v7819_v15 = vphi %v1688_v15, %v9104_v15   ;;  %v7815_v22 = vphi %v1689_v22, %v9103_v22  }
 0x15d   : >> { %s1786_s15 = scalar_lea.vmem %s7977_s24, %s8231_s11  ;;  %s1704_s16 = scalar_lea.vmem %s7967_s14, %s8231_s11  ;;  %vm7897_vm1 = vmmov 0   ;;  %v6530_v36 = vld [vmem:[%s1791_s23] ss:$0 sm:$0xff]  ;;  %vm1953_vm2 = vcmask 64512   ;;  %vm2048_vm3 = vcmask 130048   ;;  %vm2971_vm4 = vcmask 195584  }
 0x15e   : >> { %v7540_v26 = vld [vmem:[%s1786_s15 + $0x8] sm:$0xff]   ;;  %6919 = vmatprep.mubr.msk.bf16.mxu1 %vm1729_vm0, %v1700_v25  ;;  %6911 = vmatprep.mubr.msk.bf16.mxu0 %vm1729_vm0, %v1700_v25  ;;  %v7542_v28 = vld [vmem:[%s1786_s15] sm:$0xff]   ;;  %s1861_s18 = scalar_lea.vmem %s7987_s6, %s8231_s11  ;;  %s1709_s0 = scalar_lea.vmem %s7972_s19, %s7831_s10  ;;  %vm3264_vm5 = vcmask 523264  }
 0x15f   : >> { %v7541_v27 = vld [vmem:[%s1704_s16 + $0x8] sm:$0xff]   ;;  %6915 = vmatprep.subr.bf16.mxu1 %v7540_v26  ;;  %v7543_v29 = vld [vmem:[%s1704_s16] sm:$0xff]   ;;  %s1866_s26 = scalar_lea.vmem %s7992_s12, %s7831_s10  ;;  %s7898_s28 = smov 120  }
 0x160   : >> { %6907 = vmatprep.subr.bf16.mxu0 %v7541_v27  ;;  %6916 = vmatpush3.bf16.msra.mxu1 %v7540_v26  ;;  %v7544_v30 = vld [vmem:[%s1861_s18 + $0x8] sm:$0xff]   ;;  %v7545_v32 = vld [vmem:[%s1861_s18] sm:$0xff]   ;;  %s7899_s1 = smov 112   ;;  %s7900_s15 = smov 104  }
 0x161   : >> { %6908 = vmatpush3.bf16.msra.mxu0 %v7541_v27  ;;  %6917 = vmatprep.subr.bf16.mxu1 %v7542_v28  ;;  %v6524_v38 = vld [vmem:[%s1709_s0] ss:$0 sm:$0xff]  ;;  %s7901_s16 = smov 8   ;;  %s7902_s18 = smov 16  }
 0x162   : >> { %6909 = vmatprep.subr.bf16.mxu0 %v7543_v29  ;;  %v6536_v63 = vld [vmem:[%s1866_s26] ss:$0 sm:$0xff]  ;;  %s1940_s23 = scalar_lea.vmem %s7997_s20, %s8231_s11  ;;  %s7903_s0 = smov 24  }
 0x163   : >> { %s1945_s26 = scalar_lea.vmem %s8002_s27, %s7831_s10 }
 0x164   : >> { %6918 = vmatpush3.bf16.msra.mxu1 %v7542_v28 }
 0x165   : >> { %6910 = vmatpush3.bf16.msra.mxu0 %v7543_v29  ;;  %6931 = vmatprep.subr.bf16.mxu1 %v7896_v33 }
 0x166   : >> { %6923 = vmatprep.subr.bf16.mxu0 %v7544_v30 }
 0x167   : >> { %6920 = vmatmul.mubr.msk.bf16.vlgmr.msra.gmra.mxu1 %vm1729_vm0, %v1701_v31 }
 0x168   : >> { %6912 = vmatmul.mubr.msk.bf16.vlgmr.msra.gmra.mxu0 %vm1729_vm0, %v1701_v31  ;;  %6933 = vmatprep.mubr.msk.bf16.mxu1 %vm7897_vm1, %v7896_v33 }
 0x169   : >> { %6924 = vmatpush3.bf16.msra.mxu0 %v7544_v30  ;;  %6927 = vmatprep.mubr.msk.bf16.mxu0 %vm1729_vm0, %v1700_v25 }
 0x16a   : >> { %6925 = vmatprep.subr.bf16.mxu0 %v7545_v32 }
 0x16d   : >> { %6926 = vmatpush3.bf16.msra.mxu0 %v7545_v32 }
 0x16e   : >> { %6937 = vmatprep.subr.bf16.mxu0 %v7896_v33 }
 0x170   : >> { %6928 = vmatmul.mubr.msk.bf16.vlgmr.msra.gmra.mxu0 %vm1729_vm0, %v1701_v31 }
 0x171   : >> { %6939 = vmatprep.mubr.msk.bf16.mxu0 %vm7897_vm1, %v7896_v33 }
 0x227   : >> { %v6921_v34 = vpop.f32.mrf.mxu1 }
 0x228   : >> { %v6913_v35 = vpop.f32.mrf.mxu0  ;;  %v1854_v41 = vadd.f32 %v6921_v34, %v6530_v36 }
 0x229   : >> { %v1845_v37 = vpop.f32.mrf.mxu1  ;;  %v1779_v44 = vadd.f32 %v6913_v35, %v6524_v38 }
 0x22a   : >> { %v1770_v39 = vpop.f32.mrf.mxu0  ;;  %v1846_v46 = vadd.f32 %v6530_v36, %v1845_v37 }
 0x22b   : >> { %v6922_v40 = vpop.f32.mrf.mxu1  ;;  %v1771_v51 = vadd.f32 %v6524_v38, %v1770_v39  ;;  %v1937_v55 = vmul.f32 0.35355338, %v1779_v44 }
 0x22c   : >> { %v1857_v42 = vadd.f32 %v6922_v40, %v6530_v36  ;;  %v6914_v43 = vpop.f32.mrf.mxu0 }
 0x22d   : >> { %v1848_v45 = vpop.f32.mrf.mxu1  ;;  %v1782_v48 = vadd.f32 %v6914_v43, %v6524_v38  ;;  %v1935_v58 = vmul.f32 0.35355338, %v1771_v51 }
 0x22e   : >> { %v8259_v47 = vpack.c.bf16 %v1857_v42, %v1854_v41  ;;  %v1849_v49 = vadd.f32 %v6530_v36, %v1848_v45  ;;  %v1773_v50 = vpop.f32.mrf.mxu0 }
 0x22f   : >> { %v1774_v53 = vadd.f32 %v6524_v38, %v1773_v50  ;;  %v1938_v56 = vmul.f32 0.35355338, %v1782_v48 }
 0x230   : >> { %v8261_v52 = vpack.c.bf16 %v1849_v49, %v1846_v46  ;;  %v2005_v54 = vsel %vm1953_vm2, %v8259_v47, 0  ;;  %v6929_v62 = vpop.f32.mrf.mxu0 }
 0x231   : >> { %6938 = vmatpush3.bf16.xpose.msra.mxu0 %v2005_v54  ;;  %v1936_v59 = vmul.f32 0.35355338, %v1774_v53  ;;  %v8269_v60 = vpack.c.bf16 %v1938_v56, %v1937_v55  ;;  %v1929_v1 = vadd.f32 %v6929_v62, %v6536_v63 }
 0x232   : >> { %v1958_v57 = vsel %vm1953_vm2, %v8261_v52, 0  ;;  %6949 = vmatprep.subr.bf16.mxu0 %v7896_v33  ;;  %v1920_v0 = vpop.f32.mrf.mxu0 }
 0x233   : >> { %6932 = vmatpush3.bf16.xpose.msra.mxu1 %v1958_v57  ;;  %v8271_v61 = vpack.c.bf16 %v1936_v59, %v1935_v58  ;;  %v1921_v3 = vadd.f32 %v6536_v63, %v1920_v0 }
 0x234   : >> { %6943 = vmatprep.subr.bf16.mxu1 %v7896_v33  ;;  %v6930_v2 = vpop.f32.mrf.mxu0 }
 0x235   : >> { %v1932_v4 = vadd.f32 %v6930_v2, %v6536_v63 }
 0x236   : >> { %v1923_v5 = vpop.f32.mrf.mxu0 }
 0x237   : >> { %v8283_v6 = vpack.c.bf16 %v1932_v4, %v1929_v1  ;;  %v1924_v7 = vadd.f32 %v6536_v63, %v1923_v5 }
 0x238   : >> { %6940 = vmatmul.mubr.msk.bf16.vlgmr.msra.gmra.mxu0 %vm1953_vm2, %v8269_v60 }
 0x239   : >> { %6951 = vmatprep.mubr.msk.bf16.mxu0 %vm7897_vm1, %v7896_v33  ;;  %v8285_v8 = vpack.c.bf16 %v1924_v7, %v1921_v3  ;;  %6950 = vmatpush3.bf16.msra.mxu0 %v8283_v6 }
 0x23a   : >> { %6934 = vmatmul.mubr.msk.bf16.vlgmr.msra.gmra.mxu1 %vm1953_vm2, %v8271_v61  ;;  %6961 = vmatprep.subr.bf16.mxu0 %v7896_v33 }
 0x23b   : >> { %6945 = vmatprep.mubr.msk.bf16.mxu1 %vm7897_vm1, %v7896_v33  ;;  %6944 = vmatpush3.bf16.msra.mxu1 %v8285_v8 }
 0x23c   : >> { %6955 = vmatprep.subr.bf16.mxu1 %v7896_v33 }
 0x2f8   : >> { %v2041_v9 = vpop.f32.mrf.mxu0 }
 0x2f9   : >> { %v2055_v10 = vsel %vm2048_vm3, %v2041_v9, -inf }
 0x2fa   : >> { %2056 = vmax.xlane.f32.xlu1 %v2055_v10  ;;  %v1994_v11 = vpop.f32.mrf.mxu1  ;;  %v6941_v12 = vpop.f32.mrf.mxu0 }
 0x2fb   : >> { %v2049_v13 = vsel %vm2048_vm3, %v1994_v11, -inf }
 0x2fc   : >> { %v2044_v14 = vpop.f32.mrf.mxu0  ;;  %2050 = vmax.xlane.f32.xlu0 %v2049_v13  ;;  %v6935_v16 = vpop.f32.mrf.mxu1 }
 0x2fd   : >> { %v2058_v17 = vsel %vm2048_vm3, %v2044_v14, -inf }
 0x2fe   : >> { %2059 = vmax.xlane.f32.xlu1 %v2058_v17  ;;  %v1997_v18 = vpop.f32.mrf.mxu1  ;;  %v6942_v20 = vpop.f32.mrf.mxu0 }
 0x2ff   : >> { %v2052_v21 = vsel %vm2048_vm3, %v1997_v18, -inf }
 0x300   : >> { %2053 = vmax.xlane.f32.xlu0 %v2052_v21  ;;  %v6936_v23 = vpop.f32.mrf.mxu1 }
 0x30f   : >> { %2240 = vrot.lane.b32.xlu1 %v8259_v47, %s7898_s28 }
 0x383   : >> { %v2057_v25 = vpop.xlane.xlu1 %2056 }
 0x384   : >> { %v2063_v26 = vsub.f32 %v2041_v9, %v2057_v25 }
 0x385   : >> { %v2051_v27 = vpop.xlane.xlu0 %2050 }
 0x386   : >> { %v2069_v28 = vmul.f32 1.442695, %v2063_v26  ;;  %v2061_v29 = vsub.f32 %v1994_v11, %v2051_v27 }
 0x387   : >> { %v2060_v30 = vpop.xlane.xlu1 %2059 }
 0x388   : >> { %7554 = vpow2.f32 %v2069_v28  ;;  %v2065_v31 = vmul.f32 1.442695, %v2061_v29  ;;  %v2064_v32 = vsub.f32 %v2044_v14, %v2060_v30 }
 0x389   : >> { %v2054_v34 = vpop.xlane.xlu0 %2053 }
 0x38a   : >> { %7556 = vpow2.f32 %v2065_v31  ;;  %v2071_v35 = vmul.f32 1.442695, %v2064_v32  ;;  %v2062_v36 = vsub.f32 %v1997_v18, %v2054_v34 }
 0x38b   : >> { %v2241_v46 = vpop.permute.xlu1 %2240 }
 0x38c   : >> { %7558 = vpow2.f32 %v2071_v35  ;;  %v2067_v37 = vmul.f32 1.442695, %v2062_v36  ;;  %v2246_v62 = vsel %vm1953_vm2, %v2241_v46, 0 }
 0x38e   : >> { %7560 = vpow2.f32 %v2067_v37 }
 0x395   : >> { %v7555_v38 = vpop.eup %7554 }
 0x396   : >> { %v2079_v39 = vsel %vm2048_vm3, %v7555_v38, 0.0 }
 0x397   : >> { %v7557_v40 = vpop.eup %7556  ;;  %2080 = vadd.xlane.f32.xlu0 %v2079_v39 }
 0x398   : >> { %v2073_v43 = vsel %vm2048_vm3, %v7557_v40, 0.0 }
 0x399   : >> { %v7559_v41 = vpop.eup %7558 }
 0x39a   : >> { %v2082_v42 = vsel %vm2048_vm3, %v7559_v41, 0.0 }
 0x39b   : >> { %v7561_v44 = vpop.eup %7560  ;;  %2083 = vadd.xlane.f32.xlu1 %v2082_v42  ;;  %2074 = vadd.xlane.f32.xlu0 %v2073_v43 }
 0x39c   : >> { %v2076_v45 = vsel %vm2048_vm3, %v7561_v44, 0.0 }
 0x39f   : >> { %2077 = vadd.xlane.f32.xlu1 %v2076_v45 }
 0x3b0   : >> { %2184 = vrot.lane.b32.xlu1 %v8271_v61, %s7898_s28 }
 0x3b1   : >> { %2187 = vrot.lane.b32.xlu0 %v8261_v52, %s7898_s28 }
 0x3b4   : >> { %2237 = vrot.lane.b32.xlu1 %v8269_v60, %s7898_s28 }
 0x420   : >> { %v2081_v48 = vpop.xlane.xlu0 %2080 }
 0x421   : >> { %7562 = vrcp.f32 %v2081_v48 }
 0x424   : >> { %v2084_v49 = vpop.xlane.xlu1 %2083  ;;  %v2075_v50 = vpop.xlane.xlu0 %2074 }
 0x425   : >> { %7564 = vrcp.f32 %v2084_v49 }
 0x426   : >> { %7566 = vrcp.f32 %v2075_v50 }
 0x428   : >> { %v2078_v51 = vpop.xlane.xlu1 %2077  ;;  %v2188_v1 = vpop.permute.xlu0 %2187 }
 0x429   : >> { %7568 = vrcp.f32 %v2078_v51  ;;  %v2193_v4 = vsel %vm1953_vm2, %v2188_v1, 0 }
 0x42c   : >> { %v2185_v2 = vpop.permute.xlu1 %2184 }
 0x42e   : >> { %v7563_v53 = vpop.eup %7562 }
 0x42f   : >> { %v2091_v55 = vmul.f32 %v7563_v53, %v7555_v38 }
 0x430   : >> { %v2238_v5 = vpop.permute.xlu1 %2237 }
 0x432   : >> { %v7565_v54 = vpop.eup %7564 }
 0x433   : >> { %v2092_v56 = vmul.f32 %v7565_v54, %v7559_v41  ;;  %v7567_v57 = vpop.eup %7566 }
 0x434   : >> { %v2089_v63 = vmul.f32 %v7567_v57, %v7557_v40 }
 0x435   : >> { %v2094_v58 = vpack.c.bf16 %v2092_v56, %v2091_v55 }
 0x436   : >> { %v7569_v59 = vpop.eup %7568 }
 0x437   : >> { %6952 = vmatmul.mubr.msk.bf16.vlgmr.msra.gmra.mxu0 %vm2048_vm3, %v2094_v58  ;;  %v2090_v0 = vmul.f32 %v7569_v59, %v7561_v44 }
 0x438   : >> { %6962 = vmatpush3.bf16.xpose.msra.mxu0 %v2246_v62  ;;  %6963 = vmatprep.mubr.msk.bf16.mxu0 %vm7897_vm1, %v7896_v33 }
 0x439   : >> { %v2093_v3 = vpack.c.bf16 %v2090_v0, %v2089_v63  ;;  %6973 = vmatprep.subr.bf16.mxu0 %v7896_v33 }
 0x43b   : >> { %6946 = vmatmul.mubr.msk.bf16.vlgmr.msra.gmra.mxu1 %vm2048_vm3, %v2093_v3 }
 0x43c   : >> { %6956 = vmatpush3.bf16.xpose.msra.mxu1 %v2193_v4  ;;  %6957 = vmatprep.mubr.msk.bf16.mxu1 %vm7897_vm1, %v7896_v33 }
 0x43d   : >> { %6967 = vmatprep.subr.bf16.mxu1 %v7896_v33 }
 0x43f   : >> { %6964 = vmatmul.mubr.msk.bf16.vlgmr.msra.gmra.mxu0 %vm1953_vm2, %v2238_v5 }
 0x440   : >> { %6975 = vmatprep.mubr.msk.bf16.mxu0 %vm7897_vm1, %v7896_v33 }
 0x443   : >> { %6958 = vmatmul.mubr.msk.bf16.vlgmr.msra.gmra.mxu1 %vm1953_vm2, %v2185_v2 }
 0x444   : >> { %6969 = vmatprep.mubr.msk.bf16.mxu1 %vm7897_vm1, %v7896_v33 }
 0x4f7   : >> { %v8323_v7 = vpop.f32.mrf.mxu0 }
 0x4f9   : >> { %v6953_v9 = vpop.f32.mrf.mxu0 }
 0x4fb   : >> { %v8325_v10 = vpop.f32.mrf.mxu1  ;;  %v8327_v11 = vpop.f32.mrf.mxu0 }
 0x4fd   : >> { %v6947_v12 = vpop.f32.mrf.mxu1  ;;  %v6954_v13 = vpop.f32.mrf.mxu0 }
 0x4ff   : >> { %v8329_v14 = vpop.f32.mrf.mxu1  ;;  %v2282_v16 = vpop.f32.mrf.mxu0 }
 0x500   : >> { %v2295_v28 = vsel %vm2048_vm3, %v2282_v16, -inf }
 0x501   : >> { %v6948_v17 = vpop.f32.mrf.mxu1  ;;  %v6965_v18 = vpop.f32.mrf.mxu0 }
 0x503   : >> { %v2229_v20 = vpop.f32.mrf.mxu1  ;;  %v2285_v21 = vpop.f32.mrf.mxu0 }
 0x504   : >> { %v2289_v23 = vsel %vm2048_vm3, %v2229_v20, -inf  ;;  %v2298_v31 = vsel %vm2048_vm3, %v2285_v21, -inf }
 0x505   : >> { %v6966_v25 = vpop.f32.mrf.mxu0  ;;  %2290 = vmax.xlane.f32.xlu0 %v2289_v23  ;;  %v6959_v26 = vpop.f32.mrf.mxu1 }
 0x507   : >> { %v2232_v27 = vpop.f32.mrf.mxu1 }
 0x508   : >> { %v2292_v29 = vsel %vm2048_vm3, %v2232_v27, -inf }
 0x509   : >> { %2296 = vmax.xlane.f32.xlu0 %v2295_v28  ;;  %2293 = vmax.xlane.f32.xlu1 %v2292_v29  ;;  %v6960_v30 = vpop.f32.mrf.mxu1 }
 0x50d   : >> { %2299 = vmax.xlane.f32.xlu0 %v2298_v31 }
 0x51a   : >> { %2384 = vrot.lane.b32.xlu1 %v8283_v6, %s7898_s28 }
 0x51e   : >> { %2433 = vrot.lane.b32.xlu1 %v8261_v52, %s7899_s1 }
 0x58e   : >> { %v2291_v32 = vpop.xlane.xlu0 %2290 }
 0x58f   : >> { %v2301_v34 = vsub.f32 %v2229_v20, %v2291_v32 }
 0x591   : >> { %v2305_v38 = vmul.f32 1.442695, %v2301_v34 }
 0x592   : >> { %v2297_v35 = vpop.xlane.xlu0 %2296  ;;  %v2294_v36 = vpop.xlane.xlu1 %2293 }
 0x593   : >> { %v2303_v37 = vsub.f32 %v2282_v16, %v2297_v35  ;;  %v2302_v40 = vsub.f32 %v2232_v27, %v2294_v36 }
 0x595   : >> { %v2309_v39 = vmul.f32 1.442695, %v2303_v37  ;;  %v2307_v44 = vmul.f32 1.442695, %v2302_v40 }
 0x596   : >> { %v2300_v41 = vpop.xlane.xlu0 %2299  ;;  %v2385_v42 = vpop.permute.xlu1 %2384 }
 0x597   : >> { %7570 = vpow2.f32 %v2309_v39  ;;  %v2304_v43 = vsub.f32 %v2285_v21, %v2300_v41  ;;  %6974 = vmatpush3.bf16.msra.mxu0 %v2385_v42 }
 0x598   : >> { %6985 = vmatprep.subr.bf16.mxu0 %v7896_v33  ;;  %7572 = vpow2.f32 %v2305_v38 }
 0x599   : >> { %v2311_v45 = vmul.f32 1.442695, %v2304_v43 }
 0x59a   : >> { %v2434_v56 = vpop.permute.xlu1 %2433 }
 0x59b   : >> { %7574 = vpow2.f32 %v2311_v45  ;;  %v2439_v20 = vsel %vm1953_vm2, %v2434_v56, 0 }
 0x59c   : >> { %7576 = vpow2.f32 %v2307_v44 }
 0x5a4   : >> { %v7571_v46 = vpop.eup %7570 }
 0x5a5   : >> { %v2319_v48 = vsel %vm2048_vm3, %v7571_v46, 0.0  ;;  %v7573_v49 = vpop.eup %7572 }
 0x5a6   : >> { %2320 = vadd.xlane.f32.xlu0 %v2319_v48  ;;  %v2313_v51 = vsel %vm2048_vm3, %v7573_v49, 0.0 }
 0x5a8   : >> { %v7575_v50 = vpop.eup %7574 }
 0x5a9   : >> { %v2322_v53 = vsel %vm2048_vm3, %v7575_v50, 0.0  ;;  %v7577_v54 = vpop.eup %7576 }
 0x5aa   : >> { %2314 = vadd.xlane.f32.xlu0 %v2313_v51  ;;  %2323 = vadd.xlane.f32.xlu1 %v2322_v53  ;;  %v2316_v55 = vsel %vm2048_vm3, %v7577_v54, 0.0 }
 0x5ae   : >> { %2317 = vadd.xlane.f32.xlu1 %v2316_v55 }
 0x5bf   : >> { %2484 = vrot.lane.b32.xlu1 %v8259_v47, %s7899_s1 }
 0x5c0   : >> { %2336 = vrot.lane.b32.xlu0 %v8285_v8, %s7898_s28  ;;  %s9096_s28 = sld [smem:[#allocation7_spill]] }
 0x5c3   : >> { %2482 = vrot.lane.b32.xlu1 %v8269_v60, %s7899_s1 }
 0x5c4   : >> { %2431 = vrot.lane.b32.xlu0 %v8271_v61, %s7899_s1 }
 0x62f   : >> { %v2321_v57 = vpop.xlane.xlu0 %2320 }
 0x630   : >> { %7578 = vrcp.f32 %v2321_v57 }
 0x633   : >> { %v2315_v58 = vpop.xlane.xlu0 %2314  ;;  %v2324_v59 = vpop.xlane.xlu1 %2323 }
 0x634   : >> { %7580 = vrcp.f32 %v2324_v59 }
 0x635   : >> { %7582 = vrcp.f32 %v2315_v58 }
 0x637   : >> { %v2337_v62 = vpop.permute.xlu0 %2336  ;;  %v2318_v63 = vpop.xlane.xlu1 %2317 }
 0x638   : >> { %7584 = vrcp.f32 %v2318_v63  ;;  %6968 = vmatpush3.bf16.msra.mxu1 %v2337_v62 }
 0x639   : >> { %6979 = vmatprep.subr.bf16.mxu1 %v7896_v33 }
 0x63b   : >> { %v2485_v5 = vpop.permute.xlu1 %2484  ;;  %v2432_v23 = vpop.permute.xlu0 %2431 }
 0x63c   : >> { %v2490_v17 = vsel %vm1953_vm2, %v2485_v5, 0 }
 0x63d   : >> { %v7579_v0 = vpop.eup %7578 }
 0x63e   : >> { %v2331_v3 = vmul.f32 %v7579_v0, %v7571_v46 }
 0x63f   : >> { %v2483_v21 = vpop.permute.xlu1 %2482 }
 0x641   : >> { %v7581_v1 = vpop.eup %7580 }
 0x642   : >> { %v7583_v2 = vpop.eup %7582  ;;  %v2332_v4 = vmul.f32 %v7581_v1, %v7575_v50 }
 0x643   : >> { %v2329_v13 = vmul.f32 %v7583_v2, %v7573_v49 }
 0x644   : >> { %v2334_v12 = vpack.c.bf16 %v2332_v4, %v2331_v3 }
 0x645   : >> { %v7585_v9 = vpop.eup %7584 }
 0x646   : >> { %v2330_v16 = vmul.f32 %v7585_v9, %v7577_v54  ;;  %6976 = vmatmul.mubr.msk.bf16.vlgmr.msra.gmra.mxu0 %vm2048_vm3, %v2334_v12 }
 0x647   : >> { %6986 = vmatpush3.bf16.xpose.msra.mxu0 %v2490_v17  ;;  %6987 = vmatprep.mubr.msk.bf16.mxu0 %vm7897_vm1, %v7896_v33 }
 0x648   : >> { %v2333_v18 = vpack.c.bf16 %v2330_v16, %v2329_v13  ;;  %6997 = vmatprep.subr.bf16.mxu0 %v7896_v33 }
 0x64a   : >> { %6970 = vmatmul.mubr.msk.bf16.vlgmr.msra.gmra.mxu1 %vm2048_vm3, %v2333_v18 }
 0x64b   : >> { %6980 = vmatpush3.bf16.xpose.msra.mxu1 %v2439_v20  ;;  %6981 = vmatprep.mubr.msk.bf16.mxu1 %vm7897_vm1, %v7896_v33 }
 0x64c   : >> { %6991 = vmatprep.subr.bf16.mxu1 %v7896_v33 }
 0x64e   : >> { %6988 = vmatmul.mubr.msk.bf16.vlgmr.msra.gmra.mxu0 %vm1953_vm2, %v2483_v21 }
 0x64f   : >> { %6999 = vmatprep.mubr.msk.bf16.mxu0 %vm7897_vm1, %v7896_v33 }
 0x652   : >> { %6982 = vmatmul.mubr.msk.bf16.vlgmr.msra.gmra.mxu1 %vm1953_vm2, %v2432_v23 }
 0x653   : >> { %6993 = vmatprep.mubr.msk.bf16.mxu1 %vm7897_vm1, %v7896_v33 }
 0x706   : >> { %v8369_v25 = vpop.f32.mrf.mxu0 }
 0x708   : >> { %v6977_v26 = vpop.f32.mrf.mxu0 }
 0x70a   : >> { %v8371_v27 = vpop.f32.mrf.mxu1  ;;  %v8373_v28 = vpop.f32.mrf.mxu0 }
 0x70b   : >> { %v7515_v29 = vpack.i.bf16 %v8373_v28, %v8369_v25 }
 0x70c   : >> { %v6971_v30 = vpop.f32.mrf.mxu1  ;;  %v6978_v31 = vpop.f32.mrf.mxu0 }
 0x70e   : >> { %v8377_v32 = vpop.f32.mrf.mxu1  ;;  %v2526_v35 = vpop.f32.mrf.mxu0 }
 0x70f   : >> { %v7510_v34 = vpack.i.bf16 %v8377_v32, %v8371_v27  ;;  %v2539_v44 = vsel %vm2048_vm3, %v2526_v35, -inf }
 0x710   : >> { %v6972_v36 = vpop.f32.mrf.mxu1  ;;  %v6989_v37 = vpop.f32.mrf.mxu0 }
 0x712   : >> { %v2475_v38 = vpop.f32.mrf.mxu1  ;;  %v2529_v39 = vpop.f32.mrf.mxu0 }
 0x713   : >> { %v2533_v40 = vsel %vm2048_vm3, %v2475_v38, -inf  ;;  %v2542_v48 = vsel %vm2048_vm3, %v2529_v39, -inf }
 0x714   : >> { %2534 = vmax.xlane.f32.xlu0 %v2533_v40  ;;  %v6983_v41 = vpop.f32.mrf.mxu1  ;;  %v6990_v42 = vpop.f32.mrf.mxu0 }
 0x716   : >> { %v2478_v43 = vpop.f32.mrf.mxu1 }
 0x717   : >> { %v2536_v45 = vsel %vm2048_vm3, %v2478_v43, -inf }
 0x718   : >> { %2540 = vmax.xlane.f32.xlu0 %v2539_v44  ;;  %2537 = vmax.xlane.f32.xlu1 %v2536_v45  ;;  %v6984_v46 = vpop.f32.mrf.mxu1 }
 0x71c   : >> { %2543 = vmax.xlane.f32.xlu0 %v2542_v48 }
 0x729   : >> { %2626 = vrot.lane.b32.xlu1 %v8283_v6, %s7899_s1 }
 0x72d   : >> { %2675 = vrot.lane.b32.xlu1 %v8261_v52, %s7900_s15 }
 0x79d   : >> { %v2535_v49 = vpop.xlane.xlu0 %2534 }
 0x79e   : >> { %v2545_v50 = vsub.f32 %v2475_v38, %v2535_v49 }
 0x7a0   : >> { %v2549_v55 = vmul.f32 1.442695, %v2545_v50 }
 0x7a1   : >> { %v2541_v51 = vpop.xlane.xlu0 %2540  ;;  %v2538_v53 = vpop.xlane.xlu1 %2537 }
 0x7a2   : >> { %v2547_v54 = vsub.f32 %v2526_v35, %v2541_v51  ;;  %v2546_v57 = vsub.f32 %v2478_v43, %v2538_v53 }
 0x7a4   : >> { %v2553_v56 = vmul.f32 1.442695, %v2547_v54  ;;  %v2551_v63 = vmul.f32 1.442695, %v2546_v57 }
 0x7a5   : >> { %v2544_v58 = vpop.xlane.xlu0 %2543  ;;  %v2627_v59 = vpop.permute.xlu1 %2626 }
 0x7a6   : >> { %7586 = vpow2.f32 %v2553_v56  ;;  %v2548_v62 = vsub.f32 %v2529_v39, %v2544_v58  ;;  %6998 = vmatpush3.bf16.msra.mxu0 %v2627_v59 }
 0x7a7   : >> { %7009 = vmatprep.subr.bf16.mxu0 %v7896_v33  ;;  %7588 = vpow2.f32 %v2549_v55 }
 0x7a8   : >> { %v2555_v0 = vmul.f32 1.442695, %v2548_v62 }
 0x7a9   : >> { %v2676_v13 = vpop.permute.xlu1 %2675 }
 0x7aa   : >> { %7590 = vpow2.f32 %v2555_v0  ;;  %v2681_v40 = vsel %vm1953_vm2, %v2676_v13, 0 }
 0x7ab   : >> { %7592 = vpow2.f32 %v2551_v63 }
 0x7b3   : >> { %v7587_v52 = vpop.eup %7586 }
 0x7b4   : >> { %v2563_v1 = vsel %vm2048_vm3, %v7587_v52, 0.0  ;;  %v7589_v2 = vpop.eup %7588 }
 0x7b5   : >> { %2564 = vadd.xlane.f32.xlu0 %v2563_v1  ;;  %v2557_v4 = vsel %vm2048_vm3, %v7589_v2, 0.0 }
 0x7b7   : >> { %v7591_v3 = vpop.eup %7590 }
 0x7b8   : >> { %v2566_v5 = vsel %vm2048_vm3, %v7591_v3, 0.0  ;;  %v7593_v9 = vpop.eup %7592 }
 0x7b9   : >> { %2558 = vadd.xlane.f32.xlu0 %v2557_v4  ;;  %2567 = vadd.xlane.f32.xlu1 %v2566_v5  ;;  %v2560_v12 = vsel %vm2048_vm3, %v7593_v9, 0.0 }
 0x7bd   : >> { %2561 = vadd.xlane.f32.xlu1 %v2560_v12 }
 0x7ce   : >> { %2726 = vrot.lane.b32.xlu1 %v8259_v47, %s7900_s15 }
 0x7cf   : >> { %2579 = vrot.lane.b32.xlu0 %v8285_v8, %s7899_s1  ;;  %s3135_s1 = scalar_lea.vmem %s8007_s4, %s8231_s11  ;;  %s9098_s11 = sld [smem:[#allocation10_spill]] }
 0x7d2   : >> { %2724 = vrot.lane.b32.xlu1 %v8269_v60, %s7900_s15 }
 0x7d3   : >> { %2673 = vrot.lane.b32.xlu0 %v8271_v61, %s7900_s15 }
 0x83e   : >> { %v2565_v16 = vpop.xlane.xlu0 %2564 }
 0x83f   : >> { %7594 = vrcp.f32 %v2565_v16 }
 0x842   : >> { %v2559_v17 = vpop.xlane.xlu0 %2558  ;;  %v2568_v18 = vpop.xlane.xlu1 %2567 }
 0x843   : >> { %7596 = vrcp.f32 %v2568_v18 }
 0x844   : >> { %7598 = vrcp.f32 %v2559_v17 }
 0x846   : >> { %v2580_v20 = vpop.permute.xlu0 %2579  ;;  %v2562_v21 = vpop.xlane.xlu1 %2561 }
 0x847   : >> { %7600 = vrcp.f32 %v2562_v21  ;;  %6992 = vmatpush3.bf16.msra.mxu1 %v2580_v20 }
 0x848   : >> { %7003 = vmatprep.subr.bf16.mxu1 %v7896_v33 }
 0x84a   : >> { %v2727_v31 = vpop.permute.xlu1 %2726  ;;  %v2674_v42 = vpop.permute.xlu0 %2673 }
 0x84b   : >> { %v2732_v38 = vsel %vm1953_vm2, %v2727_v31, 0 }
 0x84c   : >> { %v7595_v47 = vpop.eup %7594 }
 0x84d   : >> { %v2575_v60 = vmul.f32 %v7595_v47, %v7587_v52 }
 0x84e   : >> { %v2725_v41 = vpop.permute.xlu1 %2724 }
 0x850   : >> { %v7597_v23 = vpop.eup %7596 }
 0x851   : >> { %v7599_v26 = vpop.eup %7598  ;;  %v2576_v30 = vmul.f32 %v7597_v23, %v7591_v3 }
 0x852   : >> { %v2573_v36 = vmul.f32 %v7599_v26, %v7589_v2 }
 0x853   : >> { %v2578_v35 = vpack.c.bf16 %v2576_v30, %v2575_v60 }
 0x854   : >> { %v7601_v61 = vpop.eup %7600 }
 0x855   : >> { %v2574_v37 = vmul.f32 %v7601_v61, %v7593_v9  ;;  %7000 = vmatmul.mubr.msk.bf16.vlgmr.msra.gmra.mxu0 %vm2048_vm3, %v2578_v35 }
 0x856   : >> { %7010 = vmatpush3.bf16.xpose.msra.mxu0 %v2732_v38  ;;  %7011 = vmatprep.mubr.msk.bf16.mxu0 %vm7897_vm1, %v7896_v33 }
 0x857   : >> { %v2577_v39 = vpack.c.bf16 %v2574_v37, %v2573_v36  ;;  %7021 = vmatprep.subr.bf16.mxu0 %v7896_v33 }
 0x859   : >> { %6994 = vmatmul.mubr.msk.bf16.vlgmr.msra.gmra.mxu1 %vm2048_vm3, %v2577_v39 }
 0x85a   : >> { %7004 = vmatpush3.bf16.xpose.msra.mxu1 %v2681_v40  ;;  %7005 = vmatprep.mubr.msk.bf16.mxu1 %vm7897_vm1, %v7896_v33 }
 0x85b   : >> { %7015 = vmatprep.subr.bf16.mxu1 %v7896_v33 }
 0x85d   : >> { %7012 = vmatmul.mubr.msk.bf16.vlgmr.msra.gmra.mxu0 %vm1953_vm2, %v2725_v41 }
 0x85e   : >> { %7023 = vmatprep.mubr.msk.bf16.mxu0 %vm7897_vm1, %v7896_v33 }
 0x861   : >> { %7006 = vmatmul.mubr.msk.bf16.vlgmr.msra.gmra.mxu1 %vm1953_vm2, %v2674_v42 }
 0x862   : >> { %7017 = vmatprep.mubr.msk.bf16.mxu1 %vm7897_vm1, %v7896_v33 }
 0x915   : >> { %v2666_v43 = vpop.f32.mrf.mxu0 }
 0x917   : >> { %v7001_v44 = vpop.f32.mrf.mxu0 }
 0x919   : >> { %v2619_v45 = vpop.f32.mrf.mxu1  ;;  %v2669_v46 = vpop.f32.mrf.mxu0 }
 0x91a   : >> { %v7525_v48 = vpack.i.bf16 %v2669_v46, %v2666_v43  ;;  %v7547_v46 = vld [vmem:[%s1940_s23] sm:$0xff]  }
 0x91b   : >> { %v6995_v49 = vpop.f32.mrf.mxu1  ;;  %v7002_v50 = vpop.f32.mrf.mxu0 }
 0x91d   : >> { %v2622_v51 = vpop.f32.mrf.mxu1  ;;  %v2768_v54 = vpop.f32.mrf.mxu0 }
 0x91e   : >> { %v7520_v53 = vpack.i.bf16 %v2622_v51, %v2619_v45  ;;  %v2781_v0 = vsel %vm2048_vm3, %v2768_v54, -inf  ;;  %v7546_v45 = vld [vmem:[%s1940_s23 + $0x8] sm:$0xff]  }
 0x91f   : >> { %v6996_v55 = vpop.f32.mrf.mxu1  ;;  %v7013_v56 = vpop.f32.mrf.mxu0 }
 0x921   : >> { %v2717_v57 = vpop.f32.mrf.mxu1  ;;  %v2771_v58 = vpop.f32.mrf.mxu0 }
 0x922   : >> { %v2775_v59 = vsel %vm2048_vm3, %v2717_v57, -inf  ;;  %v2784_v2 = vsel %vm2048_vm3, %v2771_v58, -inf }
 0x923   : >> { %2776 = vmax.xlane.f32.xlu0 %v2775_v59  ;;  %v7007_v62 = vpop.f32.mrf.mxu1  ;;  %v7014_v63 = vpop.f32.mrf.mxu0 }
 0x925   : >> { %v2720_v33 = vpop.f32.mrf.mxu1 }
 0x926   : >> { %v2778_v52 = vsel %vm2048_vm3, %v2720_v33, -inf }
 0x927   : >> { %2782 = vmax.xlane.f32.xlu0 %v2781_v0  ;;  %2779 = vmax.xlane.f32.xlu1 %v2778_v52  ;;  %v7008_v1 = vpop.f32.mrf.mxu1 }
 0x92b   : >> { %2785 = vmax.xlane.f32.xlu0 %v2784_v2 }
 0x9ac   : >> { %v2777_v3 = vpop.xlane.xlu0 %2776 }
 0x9ad   : >> { %v2787_v4 = vsub.f32 %v2717_v57, %v2777_v3 }
 0x9af   : >> { %v2791_v13 = vmul.f32 1.442695, %v2787_v4 }
 0x9b0   : >> { %v2783_v5 = vpop.xlane.xlu0 %2782  ;;  %v2780_v9 = vpop.xlane.xlu1 %2779 }
 0x9b1   : >> { %v2789_v12 = vsub.f32 %v2768_v54, %v2783_v5  ;;  %v2788_v17 = vsub.f32 %v2720_v33, %v2780_v9 }
 0x9b3   : >> { %v2795_v16 = vmul.f32 1.442695, %v2789_v12  ;;  %v2793_v21 = vmul.f32 1.442695, %v2788_v17 }
 0x9b4   : >> { %v2786_v18 = vpop.xlane.xlu0 %2785 }
 0x9b5   : >> { %7602 = vpow2.f32 %v2795_v16  ;;  %v2790_v20 = vsub.f32 %v2771_v58, %v2786_v18 }
 0x9b6   : >> { %7604 = vpow2.f32 %v2791_v13 }
 0x9b7   : >> { %v2797_v47 = vmul.f32 1.442695, %v2790_v20 }
 0x9b9   : >> { %7606 = vpow2.f32 %v2797_v47 }
 0x9ba   : >> { %7608 = vpow2.f32 %v2793_v21 }
 0x9c2   : >> { %v7603_v23 = vpop.eup %7602 }
 0x9c3   : >> { %v2805_v26 = vsel %vm2048_vm3, %v7603_v23, 0.0  ;;  %v7605_v60 = vpop.eup %7604 }
 0x9c4   : >> { %2806 = vadd.xlane.f32.xlu0 %v2805_v26  ;;  %v2799_v31 = vsel %vm2048_vm3, %v7605_v60, 0.0 }
 0x9c6   : >> { %v7607_v30 = vpop.eup %7606 }
 0x9c7   : >> { %v2808_v61 = vsel %vm2048_vm3, %v7607_v30, 0.0  ;;  %v7609_v35 = vpop.eup %7608 }
 0x9c8   : >> { %2800 = vadd.xlane.f32.xlu0 %v2799_v31  ;;  %2809 = vadd.xlane.f32.xlu1 %v2808_v61  ;;  %v2802_v36 = vsel %vm2048_vm3, %v7609_v35, 0.0 }
 0x9cc   : >> { %2803 = vadd.xlane.f32.xlu1 %v2802_v36 }
 0x9dd   : >> { %2868 = vrot.lane.b32.xlu1 %v8283_v6, %s7900_s15 }
 0x9de   : >> { %2821 = vrot.lane.b32.xlu0 %v8285_v8, %s7900_s15  ;;  %s6698_s15 = sshll.u32 %s7831_s10, 5 }
 0x9e1   : >> { %7511 = vrot.lane.b32.xlu1 %v7510_v34, %s7901_s16 }
 0x9e2   : >> { %7521 = vrot.lane.b32.xlu0 %v7520_v53, %s7902_s18 }
 0x9e5   : >> { %7516 = vrot.lane.b32.xlu1 %v7515_v29, %s7901_s16  ;;  %s8477_s16 = scalar_lea.vmem %s9096_s28, %s6698_s15 }
 0x9e9   : >> { %7526 = vrot.lane.b32.xlu1 %v7525_v48, %s7902_s18  ;;  %s9097_s18 = sld [smem:[#allocation9_spill]] }
 0x9ef   : >> { %s3055_s23 = scalar_lea.vmem %s9097_s18, %s7831_s10  ;;  %s9102_s18 = sld [smem:[#allocation12_spill]] }
 0xa4d   : >> { %v2807_v37 = vpop.xlane.xlu0 %2806 }
 0xa4e   : >> { %7610 = vrcp.f32 %v2807_v37 }
 0xa51   : >> { %v2801_v38 = vpop.xlane.xlu0 %2800  ;;  %v2810_v39 = vpop.xlane.xlu1 %2809 }
 0xa52   : >> { %7612 = vrcp.f32 %v2810_v39 }
 0xa53   : >> { %7614 = vrcp.f32 %v2801_v38  ;;  %v6558_v38 = vld [vmem:[%s1945_s26] ss:$0 sm:$0xff]  ;;  %s9099_s26 = sld [smem:[#allocation6_spill]] }
 0xa55   : >> { %v2822_v6 = vpop.permute.xlu0 %2821  ;;  %v2804_v8 = vpop.xlane.xlu1 %2803 }
 0xa56   : >> { %7616 = vrcp.f32 %v2804_v8  ;;  %7016 = vmatpush3.bf16.msra.mxu1 %v2822_v6 }
 0xa57   : >> { %7027 = vmatprep.subr.bf16.mxu1 %v7546_v45 }
 0xa59   : >> { %v2869_v27 = vpop.permute.xlu1 %2868  ;;  %v7522_v52 = vpop.permute.xlu0 %7521  ;;  %s3140_s28 = scalar_lea.vmem %s9099_s26, %s7831_s10 }
 0xa5a   : >> { %7022 = vmatpush3.bf16.msra.mxu0 %v2869_v27  ;;  %v7524_v17 = vunpack.i.h.bf16 %v7522_v52  ;;  %v7523_v18 = vunpack.i.l.bf16 %v7522_v52  ;;  %v7548_v52 = vld [vmem:[%s3135_s1 + $0x8] sm:$0xff]  }
 0xa5b   : >> { %v7611_v32 = vpop.eup %7610  ;;  %7035 = vmatprep.subr.bf16.mxu0 %v7548_v52 }
 0xa5c   : >> { %v2817_v25 = vmul.f32 %v7611_v32, %v7603_v23 }
 0xa5d   : >> { %v7512_v59 = vpop.permute.xlu1 %7511 }
 0xa5e   : >> { %v7514_v33 = vunpack.i.h.bf16 %v7512_v59  ;;  %v7513_v0 = vunpack.i.l.bf16 %v7512_v59 }
 0xa5f   : >> { %v7613_v34 = vpop.eup %7612 }
 0xa60   : >> { %v7615_v40 = vpop.eup %7614  ;;  %v2818_v28 = vmul.f32 %v7613_v34, %v7607_v30  ;;  %v2964_v13 = vsel %vm1953_vm2, %v8329_v14, %v7514_v33  ;;  %v2963_v16 = vsel %vm1953_vm2, %v8325_v10, %v7513_v0 }
 0xa61   : >> { %v2815_v42 = vmul.f32 %v7615_v40, %v7605_v60  ;;  %v7517_v62 = vpop.permute.xlu1 %7516  ;;  %v2967_v31 = vsel %vm2048_vm3, %v2963_v16, %v7523_v18 }
 0xa62   : >> { %v2820_v41 = vpack.c.bf16 %v2818_v28, %v2817_v25  ;;  %v7519_v1 = vunpack.i.h.bf16 %v7517_v62  ;;  %v7518_v2 = vunpack.i.l.bf16 %v7517_v62 }
 0xa63   : >> { %v7617_v29 = vpop.eup %7616 }
 0xa64   : >> { %v2816_v43 = vmul.f32 %v7617_v29, %v7609_v35  ;;  %7024 = vmatmul.mubr.msk.bf16.vlgmr.msra.gmra.mxu0 %vm2048_vm3, %v2820_v41  ;;  %v2966_v20 = vsel %vm1953_vm2, %v8327_v11, %v7519_v1  ;;  %v2965_v21 = vsel %vm1953_vm2, %v8323_v7, %v7518_v2  ;;  %v2968_v11 = vsel %vm2048_vm3, %v2964_v13, %v7524_v17  ;;  %v7549_v1 = vld [vmem:[%s3135_s1] sm:$0xff]   ;;  %v7550_v2 = vld [vmem:[%s8477_s16 + $0x18] sm:$0xff]   ;;  %s9100_s1 = sld [smem:[#allocation8_spill]] }
 0xa65   : >> { %v7527_v63 = vpop.permute.xlu1 %7526  ;;  %7036 = vmatpush3.bf16.msra.mxu0 %v7548_v52 }
 0xa66   : >> { %v2819_v44 = vpack.c.bf16 %v2816_v43, %v2815_v42  ;;  %v7529_v3 = vunpack.i.h.bf16 %v7527_v63  ;;  %v7528_v4 = vunpack.i.l.bf16 %v7527_v63  ;;  %7037 = vmatprep.subr.bf16.mxu0 %v7549_v1 }
 0xa68   : >> { %7018 = vmatmul.mubr.msk.bf16.vlgmr.msra.gmra.mxu1 %vm2048_vm3, %v2819_v44  ;;  %v2969_v23 = vsel %vm2048_vm3, %v2965_v21, %v7528_v4  ;;  %v2970_v26 = vsel %vm2048_vm3, %v2966_v20, %v7529_v3 }
 0xa69   : >> { %7028 = vmatpush3.bf16.msra.mxu1 %v7546_v45  ;;  %7038 = vmatpush3.bf16.msra.mxu0 %v7549_v1 }
 0xa6a   : >> { %7029 = vmatprep.subr.bf16.mxu1 %v7547_v46  ;;  %s3232_s15 = scalar_lea.vmem %s9100_s1, %s7831_s10 }
 0xa6d   : >> { %7030 = vmatpush3.bf16.msra.mxu1 %v7547_v46 }
 0xa6e   : >> { %7043 = vmatprep.subr.bf16.mxu1 %v7550_v2 }
 0xb24   : >> { %v2908_v48 = vpop.f32.mrf.mxu0 }
 0xb26   : >> { %v7025_v49 = vpop.f32.mrf.mxu0 }
 0xb28   : >> { %v2861_v50 = vpop.f32.mrf.mxu1  ;;  %v2911_v51 = vpop.f32.mrf.mxu0 }
 0xb29   : >> { %v7535_v53 = vpack.i.bf16 %v2911_v51, %v2908_v48 }
 0xb2a   : >> { %v7019_v54 = vpop.f32.mrf.mxu1  ;;  %v7026_v55 = vpop.f32.mrf.mxu0 }
 0xb2b   : >> { %7536 = vrot.lane.b32.xlu1 %v7535_v53, %s7903_s0 }
 0xb2c   : >> { %v2864_v56 = vpop.f32.mrf.mxu1 }
 0xb2d   : >> { %v7530_v57 = vpack.i.bf16 %v2864_v56, %v2861_v50 }
 0xb2e   : >> { %v7020_v58 = vpop.f32.mrf.mxu1 }
 0xb2f   : >> { %7531 = vrot.lane.b32.xlu0 %v7530_v57, %s7903_s0  ;;  %s3057_s0 = scalar_lea.vmem %s9098_s11, %s7831_s10 }
 0xb9d   : >> { %v7537_v5 = vpop.permute.xlu1 %7536 }
 0xb9e   : >> { %v7539_v9 = vunpack.i.h.bf16 %v7537_v5  ;;  %v7538_v12 = vunpack.i.l.bf16 %v7537_v5 }
 0xba0   : >> { %v2974_v10 = vsel %vm2971_vm4, %v2969_v23, %v7538_v12  ;;  %v2975_v30 = vsel %vm2971_vm4, %v2970_v26, %v7539_v9 }
 0xba1   : >> { %v7532_v47 = vpop.permute.xlu0 %7531  ;;  %v2977_v36 = vpack.c.bf16 %v2975_v30, %v2974_v10 }
 0xba2   : >> { %v7534_v14 = vunpack.i.h.bf16 %v7532_v47  ;;  %v7533_v60 = vunpack.i.l.bf16 %v7532_v47 }
 0xba4   : >> { %v2973_v61 = vsel %vm2971_vm4, %v2968_v11, %v7534_v14  ;;  %v2972_v7 = vsel %vm2971_vm4, %v2967_v31, %v7533_v60  ;;  %v6563_v14 = vld [vmem:[%s3055_s23] ss:$0 sm:$0xff]  ;;  %s3326_s23 = scalar_lea.vmem %s9102_s18, %s7831_s10 }
 0xba5   : >> { %v2976_v35 = vpack.c.bf16 %v2973_v61, %v2972_v7  ;;  %v6564_v61 = vld [vmem:[%s3057_s0] ss:$0 sm:$0xff] }
 0xba7   : >> { %7031 = vmatprep.mubr.msk.bf16.mxu1 %vm1729_vm0, %v2976_v35 }
 0xba8   : >> { %7032 = vmatmul.mubr.msk.bf16.vlgmr.msra.gmra.mxu1 %vm1729_vm0, %v2977_v36 }
 0xba9   : >> { %7044 = vmatpush3.bf16.msra.mxu1 %v7550_v2 }
 0xc68   : >> { %v7033_v37 = vpop.f32.mrf.mxu1 }
 0xc69   : >> { %v3045_v6 = vadd.f32 %v7033_v37, %v6558_v38 }
 0xc6a   : >> { %v3036_v39 = vpop.f32.mrf.mxu1 }
 0xc6b   : >> { %v3037_v8 = vadd.f32 %v6558_v38, %v3036_v39  ;;  %v3053_v29 = vadd.f32 %v7819_v15, %v3045_v6 }
 0xc6c   : >> { %v7034_v27 = vpop.f32.mrf.mxu1 }
 0xc6d   : >> { %v3051_v32 = vadd.f32 %v7827_v19, %v3037_v8  ;;  %v3048_v40 = vadd.f32 %v7034_v27, %v6558_v38  ;;  %v3065_v43 = vsel %vm1729_vm0, %v3053_v29, 0.0 }
 0xc6e   : >> { %v3039_v34 = vpop.f32.mrf.mxu1 }
 0xc6f   : >> { %v3040_v25 = vadd.f32 %v6558_v38, %v3039_v34  ;;  %v3059_v28 = vsel %vm1729_vm0, %v3051_v32, 0.0  ;;  %v3054_v44 = vadd.f32 %v7815_v22, %v3048_v40  ;;  %v7551_v40 = vld [vmem:[%s8477_s16 + $0x10] sm:$0xff]  }
 0xc70   : >> { %3060 = vadd.xlane.f32.xlu0 %v3059_v28  ;;  %7045 = vmatprep.subr.bf16.mxu1 %v7551_v40  ;;  %v7553_v28 = vld [vmem:[%s8477_s16] sm:$0xff]  }
 0xc71   : >> { %v3052_v41 = vadd.f32 %v7823_v24, %v3040_v25  ;;  %v3068_v19 = vsel %vm1729_vm0, %v3054_v44, 0.0  ;;  %7046 = vmatpush3.bf16.msra.mxu1 %v7551_v40  ;;  %v7552_v25 = vld [vmem:[%s8477_s16 + $0x8] sm:$0xff]   ;;  %s9101_s16 = sld [smem:[#allocation11_spill]] }
 0xc72   : >> { %7047 = vmatprep.subr.bf16.mxu1 %v7552_v25 }
 0xc73   : >> { %v3062_v42 = vsel %vm1729_vm0, %v3052_v41, 0.0 }
 0xc74   : >> { %3063 = vadd.xlane.f32.xlu1 %v3062_v42  ;;  %3066 = vadd.xlane.f32.xlu0 %v3065_v43  ;;  %v6566_v42 = vld [vmem:[%s3140_s28] ss:$0 sm:$0xff] }
 0xc75   : >> { %7048 = vmatpush3.bf16.msra.mxu1 %v7552_v25 }
 0xc76   : >> { %7049 = vmatprep.subr.bf16.mxu1 %v7553_v28 }
 0xc77   : >> { %s3324_s11 = scalar_lea.vmem %s9101_s16, %s7831_s10  ;;  %s1695_s10 = sadd.s32 1, %s7831_s10  }
 0xc78   : >> { %3069 = vadd.xlane.f32.xlu0 %v3068_v19  ;;  %p1692_p4 = scmp.ge.s32.totalorder %s1695_s10, 2  }
 0xc79   : >> { %7050 = vmatpush3.bf16.msra.mxu1 %v7553_v28  ;;  %s9107_s0 = sld [smem:[#allocation2_spill]] (%p1692_p4)  ;;  %vm7905_vm6 = vmmov (%p1692_p4), 0   ;;  %s8546_s26 = smov (%p1692_p4), 0  }
 0xc7a   : > { %s9108_s10 = sld [smem:[#allocation3_spill]] (%p1692_p4) }
 0xcf9   : >> { %v3061_v45 = vpop.xlane.xlu0 %3060 }
 0xcfa   : >> { %v3072_v46 = vmul.f32 0.03125, %v3061_v45 }
 0xcfc   : >> { %v3076_v48 = vsub.f32 %v3051_v32, %v3072_v46 }
 0xcfd   : >> { %v3064_v49 = vpop.xlane.xlu1 %3063  ;;  %v3067_v50 = vpop.xlane.xlu0 %3066 }
 0xcfe   : >> { %v3073_v15 = vmul.f32 0.03125, %v3064_v49  ;;  %v3074_v51 = vmul.f32 0.03125, %v3067_v50  ;;  %v3080_v53 = vmul.f32 %v3076_v48, %v3076_v48 }
 0xd00   : >> { %v3077_v24 = vsub.f32 %v3052_v41, %v3073_v15  ;;  %v3078_v54 = vsub.f32 %v3053_v29, %v3074_v51  ;;  %v3084_v55 = vsel %vm1729_vm0, %v3080_v53, 0.0 }
 0xd01   : >> { %3085 = vadd.xlane.f32.xlu0 %v3084_v55  ;;  %v3070_v22 = vpop.xlane.xlu0 %3069  ;;  %v6573_v55 = vld [vmem:[%s3232_s15] ss:$0 sm:$0xff] }
 0xd02   : >> { %v3075_v56 = vmul.f32 0.03125, %v3070_v22  ;;  %v3081_v57 = vmul.f32 %v3077_v24, %v3077_v24  ;;  %v3082_v58 = vmul.f32 %v3078_v54, %v3078_v54 }
 0xd04   : >> { %v3079_v59 = vsub.f32 %v3054_v44, %v3075_v56  ;;  %v3087_v62 = vsel %vm1729_vm0, %v3081_v57, 0.0  ;;  %v3090_v63 = vsel %vm1729_vm0, %v3082_v58, 0.0 }
 0xd05   : >> { %3088 = vadd.xlane.f32.xlu1 %v3087_v62  ;;  %3091 = vadd.xlane.f32.xlu0 %v3090_v63 }
 0xd06   : >> { %v3083_v33 = vmul.f32 %v3079_v59, %v3079_v59 }
 0xd08   : >> { %v3093_v0 = vsel %vm1729_vm0, %v3083_v33, 0.0 }
 0xd09   : >> { %3094 = vadd.xlane.f32.xlu1 %v3093_v0 }
 0xd8a   : >> { %v3086_v3 = vpop.xlane.xlu0 %3085 }
 0xd8b   : >> { %v3096_v4 = vmul.f32 0.03125, %v3086_v3 }
 0xd8d   : >> { %v3100_v5 = vadd.f32 1e-05, %v3096_v4 }
 0xd8e   : >> { %v3089_v9 = vpop.xlane.xlu1 %3088  ;;  %v3092_v12 = vpop.xlane.xlu0 %3091 }
 0xd8f   : >> { %7618 = vrsqrt.f32 %v3100_v5  ;;  %v3097_v13 = vmul.f32 0.03125, %v3089_v9  ;;  %v3098_v16 = vmul.f32 0.03125, %v3092_v12 }
 0xd91   : >> { %v3101_v17 = vadd.f32 1e-05, %v3097_v13  ;;  %v3102_v18 = vadd.f32 1e-05, %v3098_v16 }
 0xd92   : >> { %v3095_v20 = vpop.xlane.xlu1 %3094 }
 0xd93   : >> { %7620 = vrsqrt.f32 %v3101_v17  ;;  %v3099_v21 = vmul.f32 0.03125, %v3095_v20 }
 0xd94   : >> { %7622 = vrsqrt.f32 %v3102_v18 }
 0xd95   : >> { %v3103_v47 = vadd.f32 1e-05, %v3099_v21 }
 0xd97   : >> { %7624 = vrsqrt.f32 %v3103_v47 }
 0xd9c   : >> { %v7619_v23 = vpop.eup %7618 }
 0xd9d   : >> { %v3108_v26 = vmul.f32 %v7619_v23, %v3076_v48 }
 0xd9f   : >> { %v3118_v31 = vmul.f32 %v6563_v14, %v3108_v26 }
 0xda0   : >> { %v7621_v60 = vpop.eup %7620 }
 0xda1   : >> { %v7623_v10 = vpop.eup %7622  ;;  %v3109_v30 = vmul.f32 %v7621_v60, %v3077_v24  ;;  %v3128_v37 = vadd.f32 %v6564_v61, %v3118_v31 }
 0xda2   : >> { %v3110_v11 = vmul.f32 %v7623_v10, %v3078_v54 }
 0xda3   : >> { %v3119_v7 = vmul.f32 %v6563_v14, %v3109_v30 }
 0xda4   : >> { %v7625_v35 = vpop.eup %7624  ;;  %v3120_v39 = vmul.f32 %v6563_v14, %v3110_v11 }
 0xda5   : >> { %v3111_v36 = vmul.f32 %v7625_v35, %v3079_v59  ;;  %v3129_v38 = vadd.f32 %v6564_v61, %v3119_v7 }
 0xda6   : >> { %v3130_v27 = vadd.f32 %v6564_v61, %v3120_v39 }
 0xda7   : >> { %v3132_v6 = vpack.c.bf16 %v3129_v38, %v3128_v37  ;;  %v3121_v8 = vmul.f32 %v6563_v14, %v3111_v36 }
 0xda9   : >> { %7039 = vmatprep.mubr.msk.bf16.mxu0 %vm1729_vm0, %v3132_v6  ;;  %v3131_v32 = vadd.f32 %v6564_v61, %v3121_v8 }
 0xdab   : >> { %v3133_v34 = vpack.c.bf16 %v3131_v32, %v3130_v27 }
 0xdad   : >> { %7040 = vmatmul.mubr.msk.bf16.vlgmr.msra.gmra.mxu0 %vm1729_vm0, %v3133_v34 }
 0xe6d   : >> { %v7041_v29 = vpop.f32.mrf.mxu0 }
 0xe6e   : >> { %v3209_v45 = vadd.f32 %v7041_v29, %v6566_v42 }
 0xe6f   : >> { %v3200_v41 = vpop.f32.mrf.mxu0 }
 0xe70   : >> { %v3201_v44 = vadd.f32 %v6566_v42, %v3200_v41  ;;  %v3217_v51 = vmax.f32 %v3209_v45, 0.0  ;;  %v6580_v41 = vld [vmem:[%s3324_s11] ss:$0 sm:$0xff] }
 0xe71   : >> { %v7042_v43 = vpop.f32.mrf.mxu0 }
 0xe72   : >> { %v3212_v19 = vadd.f32 %v7042_v43, %v6566_v42  ;;  %v3215_v50 = vmax.f32 %v3201_v44, 0.0  ;;  %v6581_v43 = vld [vmem:[%s3326_s23] ss:$0 sm:$0xff] }
 0xe73   : >> { %v3203_v46 = vpop.f32.mrf.mxu0 }
 0xe74   : >> { %v3204_v48 = vadd.f32 %v6566_v42, %v3203_v46  ;;  %v3218_v49 = vmax.f32 %v3212_v19, 0.0 }
 0xe76   : >> { %v3216_v15 = vmax.f32 %v3204_v48, 0.0  ;;  %v3220_v24 = vpack.c.bf16 %v3218_v49, %v3217_v51 }
 0xe78   : >> { %v3219_v53 = vpack.c.bf16 %v3216_v15, %v3215_v50 }
 0xe7a   : >> { %7051 = vmatprep.mubr.msk.bf16.mxu1 %vm3264_vm5, %v3219_v53 }
 0xe7b   : >> { %7052 = vmatmul.mubr.msk.bf16.vlgmr.msra.gmra.mxu1 %vm3264_vm5, %v3220_v24 }
 0xf3b   : >> { %v7053_v54 = vpop.f32.mrf.mxu1 }
 0xf3c   : >> { %v3314_v56 = vadd.f32 %v7053_v54, %v6573_v55 }
 0xf3d   : >> { %v3305_v22 = vpop.f32.mrf.mxu1 }
 0xf3e   : >> { %v3306_v57 = vadd.f32 %v6573_v55, %v3305_v22  ;;  %v3322_v52 = vadd.f32 %v3314_v56, %v3130_v27 }
 0xf3f   : >> { %v7054_v58 = vpop.f32.mrf.mxu1 }
 0xf40   : >> { %v3320_v59 = vadd.f32 %v3306_v57, %v3128_v37  ;;  %v3317_v63 = vadd.f32 %v7054_v58, %v6573_v55  ;;  %v3334_v3 = vsel %vm1729_vm0, %v3322_v52, 0.0 }
 0xf41   : >> { %v3308_v62 = vpop.f32.mrf.mxu1 }
 0xf42   : >> { %v3309_v33 = vadd.f32 %v6573_v55, %v3308_v62  ;;  %v3328_v0 = vsel %vm1729_vm0, %v3320_v59, 0.0  ;;  %v3323_v4 = vadd.f32 %v3317_v63, %v3131_v32  ;;  %v7904_v62 = vmov (%p1692_p4), 0.0   ;;  %v7635_v63 = vld [vmem:[%s9107_s0 + $0x30] sm:$0xff] (%p1692_p4)  }
 0xf43   : >> { %3329 = vadd.xlane.f32.xlu0 %v3328_v0  ;;  %7055 = vmatprep.subr.bf16.mxu0 (%p1692_p4), %v7904_v62  ;;  %v7638_v0 = vld [vmem:[%s9107_s0 + $0x18] sm:$0xff] (%p1692_p4)  }
 0xf44   : >> { %v3321_v1 = vadd.f32 %v3309_v33, %v3129_v38  ;;  %v3337_v5 = vsel %vm1729_vm0, %v3323_v4, 0.0  ;;  %7071 = vmatprep.mubr.msk.bf16.mxu0 (%p1692_p4), %vm7905_vm6, %v7904_v62  ;;  %v7637_v33 = vld [vmem:[%s9107_s0 + $0x20] sm:$0xff] (%p1692_p4)  }
 0xf46   : >> { %v3331_v2 = vsel %vm1729_vm0, %v3321_v1, 0.0 }
 0xf47   : >> { %3332 = vadd.xlane.f32.xlu1 %v3331_v2  ;;  %3335 = vadd.xlane.f32.xlu0 %v3334_v3  ;;  %v7641_v2 = vld [vmem:[%s9107_s0] sm:$0xff] (%p1692_p4)  }
 0xf48   : > { %v7642_v3 = vld [vmem:[%s8193_s2] sm:$0xff] (%p1692_p4)  }
 0xf4b   : >> { %3338 = vadd.xlane.f32.xlu1 %v3337_v5 }
 0xfcc   : >> { %v3330_v9 = vpop.xlane.xlu0 %3329 }
 0xfcd   : >> { %v3340_v12 = vmul.f32 0.03125, %v3330_v9 }
 0xfcf   : >> { %v3344_v13 = vsub.f32 %v3320_v59, %v3340_v12  ;;  %v7634_v59 = vld [vmem:[%s9107_s0 + $0x38] sm:$0xff] (%p1692_p4)  }
 0xfd0   : >> { %v3333_v16 = vpop.xlane.xlu1 %3332  ;;  %v3336_v17 = vpop.xlane.xlu0 %3335  ;;  %7056 = vmatpush3.bf16.msra.mxu0 (%p1692_p4), %v7634_v59 }
 0xfd1   : >> { %v3341_v18 = vmul.f32 0.03125, %v3333_v16  ;;  %v3342_v20 = vmul.f32 0.03125, %v3336_v17  ;;  %v3348_v21 = vmul.f32 %v3344_v13, %v3344_v13  ;;  %7057 = vmatprep.subr.bf16.mxu0 (%p1692_p4), %v7904_v62 }
 0xfd3   : >> { %v3345_v47 = vsub.f32 %v3321_v1, %v3341_v18  ;;  %v3346_v23 = vsub.f32 %v3322_v52, %v3342_v20  ;;  %v3352_v26 = vsel %vm1729_vm0, %v3348_v21, 0.0  ;;  %v7639_v52 = vld [vmem:[%s9107_s0 + $0x10] sm:$0xff] (%p1692_p4)   ;;  %v7640_v1 = vld [vmem:[%s9107_s0 + $0x8] sm:$0xff] (%p1692_p4)  }
 0xfd4   : >> { %v3339_v14 = vpop.xlane.xlu1 %3338  ;;  %3353 = vadd.xlane.f32.xlu0 %v3352_v26  ;;  %7058 = vmatpush3.bf16.msra.mxu0 (%p1692_p4), %v7635_v63 }
 0xfd5   : >> { %v3343_v60 = vmul.f32 0.03125, %v3339_v14  ;;  %v3349_v10 = vmul.f32 %v3345_v47, %v3345_v47  ;;  %v3350_v30 = vmul.f32 %v3346_v23, %v3346_v23  ;;  %7059 = vmatprep.subr.bf16.mxu0 (%p1692_p4), %v7904_v62 }
 0xfd7   : >> { %v3347_v31 = vsub.f32 %v3323_v4, %v3343_v60  ;;  %v3355_v11 = vsel %vm1729_vm0, %v3349_v10, 0.0  ;;  %v3358_v61 = vsel %vm1729_vm0, %v3350_v30, 0.0  ;;  %v6582_v4 = vld [vmem:[%s9108_s10] ss:$0 sm:$0xff] (%p1692_p4) }
 0xfd8   : >> { %3356 = vadd.xlane.f32.xlu1 %v3355_v11  ;;  %3359 = vadd.xlane.f32.xlu0 %v3358_v61 }
 0xfd9   : >> { %v3351_v7 = vmul.f32 %v3347_v31, %v3347_v31 }
 0xfdb   : >> { %v3361_v35 = vsel %vm1729_vm0, %v3351_v7, 0.0 }
 0xfdc   : >> { %3362 = vadd.xlane.f32.xlu1 %v3361_v35 }
0x105d   : >> { %v3354_v36 = vpop.xlane.xlu0 %3353 }
0x105e   : >> { %v3364_v37 = vmul.f32 0.03125, %v3354_v36 }
0x1060   : >> { %v3368_v38 = vadd.f32 1e-05, %v3364_v37 }
0x1061   : >> { %v3357_v39 = vpop.xlane.xlu1 %3356  ;;  %v3360_v6 = vpop.xlane.xlu0 %3359 }
0x1062   : >> { %7626 = vrsqrt.f32 %v3368_v38  ;;  %v3365_v8 = vmul.f32 0.03125, %v3357_v39  ;;  %v3366_v27 = vmul.f32 0.03125, %v3360_v6 }
0x1064   : >> { %v3369_v32 = vadd.f32 1e-05, %v3365_v8  ;;  %v3370_v34 = vadd.f32 1e-05, %v3366_v27 }
0x1065   : >> { %v3363_v40 = vpop.xlane.xlu1 %3362 }
0x1066   : >> { %7628 = vrsqrt.f32 %v3369_v32  ;;  %v3367_v25 = vmul.f32 0.03125, %v3363_v40 }
0x1067   : >> { %7630 = vrsqrt.f32 %v3370_v34 }
0x1068   : >> { %v3371_v28 = vadd.f32 1e-05, %v3367_v25 }
0x106a   : >> { %7632 = vrsqrt.f32 %v3371_v28 }
0x106f   : >> { %v7627_v29 = vpop.eup %7626 }
0x1070   : >> { %v3376_v42 = vmul.f32 %v7627_v29, %v3344_v13 }
0x1072   : >> { %v3386_v44 = vmul.f32 %v6580_v41, %v3376_v42 }
0x1073   : >> { %v7629_v19 = vpop.eup %7628 }
0x1074   : >> { %v7631_v45 = vpop.eup %7630  ;;  %v3396_v46 = vadd.f32 %v6581_v43, %v3386_v44   ;;  %v3377_v48 = vmul.f32 %v7629_v19, %v3345_v47 }
0x1075   : >> { %v3378_v49 = vmul.f32 %v7631_v45, %v3346_v23 }
0x1076   : >> { %v3387_v50 = vmul.f32 %v6580_v41, %v3377_v48  ;;  %v9106_v19 = vmov %v3396_v46 }
0x1077   : >> { %v7633_v15 = vpop.eup %7632  ;;  %v3388_v51 = vmul.f32 %v6580_v41, %v3378_v49 }
0x1078   : >> { %v3397_v53 = vadd.f32 %v6581_v43, %v3387_v50   ;;  %v3379_v24 = vmul.f32 %v7633_v15, %v3347_v31 }
0x1079   : >> { %v3398_v54 = vadd.f32 %v6581_v43, %v3388_v51  }
0x107a   : >> { %v3389_v55 = vmul.f32 %v6580_v41, %v3379_v24  ;;  %v9105_v24 = vmov %v3397_v53  ;;  %1694 = sbr.rel (!%p1692_p4) target bundleno = 348 (0x15c), region = 364  ;;  %v8518_v57 = vpack.c.bf16 (%p1692_p4), %v3397_v53, %v3396_v46 }
0x107b   : >> { %v9104_v15 = vmov %v3398_v54 }
0x107c   : >> { %v3399_v56 = vadd.f32 %v6581_v43, %v3389_v55  }
0x107e   : >> { %v9103_v22 = vmov %v3399_v56  ;;  %v8520_v58 = vpack.c.bf16 (%p1692_p4), %v3399_v56, %v3398_v54 }
0x107f   : > { %v7636_v22 = vld [vmem:[%s9107_s0 + $0x28] sm:$0xff]  }
0x1080   : > { %7060 = vmatpush3.bf16.msra.mxu0 %v7636_v22 }
0x1081   : > { %7061 = vmatprep.subr.bf16.mxu0 %v7904_v62 }
0x1084   : > { %7062 = vmatpush3.bf16.msra.mxu0 %v7637_v33 }
0x1085   : > { %7063 = vmatprep.subr.bf16.mxu0 %v7904_v62 }
0x1088   : > { %7064 = vmatpush3.bf16.msra.mxu0 %v7638_v0 }
0x1089   : > { %7065 = vmatprep.subr.bf16.mxu0 %v7904_v62 }
0x108c   : > { %7066 = vmatpush3.bf16.msra.mxu0 %v7639_v52 }
0x108d   : > { %7067 = vmatprep.subr.bf16.mxu0 %v7904_v62 }
0x1090   : > { %7068 = vmatpush3.bf16.msra.mxu0 %v7640_v1 }
0x1091   : > { %7069 = vmatprep.subr.bf16.mxu0 %v7904_v62 }
0x1094   : > { %7070 = vmatpush3.bf16.msra.mxu0 %v7641_v2 }
0x1097   : > { %7072 = vmatmul.mubr.bf16.vlgmr.msra.gmra.mxu0 %v7642_v3 }
0x1157   : > { %v3515_v5 = vpop.f32.mrf.mxu0 }
0x1158   : > { %v3516_v9 = vadd.f32 %v6582_v4, %v3515_v5  }
0x1159   : > { %v7073_v12 = vpop.f32.mrf.mxu0 }
0x115b   : > { %v3518_v13 = vpop.f32.mrf.mxu0 }
0x115c   : > { %v3519_v16 = vadd.f32 %v6582_v4, %v3518_v13  }
0x115d   : > { %v7074_v17 = vpop.f32.mrf.mxu0 }
0x115e LB: >> { %s9109_s2 = sld [smem:[#allocation15_spill]]  ;;  %v7906_v18 = vmov 0.0   ;;  %s8560_s15 = sshll.u32 %s7843_s26, 4  ;;  %vm7907_vm7 = vmmov 0   ;;  %v3530_v26 = vpack.c.bf16 %v7835_v16, %v7839_v9  ;;  %vm3873_vm8 = vcmask 1043456   ;;  %s7843_s26 = sphi %s8546_s26, %s3527_s26   ;;  %v7839_v9 = vphi %v3516_v9, %v9138_v9   ;;  %v7835_v16 = vphi %v3519_v16, %v9137_v16  }
0x115f   : >> { %s9110_s28 = sld [smem:[#allocation13_spill]]  ;;  %7083 = vmatprep.subr.bf16.mxu1 %v7906_v18  ;;  %7075 = vmatprep.subr.bf16.mxu0 %v7906_v18 }
0x1160   : >> { %s9111_s1 = sld [smem:[#allocation17_spill]]  ;;  %7087 = vmatprep.mubr.msk.bf16.mxu1 %vm7907_vm7, %v7906_v18  ;;  %7079 = vmatprep.mubr.msk.bf16.mxu0 %vm7907_vm7, %v7906_v18 }
0x1161   : >> { %s9112_s23 = sld [smem:[#allocation16_spill]] }
0x1162   : >> { %s9113_s10 = sld [smem:[#allocation14_spill]] }
0x1164   : >> { %s3604_s16 = scalar_lea.vmem %s9109_s2, %s8560_s15 }
0x1165   : >> { %s3533_s18 = scalar_lea.vmem %s9110_s28, %s8560_s15  ;;  %v7673_v20 = vld [vmem:[%s3604_s16 + $0x8] sm:$0xff]   ;;  %v7675_v47 = vld [vmem:[%s3604_s16] sm:$0xff]   ;;  %s7908_s16 = smov 120  }
0x1166   : >> { %v7674_v21 = vld [vmem:[%s3533_s18 + $0x8] sm:$0xff]   ;;  %7084 = vmatpush3.bf16.msra.mxu1 %v7673_v20  ;;  %v7676_v23 = vld [vmem:[%s3533_s18] sm:$0xff]   ;;  %s3671_s11 = scalar_lea.vmem %s9111_s1, %s8560_s15  ;;  %s9114_s1 = sld [smem:[#allocation18_spill]] }
0x1167   : >> { %7076 = vmatpush3.bf16.msra.mxu0 %v7674_v21  ;;  %7085 = vmatprep.subr.bf16.mxu1 %v7906_v18  ;;  %v7677_v14 = vld [vmem:[%s3671_s11 + $0x8] sm:$0xff]   ;;  %v7678_v60 = vld [vmem:[%s3671_s11] sm:$0xff]   ;;  %s3609_s2 = scalar_lea.vmem %s9112_s23, %s7843_s26  ;;  %s9060_s11 = smov 112  }
0x1168   : >> { %7077 = vmatprep.subr.bf16.mxu0 %v7906_v18  ;;  %s3538_s28 = scalar_lea.vmem %s9113_s10, %s7843_s26  ;;  %v6599_v10 = vld [vmem:[%s3609_s2] ss:$0 sm:$0xff]  ;;  %s9058_s23 = smov 104  }
0x1169   : >> { %v6594_v30 = vld [vmem:[%s3538_s28] ss:$0 sm:$0xff]  ;;  %s9057_s10 = smov 8   ;;  %s9056_s2 = smov 16  }
0x116a   : >> { %7086 = vmatpush3.bf16.msra.mxu1 %v7675_v47  ;;  %s9115_s28 = sld [smem:[#allocation19_spill]] }
0x116b   : >> { %7078 = vmatpush3.bf16.msra.mxu0 %v7676_v23  ;;  %7099 = vmatprep.subr.bf16.mxu1 %v7906_v18 }
0x116c   : >> { %7091 = vmatprep.subr.bf16.mxu0 %v7906_v18  ;;  %s3676_s18 = scalar_lea.vmem %s9114_s1, %s7843_s26 }
0x116d   : >> { %7088 = vmatmul.mubr.msk.bf16.vlgmr.msra.gmra.mxu1 %vm1729_vm0, %v3530_v26  ;;  %v6604_v43 = vld [vmem:[%s3676_s18] ss:$0 sm:$0xff]  ;;  %s9055_s18 = smov 24  }
0x116e   : >> { %7080 = vmatmul.mubr.msk.bf16.vlgmr.msra.gmra.mxu0 %vm1729_vm0, %v3530_v26  ;;  %7101 = vmatprep.mubr.msk.bf16.mxu1 %vm7907_vm7, %v7906_v18 }
0x116f   : >> { %7092 = vmatpush3.bf16.msra.mxu0 %v7677_v14  ;;  %7095 = vmatprep.mubr.msk.bf16.mxu0 %vm7907_vm7, %v7906_v18 }
0x1170   : >> { %7093 = vmatprep.subr.bf16.mxu0 %v7906_v18  ;;  %s3740_s1 = scalar_lea.vmem %s9115_s28, %s8560_s15  ;;  %s9116_s28 = sld [smem:[#allocation20_spill]] }
0x1173   : >> { %7094 = vmatpush3.bf16.msra.mxu0 %v7678_v60 }
0x1174   : >> { %7105 = vmatprep.subr.bf16.mxu0 %v7906_v18 }
0x1176   : >> { %7096 = vmatmul.mubr.msk.bf16.vlgmr.msra.gmra.mxu0 %vm1729_vm0, %v3530_v26 }
0x1177   : >> { %7107 = vmatprep.mubr.msk.bf16.mxu0 %vm7907_vm7, %v7906_v18 }
0x122d   : >> { %v3663_v31 = vpop.f32.mrf.mxu1 }
0x122e   : >> { %v3664_v11 = vadd.f32 %v6599_v10, %v3663_v31  ;;  %v3596_v61 = vpop.f32.mrf.mxu0 }
0x122f   : >> { %v3597_v7 = vadd.f32 %v6594_v30, %v3596_v61  ;;  %v7089_v35 = vpop.f32.mrf.mxu1 }
0x1230   : >> { %v8593_v36 = vpack.c.bf16 %v3664_v11, %v3664_v11  ;;  %v7081_v37 = vpop.f32.mrf.mxu0 }
0x1231   : >> { %v3666_v38 = vpop.f32.mrf.mxu1  ;;  %v3737_v39 = vmul.f32 0.35355338, %v3597_v7 }
0x1232   : >> { %v3667_v6 = vadd.f32 %v6599_v10, %v3666_v38  ;;  %v3599_v8 = vpop.f32.mrf.mxu0  ;;  %v3758_v27 = vsel %vm1953_vm2, %v8593_v36, 0 }
0x1233   : >> { %v7090_v32 = vpop.f32.mrf.mxu1  ;;  %7100 = vmatpush3.bf16.xpose.msra.mxu1 %v3758_v27  ;;  %v3600_v40 = vadd.f32 %v6594_v30, %v3599_v8  ;;  %v8600_v28 = vpack.c.bf16 %v3737_v39, %v3737_v39 }
0x1234   : >> { %v8597_v34 = vpack.c.bf16 %v3667_v6, %v3667_v6  ;;  %v7082_v25 = vpop.f32.mrf.mxu0  ;;  %7111 = vmatprep.subr.bf16.mxu1 %v7906_v18 }
0x1235   : >> { %v3738_v41 = vmul.f32 0.35355338, %v3600_v40 }
0x1236   : >> { %4019 = vrot.lane.b32.xlu1 %v8597_v34, %s7908_s16  ;;  %v3804_v29 = vsel %vm1953_vm2, %v8597_v34, 0  ;;  %v3730_v44 = vpop.f32.mrf.mxu0 }
0x1237   : >> { %7106 = vmatpush3.bf16.xpose.msra.mxu0 %v3804_v29  ;;  %v8611_v42 = vpack.c.bf16 %v3738_v41, %v3738_v41  ;;  %v3731_v45 = vadd.f32 %v6604_v43, %v3730_v44 }
0x1238   : >> { %7117 = vmatprep.subr.bf16.mxu0 %v7906_v18  ;;  %v7097_v19 = vpop.f32.mrf.mxu0 }
0x1239   : >> { %v8619_v50 = vpack.c.bf16 %v3731_v45, %v3731_v45 }
0x123a   : >> { %7102 = vmatmul.mubr.msk.bf16.vlgmr.msra.gmra.mxu1 %vm1953_vm2, %v8600_v28  ;;  %v3733_v46 = vpop.f32.mrf.mxu0 }
0x123b   : >> { %7113 = vmatprep.mubr.msk.bf16.mxu1 %vm7907_vm7, %v7906_v18  ;;  %v3734_v48 = vadd.f32 %v6604_v43, %v3733_v46  ;;  %v3875_v51 = vsel %vm3873_vm8, %v8619_v50, 0 }
0x123c   : >> { %v7098_v49 = vpop.f32.mrf.mxu0  ;;  %7112 = vmatpush3.bf16.msra.mxu1 %v3875_v51 }
0x123d   : >> { %v8621_v15 = vpack.c.bf16 %v3734_v48, %v3734_v48  ;;  %7123 = vmatprep.subr.bf16.mxu1 %v7906_v18 }
0x123e   : >> { %7108 = vmatmul.mubr.msk.bf16.vlgmr.msra.gmra.mxu0 %vm1953_vm2, %v8611_v42 }
0x123f   : >> { %7119 = vmatprep.mubr.msk.bf16.mxu0 %vm7907_vm7, %v7906_v18  ;;  %v3921_v53 = vsel %vm3873_vm8, %v8621_v15, 0 }
0x1240   : >> { %7118 = vmatpush3.bf16.msra.mxu0 %v3921_v53 }
0x1241   : >> { %7129 = vmatprep.subr.bf16.mxu0 %v7906_v18 }
0x12a8   : >> { %v4020_v47 = vpop.permute.xlu1 %4019 }
0x12a9   : >> { %v4025_v35 = vsel %vm1953_vm2, %v4020_v47, 0 }
0x12fa   : >> { %v3794_v24 = vpop.f32.mrf.mxu1 }
0x12fb   : >> { %v3846_v54 = vsel %vm1953_vm2, %v3794_v24, -inf }
0x12fc   : >> { %3847 = vmax.xlane.f32.xlu0 %v3846_v54  ;;  %v7103_v55 = vpop.f32.mrf.mxu1 }
0x12fe   : >> { %v3797_v56 = vpop.f32.mrf.mxu1  ;;  %v3840_v59 = vpop.f32.mrf.mxu0 }
0x12ff   : >> { %v3849_v63 = vsel %vm1953_vm2, %v3840_v59, -inf }
0x1300   : >> { %v7104_v22 = vpop.f32.mrf.mxu1  ;;  %3850 = vmax.xlane.f32.xlu0 %v3849_v63  ;;  %v7109_v33 = vpop.f32.mrf.mxu0 }
0x1302   : >> { %v3843_v0 = vpop.f32.mrf.mxu0 }
0x1304   : >> { %v7110_v52 = vpop.f32.mrf.mxu0 }
0x1316   : >> { %3967 = vrot.lane.b32.xlu0 %v8593_v36, %s7908_s16 }
0x1385   : >> { %v3848_v1 = vpop.xlane.xlu0 %3847 }
0x1386   : >> { %v3852_v2 = vsub.f32 %v3794_v24, %v3848_v1 }
0x1388   : >> { %v3854_v3 = vmul.f32 1.442695, %v3852_v2 }
0x1389   : >> { %v3851_v4 = vpop.xlane.xlu0 %3850 }
0x138a   : >> { %7695 = vpow2.f32 %v3854_v3  ;;  %v3853_v5 = vsub.f32 %v3840_v59, %v3851_v4 }
0x138c   : >> { %v3856_v12 = vmul.f32 1.442695, %v3853_v5 }
0x138d   : >> { %v3968_v10 = vpop.permute.xlu0 %3967 }
0x138e   : >> { %7697 = vpow2.f32 %v3856_v12  ;;  %v3973_v11 = vsel %vm1953_vm2, %v3968_v10, 0 }
0x1397   : >> { %v7696_v13 = vpop.eup %7695 }
0x1398   : >> { %v3858_v17 = vsel %vm1953_vm2, %v7696_v13, 0.0 }
0x1399   : >> { %3859 = vadd.xlane.f32.xlu1 %v3858_v17 }
0x139b   : >> { %v7698_v20 = vpop.eup %7697 }
0x139c   : >> { %v3861_v21 = vsel %vm1953_vm2, %v7698_v20, 0.0 }
0x139d   : >> { %3862 = vadd.xlane.f32.xlu1 %v3861_v21 }
0x13ae   : >> { %3964 = vrot.lane.b32.xlu1 %v8600_v28, %s7908_s16 }
0x13b2   : >> { %4016 = vrot.lane.b32.xlu1 %v8611_v42, %s7908_s16 }
0x1422   : >> { %v3860_v23 = vpop.xlane.xlu1 %3859 }
0x1423   : >> { %7699 = vrcp.f32 %v3860_v23 }
0x1426   : >> { %v3863_v26 = vpop.xlane.xlu1 %3862 }
0x1427   : >> { %7701 = vrcp.f32 %v3863_v26 }
0x142a   : >> { %v3965_v37 = vpop.permute.xlu1 %3964 }
0x142e   : >> { %v4017_v38 = vpop.permute.xlu1 %4016 }
0x1430   : >> { %v7700_v14 = vpop.eup %7699 }
0x1431   : >> { %v3866_v60 = vmul.f32 %v7700_v14, %v7696_v13 }
0x1433   : >> { %v3868_v30 = vpack.c.bf16 %v3866_v60, %v3866_v60 }
0x1434   : >> { %v7702_v31 = vpop.eup %7701 }
0x1435   : >> { %7114 = vmatmul.mubr.msk.bf16.vlgmr.msra.gmra.mxu1 %vm1953_vm2, %v3868_v30  ;;  %v3867_v61 = vmul.f32 %v7702_v31, %v7698_v20 }
0x1436   : >> { %7124 = vmatpush3.bf16.xpose.msra.mxu1 %v3973_v11  ;;  %7125 = vmatprep.mubr.msk.bf16.mxu1 %vm7907_vm7, %v7906_v18 }
0x1437   : >> { %v3869_v7 = vpack.c.bf16 %v3867_v61, %v3867_v61  ;;  %7135 = vmatprep.subr.bf16.mxu1 %v7906_v18 }
0x1439   : >> { %7120 = vmatmul.mubr.msk.bf16.vlgmr.msra.gmra.mxu0 %vm1953_vm2, %v3869_v7 }
0x143a   : >> { %7130 = vmatpush3.bf16.xpose.msra.mxu0 %v4025_v35  ;;  %7131 = vmatprep.mubr.msk.bf16.mxu0 %vm7907_vm7, %v7906_v18 }
0x143b   : >> { %7141 = vmatprep.subr.bf16.mxu0 %v7906_v18 }
0x143d   : >> { %7126 = vmatmul.mubr.msk.bf16.vlgmr.msra.gmra.mxu1 %vm1953_vm2, %v3965_v37 }
0x143e   : >> { %7137 = vmatprep.mubr.msk.bf16.mxu1 %vm7907_vm7, %v7906_v18 }
0x1441   : >> { %7132 = vmatmul.mubr.msk.bf16.vlgmr.msra.gmra.mxu0 %vm1953_vm2, %v4017_v38 }
0x1442   : >> { %7143 = vmatprep.mubr.msk.bf16.mxu0 %vm7907_vm7, %v7906_v18 }
0x14f5   : >> { %v8655_v39 = vpop.f32.mrf.mxu1 }
0x14f7   : >> { %v7115_v6 = vpop.f32.mrf.mxu1 }
0x14f9   : >> { %v3914_v8 = vpop.f32.mrf.mxu1  ;;  %v8657_v27 = vpop.f32.mrf.mxu0 }
0x14fb   : >> { %v7116_v32 = vpop.f32.mrf.mxu1  ;;  %v7121_v40 = vpop.f32.mrf.mxu0 }
0x14fd   : >> { %v3960_v25 = vpop.f32.mrf.mxu0  ;;  %v4009_v29 = vpop.f32.mrf.mxu1 }
0x14fe   : >> { %v4067_v41 = vsel %vm1953_vm2, %v4009_v29, -inf }
0x14ff   : >> { %4068 = vmax.xlane.f32.xlu0 %v4067_v41  ;;  %v7122_v43 = vpop.f32.mrf.mxu0  ;;  %v7127_v44 = vpop.f32.mrf.mxu1 }
0x1501   : >> { %v4012_v19 = vpop.f32.mrf.mxu1  ;;  %v4061_v45 = vpop.f32.mrf.mxu0 }
0x1502   : >> { %v4070_v46 = vsel %vm1953_vm2, %v4061_v45, -inf }
0x1503   : >> { %v7128_v48 = vpop.f32.mrf.mxu1  ;;  %4071 = vmax.xlane.f32.xlu1 %v4070_v46  ;;  %v7133_v49 = vpop.f32.mrf.mxu0 }
0x1505   : >> { %v4064_v51 = vpop.f32.mrf.mxu0 }
0x1507   : >> { %v7134_v53 = vpop.f32.mrf.mxu0 }
0x1514   : >> { %4141 = vrot.lane.b32.xlu1 %v8621_v15, %s7908_s16 }
0x1518   : >> { %4191 = vrot.lane.b32.xlu1 %v8593_v36, %s9060_s11 }
0x151c   : >> { %4241 = vrot.lane.b32.xlu1 %v8597_v34, %s9060_s11 }
0x1520   : >> { %4239 = vrot.lane.b32.xlu1 %v8611_v42, %s9060_s11 }
0x1588   : >> { %v4069_v24 = vpop.xlane.xlu0 %4068 }
0x1589   : >> { %v4073_v54 = vsub.f32 %v4009_v29, %v4069_v24 }
0x158b   : >> { %v4075_v55 = vmul.f32 1.442695, %v4073_v54 }
0x158c   : >> { %v4072_v56 = vpop.xlane.xlu1 %4071 }
0x158d   : >> { %7703 = vpow2.f32 %v4075_v55  ;;  %v4074_v59 = vsub.f32 %v4061_v45, %v4072_v56 }
0x158f   : >> { %v4077_v63 = vmul.f32 1.442695, %v4074_v59 }
0x1590   : >> { %v4142_v22 = vpop.permute.xlu1 %4141 }
0x1591   : >> { %7705 = vpow2.f32 %v4077_v63  ;;  %v4147_v33 = vsel %vm3873_vm8, %v4142_v22, 0 }
0x1592   : >> { %7142 = vmatpush3.bf16.msra.mxu0 %v4147_v33 }
0x1593   : >> { %7153 = vmatprep.subr.bf16.mxu0 %v7906_v18 }
0x1594   : >> { %v4192_v17 = vpop.permute.xlu1 %4191 }
0x1595   : >> { %v4197_v23 = vsel %vm1953_vm2, %v4192_v17, 0 }
0x1598   : >> { %v4242_v14 = vpop.permute.xlu1 %4241 }
0x1599   : >> { %v4247_v10 = vsel %vm1953_vm2, %v4242_v14, 0 }
0x159a   : >> { %v7704_v0 = vpop.eup %7703 }
0x159b   : >> { %v4079_v52 = vsel %vm1953_vm2, %v7704_v0, 0.0 }
0x159c   : >> { %4080 = vadd.xlane.f32.xlu0 %v4079_v52  ;;  %v4240_v31 = vpop.permute.xlu1 %4239 }
0x159e   : >> { %v7706_v1 = vpop.eup %7705 }
0x159f   : >> { %v4082_v2 = vsel %vm1953_vm2, %v7706_v1, 0.0 }
0x15a0   : >> { %4083 = vadd.xlane.f32.xlu0 %v4082_v2 }
0x15b6   : >> { %4092 = vrot.lane.b32.xlu0 %v8619_v50, %s7908_s16 }
0x15ba   : >> { %4189 = vrot.lane.b32.xlu0 %v8600_v28, %s9060_s11 }
0x1625   : >> { %v4081_v3 = vpop.xlane.xlu0 %4080 }
0x1626   : >> { %7707 = vrcp.f32 %v4081_v3 }
0x1629   : >> { %v4084_v4 = vpop.xlane.xlu0 %4083 }
0x162a   : >> { %7709 = vrcp.f32 %v4084_v4 }
0x162d   : >> { %v4093_v5 = vpop.permute.xlu0 %4092 }
0x162e   : >> { %v4098_v12 = vsel %vm3873_vm8, %v4093_v5, 0 }
0x162f   : >> { %7136 = vmatpush3.bf16.msra.mxu1 %v4098_v12 }
0x1630   : >> { %7147 = vmatprep.subr.bf16.mxu1 %v7906_v18 }
0x1631   : >> { %v4190_v30 = vpop.permute.xlu0 %4189 }
0x1633   : >> { %v7708_v13 = vpop.eup %7707 }
0x1634   : >> { %v4087_v20 = vmul.f32 %v7708_v13, %v7704_v0 }
0x1636   : >> { %v4089_v21 = vpack.c.bf16 %v4087_v20, %v4087_v20 }
0x1637   : >> { %v7710_v47 = vpop.eup %7709 }
0x1638   : >> { %7138 = vmatmul.mubr.msk.bf16.vlgmr.msra.gmra.mxu1 %vm1953_vm2, %v4089_v21  ;;  %v4088_v26 = vmul.f32 %v7710_v47, %v7706_v1 }
0x1639   : >> { %7148 = vmatpush3.bf16.xpose.msra.mxu1 %v4197_v23  ;;  %7149 = vmatprep.mubr.msk.bf16.mxu1 %vm7907_vm7, %v7906_v18 }
0x163a   : >> { %v4090_v60 = vpack.c.bf16 %v4088_v26, %v4088_v26  ;;  %7159 = vmatprep.subr.bf16.mxu1 %v7906_v18 }
0x163c   : >> { %7144 = vmatmul.mubr.msk.bf16.vlgmr.msra.gmra.mxu0 %vm1953_vm2, %v4090_v60 }
0x163d   : >> { %7154 = vmatpush3.bf16.xpose.msra.mxu0 %v4247_v10  ;;  %7155 = vmatprep.mubr.msk.bf16.mxu0 %vm7907_vm7, %v7906_v18 }
0x163e   : >> { %7165 = vmatprep.subr.bf16.mxu0 %v7906_v18 }
0x1640   : >> { %7150 = vmatmul.mubr.msk.bf16.vlgmr.msra.gmra.mxu1 %vm1953_vm2, %v4190_v30 }
0x1641   : >> { %7161 = vmatprep.mubr.msk.bf16.mxu1 %vm7907_vm7, %v7906_v18 }
0x1644   : >> { %7156 = vmatmul.mubr.msk.bf16.vlgmr.msra.gmra.mxu0 %vm1953_vm2, %v4240_v31 }
0x1645   : >> { %7167 = vmatprep.mubr.msk.bf16.mxu0 %vm7907_vm7, %v7906_v18 }
0x16f8   : >> { %v8695_v11 = vpop.f32.mrf.mxu1 }
0x16fa   : >> { %v7139_v61 = vpop.f32.mrf.mxu1 }
0x16fc   : >> { %v4137_v7 = vpop.f32.mrf.mxu1  ;;  %v8697_v35 = vpop.f32.mrf.mxu0 }
0x16fd   : >> { %v7643_v37 = vpack.i.bf16 %v8697_v35, %v8695_v11 }
0x16fe   : >> { %v7140_v38 = vpop.f32.mrf.mxu1  ;;  %v7145_v6 = vpop.f32.mrf.mxu0 }
0x1700   : >> { %v4186_v8 = vpop.f32.mrf.mxu0  ;;  %v4233_v32 = vpop.f32.mrf.mxu1 }
0x1701   : >> { %v4289_v40 = vsel %vm1953_vm2, %v4233_v32, -inf }
0x1702   : >> { %4290 = vmax.xlane.f32.xlu0 %v4289_v40  ;;  %v7146_v25 = vpop.f32.mrf.mxu0  ;;  %v7151_v29 = vpop.f32.mrf.mxu1 }
0x1704   : >> { %v4236_v41 = vpop.f32.mrf.mxu1  ;;  %v4283_v43 = vpop.f32.mrf.mxu0 }
0x1705   : >> { %v4292_v44 = vsel %vm1953_vm2, %v4283_v43, -inf }
0x1706   : >> { %v7152_v19 = vpop.f32.mrf.mxu1  ;;  %4293 = vmax.xlane.f32.xlu1 %v4292_v44  ;;  %v7157_v45 = vpop.f32.mrf.mxu0 }
0x1708   : >> { %v4286_v46 = vpop.f32.mrf.mxu0 }
0x170a   : >> { %v7158_v48 = vpop.f32.mrf.mxu0 }
0x1717   : >> { %4361 = vrot.lane.b32.xlu1 %v8621_v15, %s9060_s11 }
0x171b   : >> { %4411 = vrot.lane.b32.xlu1 %v8593_v36, %s9058_s23 }
0x171f   : >> { %4461 = vrot.lane.b32.xlu1 %v8597_v34, %s9058_s23 }
0x1723   : >> { %4459 = vrot.lane.b32.xlu1 %v8611_v42, %s9058_s23 }
0x178b   : >> { %v4291_v49 = vpop.xlane.xlu0 %4290 }
0x178c   : >> { %v4295_v51 = vsub.f32 %v4233_v32, %v4291_v49 }
0x178e   : >> { %v4297_v53 = vmul.f32 1.442695, %v4295_v51 }
0x178f   : >> { %v4294_v24 = vpop.xlane.xlu1 %4293 }
0x1790   : >> { %7711 = vpow2.f32 %v4297_v53  ;;  %v4296_v54 = vsub.f32 %v4283_v43, %v4294_v24 }
0x1792   : >> { %v4299_v55 = vmul.f32 1.442695, %v4296_v54 }
0x1793   : >> { %v4362_v56 = vpop.permute.xlu1 %4361 }
0x1794   : >> { %7713 = vpow2.f32 %v4299_v55  ;;  %v4367_v59 = vsel %vm3873_vm8, %v4362_v56, 0 }
0x1795   : >> { %7166 = vmatpush3.bf16.msra.mxu0 %v4367_v59 }
0x1796   : >> { %7177 = vmatprep.subr.bf16.mxu0 %v7906_v18 }
0x1797   : >> { %v4412_v2 = vpop.permute.xlu1 %4411 }
0x1798   : >> { %v4417_v12 = vsel %vm1953_vm2, %v4412_v2, 0 }
0x179b   : >> { %v4462_v13 = vpop.permute.xlu1 %4461 }
0x179c   : >> { %v4467_v20 = vsel %vm1953_vm2, %v4462_v13, 0 }
0x179d   : >> { %v7712_v36 = vpop.eup %7711 }
0x179e   : >> { %v4301_v34 = vsel %vm1953_vm2, %v7712_v36, 0.0 }
0x179f   : >> { %4302 = vadd.xlane.f32.xlu0 %v4301_v34  ;;  %v4460_v47 = vpop.permute.xlu1 %4459 }
0x17a1   : >> { %v7714_v63 = vpop.eup %7713 }
0x17a2   : >> { %v4304_v42 = vsel %vm1953_vm2, %v7714_v63, 0.0 }
0x17a3   : >> { %4305 = vadd.xlane.f32.xlu0 %v4304_v42 }
0x17b9   : >> { %4313 = vrot.lane.b32.xlu0 %v8619_v50, %s9060_s11  ;;  %s9122_s11 = sld [smem:[#allocation24_spill]] }
0x17bd   : >> { %4409 = vrot.lane.b32.xlu0 %v8600_v28, %s9058_s23 }
0x1828   : >> { %v4303_v22 = vpop.xlane.xlu0 %4302 }
0x1829   : >> { %7715 = vrcp.f32 %v4303_v22 }
0x182c   : >> { %v4306_v33 = vpop.xlane.xlu0 %4305 }
0x182d   : >> { %7717 = vrcp.f32 %v4306_v33  ;;  %v7679_v33 = vld [vmem:[%s3740_s1 + $0x8] sm:$0xff]  }
0x1830   : >> { %v4314_v0 = vpop.permute.xlu0 %4313 }
0x1831   : >> { %v4319_v52 = vsel %vm3873_vm8, %v4314_v0, 0  ;;  %v7680_v0 = vld [vmem:[%s3740_s1] sm:$0xff]   ;;  %s3745_s1 = scalar_lea.vmem %s9116_s28, %s7843_s26  ;;  %s9118_s28 = sld [smem:[#allocation21_spill]] }
0x1832   : >> { %7160 = vmatpush3.bf16.msra.mxu1 %v4319_v52 }
0x1833   : >> { %7171 = vmatprep.subr.bf16.mxu1 %v7906_v18 }
0x1834   : >> { %v4410_v21 = vpop.permute.xlu0 %4409 }
0x1836   : >> { %v7716_v1 = vpop.eup %7715 }
0x1837   : >> { %v4309_v3 = vmul.f32 %v7716_v1, %v7712_v36 }
0x1839   : >> { %v4311_v4 = vpack.c.bf16 %v4309_v3, %v4309_v3 }
0x183a   : >> { %v7718_v5 = vpop.eup %7717 }
0x183b   : >> { %7162 = vmatmul.mubr.msk.bf16.vlgmr.msra.gmra.mxu1 %vm1953_vm2, %v4311_v4  ;;  %v4310_v28 = vmul.f32 %v7718_v5, %v7714_v63 }
0x183c   : >> { %7172 = vmatpush3.bf16.xpose.msra.mxu1 %v4417_v12  ;;  %7173 = vmatprep.mubr.msk.bf16.mxu1 %vm7907_vm7, %v7906_v18 }
0x183d   : >> { %v4312_v17 = vpack.c.bf16 %v4310_v28, %v4310_v28  ;;  %7183 = vmatprep.subr.bf16.mxu1 %v7906_v18 }
0x183f   : >> { %7168 = vmatmul.mubr.msk.bf16.vlgmr.msra.gmra.mxu0 %vm1953_vm2, %v4312_v17 }
0x1840   : >> { %7178 = vmatpush3.bf16.xpose.msra.mxu0 %v4467_v20  ;;  %7179 = vmatprep.mubr.msk.bf16.mxu0 %vm7907_vm7, %v7906_v18 }
0x1841   : >> { %7189 = vmatprep.subr.bf16.mxu0 %v7906_v18 }
0x1843   : >> { %7174 = vmatmul.mubr.msk.bf16.vlgmr.msra.gmra.mxu1 %vm1953_vm2, %v4410_v21 }
0x1844   : >> { %7185 = vmatprep.mubr.msk.bf16.mxu1 %vm7907_vm7, %v7906_v18 }
0x1847   : >> { %7180 = vmatmul.mubr.msk.bf16.vlgmr.msra.gmra.mxu0 %vm1953_vm2, %v4460_v47 }
0x1848   : >> { %7191 = vmatprep.mubr.msk.bf16.mxu0 %vm7907_vm7, %v7906_v18 }
0x18fb   : >> { %v4355_v23 = vpop.f32.mrf.mxu1 }
0x18fd   : >> { %v7163_v26 = vpop.f32.mrf.mxu1 }
0x18ff   : >> { %v4358_v14 = vpop.f32.mrf.mxu1  ;;  %v4403_v60 = vpop.f32.mrf.mxu0 }
0x1900   : >> { %v7648_v44 = vpack.i.bf16 %v4403_v60, %v4355_v23 }
0x1901   : >> { %v7164_v10 = vpop.f32.mrf.mxu1  ;;  %v7169_v30 = vpop.f32.mrf.mxu0 }
0x1903   : >> { %v4406_v31 = vpop.f32.mrf.mxu0  ;;  %v4453_v61 = vpop.f32.mrf.mxu1 }
0x1904   : >> { %v4509_v7 = vsel %vm1953_vm2, %v4453_v61, -inf }
0x1905   : >> { %4510 = vmax.xlane.f32.xlu0 %v4509_v7  ;;  %v7170_v38 = vpop.f32.mrf.mxu0  ;;  %v7175_v6 = vpop.f32.mrf.mxu1 }
0x1907   : >> { %v4456_v8 = vpop.f32.mrf.mxu1  ;;  %v4503_v32 = vpop.f32.mrf.mxu0 }
0x1908   : >> { %v4512_v40 = vsel %vm1953_vm2, %v4503_v32, -inf }
0x1909   : >> { %v7176_v25 = vpop.f32.mrf.mxu1  ;;  %4513 = vmax.xlane.f32.xlu1 %v4512_v40  ;;  %v7181_v29 = vpop.f32.mrf.mxu0 }
0x190b   : >> { %v4506_v41 = vpop.f32.mrf.mxu0 }
0x190d   : >> { %v7182_v43 = vpop.f32.mrf.mxu0 }
0x191a   : >> { %4581 = vrot.lane.b32.xlu1 %v8621_v15, %s9058_s23 }
0x191e   : >> { %7644 = vrot.lane.b32.xlu1 %v7643_v37, %s9057_s10  ;;  %s4775_s10 = scalar_lea.vmem %s9118_s28, %s8560_s15 }
0x1922   : >> { %7649 = vrot.lane.b32.xlu1 %v7648_v44, %s9056_s2  ;;  %s9119_s2 = sld [smem:[#allocation25_spill]] }
0x1928   : >> { %s4926_s28 = scalar_lea.vmem %s9119_s2, %s8560_s15  ;;  %s9123_s2 = sld [smem:[#allocation22_spill]] }
0x198e   : >> { %v4511_v19 = vpop.xlane.xlu0 %4510 }
0x198f   : >> { %v4515_v45 = vsub.f32 %v4453_v61, %v4511_v19 }
0x1991   : >> { %v4517_v46 = vmul.f32 1.442695, %v4515_v45 }
0x1992   : >> { %v4514_v48 = vpop.xlane.xlu1 %4513 }
0x1993   : >> { %7719 = vpow2.f32 %v4517_v46  ;;  %v4516_v49 = vsub.f32 %v4503_v32, %v4514_v48 }
0x1995   : >> { %v4519_v51 = vmul.f32 1.442695, %v4516_v49 }
0x1996   : >> { %v4582_v53 = vpop.permute.xlu1 %4581 }
0x1997   : >> { %7721 = vpow2.f32 %v4519_v51  ;;  %v4587_v15 = vsel %vm3873_vm8, %v4582_v53, 0 }
0x1998   : >> { %7190 = vmatpush3.bf16.msra.mxu0 %v4587_v15 }
0x1999   : >> { %7203 = vmatprep.subr.bf16.mxu0 %v7906_v18 }
0x199a   : >> { %v7645_v17 = vpop.permute.xlu1 %7644 }
0x199b   : >> { %v7647_v21 = vunpack.i.h.bf16 %v7645_v17  ;;  %v7646_v47 = vunpack.i.l.bf16 %v7645_v17 }
0x199d   : >> { %v4654_v60 = vsel %vm1953_vm2, %v8657_v27, %v7647_v21  ;;  %v4653_v10 = vsel %vm1953_vm2, %v8655_v39, %v7646_v47  ;;  %v6625_v27 = vld [vmem:[%s3745_s1] ss:$0 sm:$0xff] }
0x199e   : >> { %v7650_v20 = vpop.permute.xlu1 %7649 }
0x199f   : >> { %v7652_v23 = vunpack.i.h.bf16 %v7650_v20  ;;  %v7651_v26 = vunpack.i.l.bf16 %v7650_v20 }
0x19a0   : >> { %v7720_v11 = vpop.eup %7719 }
0x19a1   : >> { %v4521_v35 = vsel %vm1953_vm2, %v7720_v11, 0.0  ;;  %v4656_v61 = vsel %vm2048_vm3, %v4653_v10, %v7651_v26  ;;  %v4657_v7 = vsel %vm2048_vm3, %v4654_v60, %v7652_v23 }
0x19a2   : >> { %4522 = vadd.xlane.f32.xlu0 %v4521_v35 }
0x19a4   : >> { %v7722_v37 = vpop.eup %7721 }
0x19a5   : >> { %v4524_v24 = vsel %vm1953_vm2, %v7722_v37, 0.0 }
0x19a6   : >> { %4525 = vadd.xlane.f32.xlu0 %v4524_v24 }
0x19bc   : >> { %4533 = vrot.lane.b32.xlu0 %v8619_v50, %s9058_s23  ;;  %s9120_s23 = sld [smem:[#allocation33_spill]] }
0x1a2b   : >> { %v4523_v54 = vpop.xlane.xlu0 %4522 }
0x1a2c   : >> { %7723 = vrcp.f32 %v4523_v54  ;;  %v7683_v54 = vld [vmem:[%s4775_s10 + $0x8] sm:$0xff]  }
0x1a2f   : >> { %v4526_v55 = vpop.xlane.xlu0 %4525 }
0x1a30   : >> { %7725 = vrcp.f32 %v4526_v55  ;;  %v7684_v55 = vld [vmem:[%s4775_s10] sm:$0xff]   ;;  %s4726_s10 = scalar_lea.vmem %s9120_s23, %s7843_s26  ;;  %s4850_s23 = scalar_lea.vmem %s9122_s11, %s7843_s26 }
0x1a31   : >> { %v6637_v20 = vld [vmem:[%s4850_s23] ss:$0 sm:$0xff]  ;;  %s4780_s11 = scalar_lea.vmem %s9123_s2, %s7843_s26  ;;  %s9128_s23 = smov 16  }
0x1a32   : >> { %s9129_s2 = sld [smem:[#allocation27_spill]] }
0x1a33   : >> { %v4534_v56 = vpop.permute.xlu0 %4533 }
0x1a34   : >> { %v4539_v59 = vsel %vm3873_vm8, %v4534_v56, 0  ;;  %v7685_v56 = vld [vmem:[%s4926_s28 + $0x8] sm:$0xff]  }
0x1a35   : >> { %7184 = vmatpush3.bf16.msra.mxu1 %v4539_v59 }
0x1a36   : >> { %7195 = vmatprep.subr.bf16.mxu1 %v7906_v18 }
0x1a39   : >> { %v7724_v36 = vpop.eup %7723 }
0x1a3a   : >> { %v4529_v34 = vmul.f32 %v7724_v36, %v7720_v11 }
0x1a3c   : >> { %v4531_v63 = vpack.c.bf16 %v4529_v34, %v4529_v34 }
0x1a3d   : >> { %v7726_v42 = vpop.eup %7725 }
0x1a3e   : >> { %7186 = vmatmul.mubr.msk.bf16.vlgmr.msra.gmra.mxu1 %vm1953_vm2, %v4531_v63  ;;  %v4530_v22 = vmul.f32 %v7726_v42, %v7722_v37 }
0x1a3f   : >> { %7199 = vmatprep.mubr.msk.bf16.mxu1 %vm7907_vm7, %v7906_v18  ;;  %7196 = vmatpush3.bf16.msra.mxu1 %v7679_v33 }
0x1a40   : >> { %v4532_v50 = vpack.c.bf16 %v4530_v22, %v4530_v22  ;;  %7197 = vmatprep.subr.bf16.mxu1 %v7906_v18 }
0x1a42   : >> { %7192 = vmatmul.mubr.msk.bf16.vlgmr.msra.gmra.mxu0 %vm1953_vm2, %v4532_v50 }
0x1a43   : >> { %7207 = vmatprep.mubr.msk.bf16.mxu0 %vm7907_vm7, %v7906_v18  ;;  %7198 = vmatpush3.bf16.msra.mxu1 %v7680_v0  ;;  %v6629_v0 = vld [vmem:[%s4726_s10] ss:$0 sm:$0xff]  ;;  %s9125_s10 = smov 112  }
0x1a44   : >> { %7204 = vmatpush3.bf16.msra.mxu0 %v7683_v54 }
0x1a45   : >> { %7205 = vmatprep.subr.bf16.mxu0 %v7906_v18 }
0x1a48   : >> { %7206 = vmatpush3.bf16.msra.mxu0 %v7684_v55 }
0x1a49   : >> { %7219 = vmatprep.subr.bf16.mxu0 %v7685_v56 }
0x1afe   : >> { %v4575_v52 = vpop.f32.mrf.mxu1 }
0x1b00   : >> { %v7187_v1 = vpop.f32.mrf.mxu1 }
0x1b02   : >> { %v4578_v2 = vpop.f32.mrf.mxu1  ;;  %v4623_v3 = vpop.f32.mrf.mxu0 }
0x1b03   : >> { %v7653_v4 = vpack.i.bf16 %v4623_v3, %v4575_v52 }
0x1b04   : >> { %v7188_v5 = vpop.f32.mrf.mxu1  ;;  %v7193_v12 = vpop.f32.mrf.mxu0 }
0x1b05   : >> { %7654 = vrot.lane.b32.xlu0 %v7653_v4, %s9055_s18  ;;  %s9117_s18 = sld [smem:[#allocation23_spill]] }
0x1b06   : >> { %v4626_v28 = vpop.f32.mrf.mxu0 }
0x1b08   : >> { %v7194_v13 = vpop.f32.mrf.mxu0 }
0x1b09   : >> { %v7686_v13 = vld [vmem:[%s4926_s28] sm:$0xff]  }
0x1b0b   : >> { %s4845_s1 = scalar_lea.vmem %s9117_s18, %s8560_s15  ;;  %s9121_s18 = sld [smem:[#allocation34_spill]] }
0x1b0c   : >> { %v7682_v24 = vld [vmem:[%s4845_s1] sm:$0xff]  }
0x1b77   : >> { %v7655_v14 = vpop.permute.xlu0 %7654 }
0x1b78   : >> { %v7657_v30 = vunpack.i.h.bf16 %v7655_v14  ;;  %v7656_v31 = vunpack.i.l.bf16 %v7655_v14 }
0x1b7a   : >> { %v4660_v38 = vsel %vm2971_vm4, %v4657_v7, %v7657_v30  ;;  %v4659_v6 = vsel %vm2971_vm4, %v4656_v61, %v7656_v31 }
0x1b7b   : >> { %v4661_v8 = vpack.c.bf16 %v4660_v38, %v4659_v6  ;;  %v6632_v38 = vld [vmem:[%s4780_s11] ss:$0 sm:$0xff]  ;;  %s9130_s11 = smov 24  }
0x1b7d   : >> { %7200 = vmatmul.mubr.msk.bf16.vlgmr.msra.gmra.mxu1 %vm1729_vm0, %v4661_v8 }
0x1b7e   : >> { %7215 = vmatprep.mubr.msk.bf16.mxu1 %vm1729_vm0, %v8518_v57 }
0x1c3d   : >> { %v4717_v32 = vpop.f32.mrf.mxu1 }
0x1c3e   : >> { %v4718_v39 = vadd.f32 %v6625_v27, %v4717_v32 }
0x1c3f   : >> { %v7201_v40 = vpop.f32.mrf.mxu1 }
0x1c40   : >> { %v4724_v25 = vadd.f32 %v7839_v9, %v4718_v39 }
0x1c41   : >> { %v4720_v29 = vpop.f32.mrf.mxu1 }
0x1c42   : >> { %v4721_v41 = vadd.f32 %v6625_v27, %v4720_v29  ;;  %v4730_v43 = vsel %vm1729_vm0, %v4724_v25, 0.0 }
0x1c43   : >> { %4731 = vadd.xlane.f32.xlu1 %v4730_v43  ;;  %v7202_v44 = vpop.f32.mrf.mxu1 }
0x1c44   : >> { %v4725_v19 = vadd.f32 %v7835_v16, %v4721_v41  ;;  %v7681_v16 = vld [vmem:[%s4845_s1 + $0x8] sm:$0xff]   ;;  %s4728_s1 = scalar_lea.vmem %s9121_s18, %s7843_s26  ;;  %s9124_s18 = sld [smem:[#allocation26_spill]] }
0x1c45   : >> { %7211 = vmatprep.subr.bf16.mxu1 %v7681_v16  ;;  %v6630_v3 = vld [vmem:[%s4728_s1] ss:$0 sm:$0xff]  ;;  %s9127_s1 = smov 8  }
0x1c46   : >> { %v4733_v45 = vsel %vm1729_vm0, %v4725_v19, 0.0  ;;  %7212 = vmatpush3.bf16.msra.mxu1 %v7681_v16 }
0x1c47   : >> { %4734 = vadd.xlane.f32.xlu0 %v4733_v45  ;;  %7213 = vmatprep.subr.bf16.mxu1 %v7682_v24 }
0x1c4a   : >> { %7214 = vmatpush3.bf16.msra.mxu1 %v7682_v24  ;;  %s4931_s28 = scalar_lea.vmem %s9124_s18, %s7843_s26  ;;  %s5003_s18 = scalar_lea.vmem %s9129_s2, %s8560_s15 }
0x1c4b   : >> { %7227 = vmatprep.subr.bf16.mxu1 %v7906_v18  ;;  %v6643_v44 = vld [vmem:[%s4931_s28] ss:$0 sm:$0xff]  ;;  %s9131_s28 = sld [smem:[#allocation28_spill]] }
0x1c4c   : >> { %s9134_s2 = sld [smem:[#allocation35_spill]] }
0x1c4d   : >> { %7216 = vmatmul.mubr.msk.bf16.vlgmr.msra.gmra.mxu1 %vm1729_vm0, %v8520_v58 }
0x1c4e   : >> { %7229 = vmatprep.mubr.msk.bf16.mxu1 %vm7907_vm7, %v7906_v18 }
0x1ccc   : >> { %v4732_v46 = vpop.xlane.xlu1 %4731 }
0x1ccd   : >> { %v4737_v48 = vmul.f32 0.03125, %v4732_v46 }
0x1ccf   : >> { %v4739_v49 = vsub.f32 %v4724_v25, %v4737_v48 }
0x1cd0   : >> { %v4735_v51 = vpop.xlane.xlu0 %4734 }
0x1cd1   : >> { %v4738_v9 = vmul.f32 0.03125, %v4735_v51  ;;  %v4741_v53 = vmul.f32 %v4739_v49, %v4739_v49 }
0x1cd3   : >> { %v4740_v15 = vsub.f32 %v4725_v19, %v4738_v9  ;;  %v4743_v11 = vsel %vm1729_vm0, %v4741_v53, 0.0 }
0x1cd4   : >> { %4744 = vadd.xlane.f32.xlu0 %v4743_v11 }
0x1cd5   : >> { %v4742_v35 = vmul.f32 %v4740_v15, %v4740_v15 }
0x1cd7   : >> { %v4746_v37 = vsel %vm1729_vm0, %v4742_v35, 0.0 }
0x1cd8   : >> { %4747 = vadd.xlane.f32.xlu0 %v4746_v37 }
0x1d0d   : >> { %v7217_v17 = vpop.f32.mrf.mxu1 }
0x1d0e   : >> { %v4919_v47 = vadd.f32 %v7217_v17, %v6637_v20 }
0x1d0f   : >> { %v4910_v21 = vpop.f32.mrf.mxu1 }
0x1d10   : >> { %v4911_v26 = vadd.f32 %v6637_v20, %v4910_v21 }
0x1d11   : >> { %v7218_v23 = vpop.f32.mrf.mxu1 }
0x1d12   : >> { %v4922_v14 = vadd.f32 %v7218_v23, %v6637_v20 }
0x1d13   : >> { %v4913_v60 = vpop.f32.mrf.mxu1 }
0x1d14   : >> { %v8815_v10 = vpack.c.bf16 %v4922_v14, %v4919_v47  ;;  %v4914_v30 = vadd.f32 %v6637_v20, %v4913_v60 }
0x1d16   : >> { %v8817_v31 = vpack.c.bf16 %v4914_v30, %v4911_v26  ;;  %v5066_v61 = vsel %vm1953_vm2, %v8815_v10, 0 }
0x1d18   : >> { %v5020_v7 = vsel %vm1953_vm2, %v8817_v31, 0 }
0x1d19   : >> { %7228 = vmatpush3.bf16.xpose.msra.mxu1 %v5020_v7 }
0x1d1a   : >> { %7239 = vmatprep.subr.bf16.mxu1 %v7906_v18 }
0x1d5d   : >> { %v4745_v59 = vpop.xlane.xlu0 %4744 }
0x1d5e   : >> { %v4749_v36 = vmul.f32 0.03125, %v4745_v59 }
0x1d60   : >> { %v4751_v34 = vadd.f32 1e-05, %v4749_v36 }
0x1d61   : >> { %v4748_v63 = vpop.xlane.xlu0 %4747 }
0x1d62   : >> { %7727 = vrsqrt.f32 %v4751_v34  ;;  %v4750_v42 = vmul.f32 0.03125, %v4748_v63 }
0x1d64   : >> { %v4752_v22 = vadd.f32 1e-05, %v4750_v42 }
0x1d66   : >> { %7729 = vrsqrt.f32 %v4752_v22 }
0x1d6f   : >> { %v7728_v50 = vpop.eup %7727 }
0x1d70   : >> { %v4755_v33 = vmul.f32 %v7728_v50, %v4739_v49 }
0x1d72   : >> { %v4763_v2 = vmul.f32 %v6629_v0, %v4755_v33 }
0x1d73   : >> { %v7730_v52 = vpop.eup %7729 }
0x1d74   : >> { %v4756_v1 = vmul.f32 %v7730_v52, %v4740_v15  ;;  %v8799_v5 = vadd.f32 %v6630_v3, %v4763_v2 }
0x1d76   : >> { %v4764_v4 = vmul.f32 %v6629_v0, %v4756_v1 }
0x1d78   : >> { %v8801_v12 = vadd.f32 %v6630_v3, %v4764_v4 }
0x1d7a   : >> { %v4773_v28 = vpack.c.bf16 %v8801_v12, %v8799_v5 }
0x1d7c   : >> { %7208 = vmatmul.mubr.msk.bf16.vlgmr.msra.gmra.mxu0 %vm1729_vm0, %v4773_v28 }
0x1d7d   : >> { %7220 = vmatpush3.bf16.msra.mxu0 %v7685_v56  ;;  %7223 = vmatprep.mubr.msk.bf16.mxu0 %vm1729_vm0, %v8518_v57 }
0x1d7e   : >> { %7221 = vmatprep.subr.bf16.mxu0 %v7686_v13 }
0x1d81   : >> { %7222 = vmatpush3.bf16.msra.mxu0 %v7686_v13 }
0x1d82   : >> { %7233 = vmatprep.subr.bf16.mxu0 %v7906_v18 }
0x1d84   : >> { %7224 = vmatmul.mubr.msk.bf16.vlgmr.msra.gmra.mxu0 %vm1729_vm0, %v8520_v58 }
0x1d85   : >> { %7235 = vmatprep.mubr.msk.bf16.mxu0 %vm7907_vm7, %v7906_v18  ;;  %7234 = vmatpush3.bf16.xpose.msra.mxu0 %v5066_v61 }
0x1d86   : >> { %7245 = vmatprep.subr.bf16.mxu0 %v7906_v18 }
0x1e3c   : >> { %v4837_v6 = vpop.f32.mrf.mxu0 }
0x1e3d   : >> { %v4838_v8 = vadd.f32 %v6632_v38, %v4837_v6 }
0x1e3e   : >> { %v7209_v27 = vpop.f32.mrf.mxu0 }
0x1e3f   : >> { %v5000_v32 = vmul.f32 0.35355338, %v4838_v8 }
0x1e40   : >> { %v4840_v39 = vpop.f32.mrf.mxu0 }
0x1e41   : >> { %v8827_v40 = vpack.c.bf16 %v5000_v32, %v5000_v32  ;;  %v4841_v25 = vadd.f32 %v6632_v38, %v4840_v39 }
0x1e42   : >> { %v7210_v29 = vpop.f32.mrf.mxu0 }
0x1e43   : >> { %v5001_v41 = vmul.f32 0.35355338, %v4841_v25  ;;  %7230 = vmatmul.mubr.msk.bf16.vlgmr.msra.gmra.mxu1 %vm1953_vm2, %v8827_v40 }
0x1e44   : >> { %v7225_v43 = vpop.f32.mrf.mxu0  ;;  %7241 = vmatprep.mubr.msk.bf16.mxu1 %vm7907_vm7, %v7906_v18 }
0x1e45   : >> { %v8835_v19 = vpack.c.bf16 %v5001_v41, %v5001_v41  ;;  %v4994_v46 = vadd.f32 %v7225_v43, %v6643_v44 }
0x1e46   : >> { %v4985_v45 = vpop.f32.mrf.mxu0 }
0x1e47   : >> { %7236 = vmatmul.mubr.msk.bf16.vlgmr.msra.gmra.mxu0 %vm1953_vm2, %v8835_v19  ;;  %v4986_v49 = vadd.f32 %v6643_v44, %v4985_v45 }
0x1e48   : >> { %v7226_v48 = vpop.f32.mrf.mxu0  ;;  %7247 = vmatprep.mubr.msk.bf16.mxu0 %vm7907_vm7, %v7906_v18 }
0x1e49   : >> { %v4997_v51 = vadd.f32 %v7226_v48, %v6643_v44 }
0x1e4a   : >> { %v4988_v9 = vpop.f32.mrf.mxu0 }
0x1e4b   : >> { %v8841_v53 = vpack.c.bf16 %v4997_v51, %v4994_v46  ;;  %v4989_v15 = vadd.f32 %v6643_v44, %v4988_v9 }
0x1e4d   : >> { %v8843_v11 = vpack.c.bf16 %v4989_v15, %v4986_v49  ;;  %7246 = vmatpush3.bf16.msra.mxu0 %v8841_v53 }
0x1e4e   : >> { %7257 = vmatprep.subr.bf16.mxu0 %v7906_v18 }
0x1e4f   : >> { %7240 = vmatpush3.bf16.msra.mxu1 %v8843_v11 }
0x1e50   : >> { %7251 = vmatprep.subr.bf16.mxu1 %v7906_v18 }
0x1f03   : >> { %v5056_v35 = vpop.f32.mrf.mxu1 }
0x1f04   : >> { %v5108_v37 = vsel %vm2048_vm3, %v5056_v35, -inf }
0x1f05   : >> { %5109 = vmax.xlane.f32.xlu1 %v5108_v37  ;;  %v7231_v16 = vpop.f32.mrf.mxu1 }
0x1f07   : >> { %v5059_v24 = vpop.f32.mrf.mxu1  ;;  %v5102_v54 = vpop.f32.mrf.mxu0 }
0x1f08   : >> { %v5111_v55 = vsel %vm2048_vm3, %v5102_v54, -inf }
0x1f09   : >> { %v7232_v56 = vpop.f32.mrf.mxu1  ;;  %5112 = vmax.xlane.f32.xlu0 %v5111_v55  ;;  %v7237_v59 = vpop.f32.mrf.mxu0 }
0x1f0b   : >> { %v5105_v36 = vpop.f32.mrf.mxu0 }
0x1f0d   : >> { %v7238_v34 = vpop.f32.mrf.mxu0 }
0x1f16   : >> { %5222 = vrot.lane.b32.xlu1 %v8817_v31, %s7908_s16 }
0x1f8e   : >> { %v5110_v63 = vpop.xlane.xlu1 %5109 }
0x1f8f   : >> { %v5114_v42 = vsub.f32 %v5056_v35, %v5110_v63 }
0x1f91   : >> { %v5116_v22 = vmul.f32 1.442695, %v5114_v42 }
0x1f92   : >> { %v5113_v50 = vpop.xlane.xlu0 %5112  ;;  %v5223_v4 = vpop.permute.xlu1 %5222 }
0x1f93   : >> { %7731 = vpow2.f32 %v5116_v22  ;;  %v5115_v33 = vsub.f32 %v5102_v54, %v5113_v50  ;;  %v5228_v23 = vsel %vm1953_vm2, %v5223_v4, 0 }
0x1f95   : >> { %v5118_v0 = vmul.f32 1.442695, %v5115_v33 }
0x1f97   : >> { %7733 = vpow2.f32 %v5118_v0 }
0x1fa0   : >> { %v7732_v52 = vpop.eup %7731 }
0x1fa1   : >> { %v5120_v1 = vsel %vm2048_vm3, %v7732_v52, 0.0 }
0x1fa2   : >> { %5121 = vadd.xlane.f32.xlu1 %v5120_v1 }
0x1fa4   : >> { %v7734_v2 = vpop.eup %7733 }
0x1fa5   : >> { %v5123_v3 = vsel %vm2048_vm3, %v7734_v2, 0.0 }
0x1fa6   : >> { %5124 = vadd.xlane.f32.xlu0 %v5123_v3 }
0x1fb3   : >> { %5219 = vrot.lane.b32.xlu1 %v8827_v40, %s7908_s16 }
0x1fb7   : >> { %5271 = vrot.lane.b32.xlu1 %v8835_v19, %s7908_s16 }
0x1fbc   : >> { %5274 = vrot.lane.b32.xlu0 %v8815_v10, %s7908_s16 }
0x202b   : >> { %v5122_v28 = vpop.xlane.xlu1 %5121 }
0x202c   : >> { %7735 = vrcp.f32 %v5122_v28 }
0x202f   : >> { %v5125_v13 = vpop.xlane.xlu0 %5124  ;;  %v5220_v61 = vpop.permute.xlu1 %5219 }
0x2030   : >> { %7737 = vrcp.f32 %v5125_v13 }
0x2033   : >> { %v5275_v14 = vpop.permute.xlu0 %5274  ;;  %v5272_v7 = vpop.permute.xlu1 %5271 }
0x2034   : >> { %v5280_v30 = vsel %vm1953_vm2, %v5275_v14, 0 }
0x2039   : >> { %v7736_v17 = vpop.eup %7735 }
0x203a   : >> { %v5128_v20 = vmul.f32 %v7736_v17, %v7732_v52 }
0x203c   : >> { %v5130_v21 = vpack.c.bf16 %v5128_v20, %v5128_v20 }
0x203d   : >> { %v7738_v47 = vpop.eup %7737 }
0x203e   : >> { %7242 = vmatmul.mubr.msk.bf16.vlgmr.msra.gmra.mxu1 %vm2048_vm3, %v5130_v21  ;;  %v5129_v26 = vmul.f32 %v7738_v47, %v7734_v2 }
0x203f   : >> { %7252 = vmatpush3.bf16.xpose.msra.mxu1 %v5228_v23  ;;  %7253 = vmatprep.mubr.msk.bf16.mxu1 %vm7907_vm7, %v7906_v18 }
0x2040   : >> { %v5131_v60 = vpack.c.bf16 %v5129_v26, %v5129_v26  ;;  %7263 = vmatprep.subr.bf16.mxu1 %v7906_v18 }
0x2042   : >> { %7248 = vmatmul.mubr.msk.bf16.vlgmr.msra.gmra.mxu0 %vm2048_vm3, %v5131_v60 }
0x2043   : >> { %7258 = vmatpush3.bf16.xpose.msra.mxu0 %v5280_v30  ;;  %7259 = vmatprep.mubr.msk.bf16.mxu0 %vm7907_vm7, %v7906_v18 }
0x2044   : >> { %7269 = vmatprep.subr.bf16.mxu0 %v7906_v18 }
0x2046   : >> { %7254 = vmatmul.mubr.msk.bf16.vlgmr.msra.gmra.mxu1 %vm1953_vm2, %v5220_v61 }
0x2047   : >> { %7265 = vmatprep.mubr.msk.bf16.mxu1 %vm7907_vm7, %v7906_v18 }
0x204a   : >> { %7260 = vmatmul.mubr.msk.bf16.vlgmr.msra.gmra.mxu0 %vm1953_vm2, %v5272_v7 }
0x204b   : >> { %7271 = vmatprep.mubr.msk.bf16.mxu0 %vm7907_vm7, %v7906_v18 }
0x20fe   : >> { %v8877_v38 = vpop.f32.mrf.mxu1 }
0x2100   : >> { %v7243_v6 = vpop.f32.mrf.mxu1 }
0x2102   : >> { %v5172_v8 = vpop.f32.mrf.mxu1  ;;  %v8879_v27 = vpop.f32.mrf.mxu0 }
0x2104   : >> { %v7244_v32 = vpop.f32.mrf.mxu1  ;;  %v7249_v39 = vpop.f32.mrf.mxu0 }
0x2106   : >> { %v5215_v25 = vpop.f32.mrf.mxu0  ;;  %v5264_v29 = vpop.f32.mrf.mxu1 }
0x2107   : >> { %v5322_v41 = vsel %vm2048_vm3, %v5264_v29, -inf }
0x2108   : >> { %v7250_v43 = vpop.f32.mrf.mxu0  ;;  %5323 = vmax.xlane.f32.xlu1 %v5322_v41  ;;  %v7255_v44 = vpop.f32.mrf.mxu1 }
0x210a   : >> { %v5267_v45 = vpop.f32.mrf.mxu1  ;;  %v5316_v46 = vpop.f32.mrf.mxu0 }
0x210b   : >> { %v5325_v48 = vsel %vm2048_vm3, %v5316_v46, -inf }
0x210c   : >> { %5326 = vmax.xlane.f32.xlu0 %v5325_v48  ;;  %v7256_v49 = vpop.f32.mrf.mxu1  ;;  %v7261_v51 = vpop.f32.mrf.mxu0 }
0x210e   : >> { %v5319_v9 = vpop.f32.mrf.mxu0 }
0x2110   : >> { %v7262_v15 = vpop.f32.mrf.mxu0 }
0x2119   : >> { %5347 = vrot.lane.b32.xlu1 %v8843_v11, %s7908_s16 }
0x211d   : >> { %5442 = vrot.lane.b32.xlu1 %v8817_v31, %s9125_s10 }
0x2121   : >> { %5492 = vrot.lane.b32.xlu1 %v8815_v10, %s9125_s10 }
0x2125   : >> { %5440 = vrot.lane.b32.xlu1 %v8827_v40, %s9125_s10 }
0x2191   : >> { %v5324_v35 = vpop.xlane.xlu1 %5323 }
0x2192   : >> { %v5328_v37 = vsub.f32 %v5264_v29, %v5324_v35 }
0x2194   : >> { %v5330_v16 = vmul.f32 1.442695, %v5328_v37 }
0x2195   : >> { %v5327_v24 = vpop.xlane.xlu0 %5326  ;;  %v5348_v54 = vpop.permute.xlu1 %5347 }
0x2196   : >> { %7739 = vpow2.f32 %v5330_v16  ;;  %v5329_v55 = vsub.f32 %v5316_v46, %v5327_v24  ;;  %7264 = vmatpush3.bf16.msra.mxu1 %v5348_v54 }
0x2197   : >> { %7275 = vmatprep.subr.bf16.mxu1 %v7906_v18 }
0x2198   : >> { %v5332_v56 = vmul.f32 1.442695, %v5329_v55 }
0x2199   : >> { %v5443_v0 = vpop.permute.xlu1 %5442 }
0x219a   : >> { %7741 = vpow2.f32 %v5332_v56  ;;  %v5448_v3 = vsel %vm1953_vm2, %v5443_v0, 0 }
0x219d   : >> { %v5493_v28 = vpop.permute.xlu1 %5492 }
0x219e   : >> { %v5498_v17 = vsel %vm1953_vm2, %v5493_v28, 0 }
0x21a1   : >> { %v5441_v20 = vpop.permute.xlu1 %5440 }
0x21a3   : >> { %v7740_v59 = vpop.eup %7739 }
0x21a4   : >> { %v5334_v36 = vsel %vm2048_vm3, %v7740_v59, 0.0 }
0x21a5   : >> { %5335 = vadd.xlane.f32.xlu0 %v5334_v36 }
0x21a7   : >> { %v7742_v34 = vpop.eup %7741 }
0x21a8   : >> { %v5337_v63 = vsel %vm2048_vm3, %v7742_v34, 0.0 }
0x21a9   : >> { %5338 = vadd.xlane.f32.xlu0 %v5337_v63 }
0x21bf   : >> { %5394 = vrot.lane.b32.xlu0 %v8841_v53, %s7908_s16  ;;  %s9126_s16 = smov 104  }
0x21c3   : >> { %5490 = vrot.lane.b32.xlu0 %v8835_v19, %s9125_s10 }
0x222e   : >> { %v5336_v42 = vpop.xlane.xlu0 %5335 }
0x222f   : >> { %7743 = vrcp.f32 %v5336_v42 }
0x2232   : >> { %v5339_v22 = vpop.xlane.xlu0 %5338 }
0x2233   : >> { %7745 = vrcp.f32 %v5339_v22 }
0x2236   : >> { %v5395_v50 = vpop.permute.xlu0 %5394 }
0x2237   : >> { %7270 = vmatpush3.bf16.msra.mxu0 %v5395_v50 }
0x2238   : >> { %7281 = vmatprep.subr.bf16.mxu0 %v7906_v18 }
0x223a   : >> { %v5491_v21 = vpop.permute.xlu0 %5490 }
0x223c   : >> { %v7744_v33 = vpop.eup %7743 }
0x223d   : >> { %v5342_v52 = vmul.f32 %v7744_v33, %v7740_v59 }
0x223f   : >> { %v5344_v1 = vpack.c.bf16 %v5342_v52, %v5342_v52 }
0x2240   : >> { %v7746_v2 = vpop.eup %7745 }
0x2241   : >> { %7266 = vmatmul.mubr.msk.bf16.vlgmr.msra.gmra.mxu1 %vm2048_vm3, %v5344_v1  ;;  %v5343_v4 = vmul.f32 %v7746_v2, %v7742_v34 }
0x2242   : >> { %7276 = vmatpush3.bf16.xpose.msra.mxu1 %v5448_v3  ;;  %7277 = vmatprep.mubr.msk.bf16.mxu1 %vm7907_vm7, %v7906_v18 }
0x2243   : >> { %v5345_v13 = vpack.c.bf16 %v5343_v4, %v5343_v4  ;;  %7287 = vmatprep.subr.bf16.mxu1 %v7906_v18 }
0x2245   : >> { %7272 = vmatmul.mubr.msk.bf16.vlgmr.msra.gmra.mxu0 %vm2048_vm3, %v5345_v13 }
0x2246   : >> { %7282 = vmatpush3.bf16.xpose.msra.mxu0 %v5498_v17  ;;  %7283 = vmatprep.mubr.msk.bf16.mxu0 %vm7907_vm7, %v7906_v18 }
0x2247   : >> { %7293 = vmatprep.subr.bf16.mxu0 %v7906_v18 }
0x2249   : >> { %7278 = vmatmul.mubr.msk.bf16.vlgmr.msra.gmra.mxu1 %vm1953_vm2, %v5441_v20 }
0x224a   : >> { %7289 = vmatprep.mubr.msk.bf16.mxu1 %vm7907_vm7, %v7906_v18 }
0x224d   : >> { %7284 = vmatmul.mubr.msk.bf16.vlgmr.msra.gmra.mxu0 %vm1953_vm2, %v5491_v21 }
0x224e   : >> { %7295 = vmatprep.mubr.msk.bf16.mxu0 %vm7907_vm7, %v7906_v18 }
0x2301   : >> { %v8915_v47 = vpop.f32.mrf.mxu1 }
0x2303   : >> { %v7267_v23 = vpop.f32.mrf.mxu1 }
0x2305   : >> { %v5390_v26 = vpop.f32.mrf.mxu1  ;;  %v8917_v14 = vpop.f32.mrf.mxu0 }
0x2306   : >> { %v7658_v60 = vpack.i.bf16 %v8917_v14, %v8915_v47 }
0x2307   : >> { %v7268_v30 = vpop.f32.mrf.mxu1  ;;  %v7273_v61 = vpop.f32.mrf.mxu0 }
0x2309   : >> { %v5437_v7 = vpop.f32.mrf.mxu0  ;;  %v5484_v6 = vpop.f32.mrf.mxu1 }
0x230a   : >> { %v5540_v8 = vsel %vm2048_vm3, %v5484_v6, -inf }
0x230b   : >> { %v7274_v32 = vpop.f32.mrf.mxu0  ;;  %5541 = vmax.xlane.f32.xlu1 %v5540_v8  ;;  %v7279_v39 = vpop.f32.mrf.mxu1 }
0x230d   : >> { %v5487_v25 = vpop.f32.mrf.mxu1  ;;  %v5534_v29 = vpop.f32.mrf.mxu0 }
0x230e   : >> { %v5543_v41 = vsel %vm2048_vm3, %v5534_v29, -inf }
0x230f   : >> { %5544 = vmax.xlane.f32.xlu0 %v5543_v41  ;;  %v7280_v43 = vpop.f32.mrf.mxu1  ;;  %v7285_v44 = vpop.f32.mrf.mxu0 }
0x2311   : >> { %v5537_v45 = vpop.f32.mrf.mxu0 }
0x2313   : >> { %v7286_v46 = vpop.f32.mrf.mxu0 }
0x231c   : >> { %5564 = vrot.lane.b32.xlu1 %v8843_v11, %s9125_s10 }
0x2320   : >> { %5658 = vrot.lane.b32.xlu1 %v8817_v31, %s9126_s16 }
0x2324   : >> { %5708 = vrot.lane.b32.xlu1 %v8815_v10, %s9126_s16 }
0x2328   : >> { %5656 = vrot.lane.b32.xlu1 %v8827_v40, %s9126_s16 }
0x2394   : >> { %v5542_v48 = vpop.xlane.xlu1 %5541 }
0x2395   : >> { %v5546_v49 = vsub.f32 %v5484_v6, %v5542_v48 }
0x2397   : >> { %v5548_v51 = vmul.f32 1.442695, %v5546_v49 }
0x2398   : >> { %v5545_v9 = vpop.xlane.xlu0 %5544  ;;  %v5565_v15 = vpop.permute.xlu1 %5564 }
0x2399   : >> { %7747 = vpow2.f32 %v5548_v51  ;;  %v5547_v35 = vsub.f32 %v5534_v29, %v5545_v9  ;;  %7288 = vmatpush3.bf16.msra.mxu1 %v5565_v15 }
0x239a   : >> { %7299 = vmatprep.subr.bf16.mxu1 %v7906_v18 }
0x239b   : >> { %v5550_v37 = vmul.f32 1.442695, %v5547_v35 }
0x239c   : >> { %v5659_v59 = vpop.permute.xlu1 %5658 }
0x239d   : >> { %7749 = vpow2.f32 %v5550_v37  ;;  %v5664_v42 = vsel %vm1953_vm2, %v5659_v59, 0 }
0x23a0   : >> { %v5709_v50 = vpop.permute.xlu1 %5708 }
0x23a1   : >> { %v5714_v33 = vsel %vm1953_vm2, %v5709_v50, 0 }
0x23a4   : >> { %v5657_v0 = vpop.permute.xlu1 %5656 }
0x23a6   : >> { %v7748_v16 = vpop.eup %7747 }
0x23a7   : >> { %v5552_v31 = vsel %vm2048_vm3, %v7748_v16, 0.0 }
0x23a8   : >> { %5553 = vadd.xlane.f32.xlu0 %v5552_v31 }
0x23aa   : >> { %v7750_v10 = vpop.eup %7749 }
0x23ab   : >> { %v5555_v24 = vsel %vm2048_vm3, %v7750_v10, 0.0 }
0x23ac   : >> { %5556 = vadd.xlane.f32.xlu0 %v5555_v24  ;;  %v7688_v24 = vld [vmem:[%s5003_s18] sm:$0xff]  }
0x23c2   : >> { %5610 = vrot.lane.b32.xlu0 %v8841_v53, %s9125_s10  ;;  %s5008_s10 = scalar_lea.vmem %s9131_s28, %s7843_s26  ;;  %s5969_s28 = scalar_lea.vmem %s8162_s29, %s7843_s26 }
0x23c6   : >> { %5706 = vrot.lane.b32.xlu0 %v8835_v19, %s9126_s16 }
0x2431   : >> { %v5554_v40 = vpop.xlane.xlu0 %5553 }
0x2432   : >> { %7751 = vrcp.f32 %v5554_v40 }
0x2435   : >> { %v5557_v54 = vpop.xlane.xlu0 %5556 }
0x2436   : >> { %7753 = vrcp.f32 %v5557_v54 }
0x2439   : >> { %v5611_v55 = vpop.permute.xlu0 %5610 }
0x243a   : >> { %7294 = vmatpush3.bf16.msra.mxu0 %v5611_v55 }
0x243b   : >> { %7305 = vmatprep.subr.bf16.mxu0 %v7906_v18 }
0x243d   : >> { %v5707_v52 = vpop.permute.xlu0 %5706 }
0x243f   : >> { %v7752_v56 = vpop.eup %7751 }
0x2440   : >> { %v5560_v36 = vmul.f32 %v7752_v56, %v7748_v16 }
0x2442   : >> { %v5562_v34 = vpack.c.bf16 %v5560_v36, %v5560_v36 }
0x2443   : >> { %v7754_v63 = vpop.eup %7753 }
0x2444   : >> { %7290 = vmatmul.mubr.msk.bf16.vlgmr.msra.gmra.mxu1 %vm2048_vm3, %v5562_v34  ;;  %v5561_v22 = vmul.f32 %v7754_v63, %v7750_v10  ;;  %v7687_v10 = vld [vmem:[%s5003_s18 + $0x8] sm:$0xff]   ;;  %s6708_s18 = sshll.u32 %s7843_s26, 5 }
0x2445   : >> { %7300 = vmatpush3.bf16.xpose.msra.mxu1 %v5664_v42  ;;  %7301 = vmatprep.mubr.msk.bf16.mxu1 %vm7907_vm7, %v7906_v18 }
0x2446   : >> { %v5563_v19 = vpack.c.bf16 %v5561_v22, %v5561_v22  ;;  %7311 = vmatprep.subr.bf16.mxu1 %v7906_v18 }
0x2448   : >> { %7296 = vmatmul.mubr.msk.bf16.vlgmr.msra.gmra.mxu0 %vm2048_vm3, %v5563_v19 }
0x2449   : >> { %7306 = vmatpush3.bf16.xpose.msra.mxu0 %v5714_v33  ;;  %7307 = vmatprep.mubr.msk.bf16.mxu0 %vm7907_vm7, %v7906_v18 }
0x244a   : >> { %7317 = vmatprep.subr.bf16.mxu0 %v7906_v18 }
0x244c   : >> { %7302 = vmatmul.mubr.msk.bf16.vlgmr.msra.gmra.mxu1 %vm1953_vm2, %v5657_v0 }
0x244d   : >> { %7313 = vmatprep.mubr.msk.bf16.mxu1 %vm7907_vm7, %v7906_v18 }
0x2450   : >> { %7308 = vmatmul.mubr.msk.bf16.vlgmr.msra.gmra.mxu0 %vm1953_vm2, %v5707_v52 }
0x2451   : >> { %7319 = vmatprep.mubr.msk.bf16.mxu0 %vm7907_vm7, %v7906_v18 }
0x2504   : >> { %v5604_v1 = vpop.f32.mrf.mxu1 }
0x2506   : >> { %v7291_v2 = vpop.f32.mrf.mxu1 }
0x2508   : >> { %v5607_v3 = vpop.f32.mrf.mxu1  ;;  %v5650_v4 = vpop.f32.mrf.mxu0 }
0x2509   : >> { %v7663_v25 = vpack.i.bf16 %v5650_v4, %v5604_v1 }
0x250a   : >> { %v7292_v28 = vpop.f32.mrf.mxu1  ;;  %v7297_v13 = vpop.f32.mrf.mxu0 }
0x250c   : >> { %v5653_v17 = vpop.f32.mrf.mxu0  ;;  %v5700_v20 = vpop.f32.mrf.mxu1 }
0x250d   : >> { %v5756_v21 = vsel %vm2048_vm3, %v5700_v20, -inf }
0x250e   : >> { %v7298_v23 = vpop.f32.mrf.mxu0  ;;  %5757 = vmax.xlane.f32.xlu1 %v5756_v21  ;;  %v7303_v26 = vpop.f32.mrf.mxu1 }
0x2510   : >> { %v5703_v30 = vpop.f32.mrf.mxu1  ;;  %v5750_v61 = vpop.f32.mrf.mxu0 }
0x2511   : >> { %v5759_v7 = vsel %vm2048_vm3, %v5750_v61, -inf }
0x2512   : >> { %5760 = vmax.xlane.f32.xlu0 %v5759_v7  ;;  %v7304_v6 = vpop.f32.mrf.mxu1  ;;  %v7309_v8 = vpop.f32.mrf.mxu0 }
0x2514   : >> { %v5753_v32 = vpop.f32.mrf.mxu0 }
0x2516   : >> { %v7310_v39 = vpop.f32.mrf.mxu0 }
0x251f   : >> { %5780 = vrot.lane.b32.xlu1 %v8843_v11, %s9126_s16 }
0x2523   : >> { %7659 = vrot.lane.b32.xlu1 %v7658_v60, %s9127_s1  ;;  %s9133_s1 = sld [smem:[#allocation31_spill]] }
0x2527   : >> { %7664 = vrot.lane.b32.xlu1 %v7663_v25, %s9128_s23 }
0x2597   : >> { %v5758_v29 = vpop.xlane.xlu1 %5757 }
0x2598   : >> { %v5762_v41 = vsub.f32 %v5700_v20, %v5758_v29 }
0x259a   : >> { %v5764_v43 = vmul.f32 1.442695, %v5762_v41 }
0x259b   : >> { %v5761_v44 = vpop.xlane.xlu0 %5760  ;;  %v5781_v45 = vpop.permute.xlu1 %5780 }
0x259c   : >> { %7755 = vpow2.f32 %v5764_v43  ;;  %v5763_v46 = vsub.f32 %v5750_v61, %v5761_v44  ;;  %7312 = vmatpush3.bf16.msra.mxu1 %v5781_v45 }
0x259d   : >> { %7323 = vmatprep.subr.bf16.mxu1 %v7906_v18 }
0x259e   : >> { %v5766_v48 = vmul.f32 1.442695, %v5763_v46 }
0x259f   : >> { %v7660_v22 = vpop.permute.xlu1 %7659 }
0x25a0   : >> { %7757 = vpow2.f32 %v5766_v48  ;;  %v7662_v19 = vunpack.i.h.bf16 %v7660_v22  ;;  %v7661_v33 = vunpack.i.l.bf16 %v7660_v22 }
0x25a2   : >> { %v5897_v2 = vsel %vm1953_vm2, %v8879_v27, %v7662_v19  ;;  %v5896_v3 = vsel %vm1953_vm2, %v8877_v38, %v7661_v33  ;;  %v6665_v27 = vld [vmem:[%s5008_s10] ss:$0 sm:$0xff]  ;;  %s9135_s10 = sld [smem:[#allocation30_spill]] }
0x25a3   : >> { %v7665_v50 = vpop.permute.xlu1 %7664 }
0x25a4   : >> { %v7667_v0 = vunpack.i.h.bf16 %v7665_v50  ;;  %v7666_v52 = vunpack.i.l.bf16 %v7665_v50 }
0x25a6   : >> { %v5898_v13 = vsel %vm2048_vm3, %v5896_v3, %v7666_v52  ;;  %v5899_v17 = vsel %vm2048_vm3, %v5897_v2, %v7667_v0 }
0x25a9   : >> { %v7756_v11 = vpop.eup %7755 }
0x25aa   : >> { %v5768_v49 = vsel %vm2048_vm3, %v7756_v11, 0.0 }
0x25ab   : >> { %5769 = vadd.xlane.f32.xlu0 %v5768_v49 }
0x25ad   : >> { %v7758_v47 = vpop.eup %7757 }
0x25ae   : >> { %v5771_v14 = vsel %vm2048_vm3, %v7758_v47, 0.0 }
0x25af   : >> { %5772 = vadd.xlane.f32.xlu0 %v5771_v14 }
0x25c5   : >> { %5826 = vrot.lane.b32.xlu0 %v8841_v53, %s9126_s16  ;;  %s9132_s16 = sld [smem:[#allocation29_spill]] }
0x25cb   : >> { %s6015_s23 = scalar_lea.vmem %s9132_s16, %s8560_s15  ;;  %s5967_s15 = scalar_lea.vmem %s9134_s2, %s7843_s26 }
0x25cc   : >> { %s9136_s16 = sld [smem:[#allocation32_spill]]  ;;  %s6177_s2 = scalar_lea.vmem %s8167_s25, %s7843_s26 }
0x2634   : >> { %v5770_v60 = vpop.xlane.xlu0 %5769 }
0x2635   : >> { %7759 = vrcp.f32 %v5770_v60 }
0x2638   : >> { %v5773_v51 = vpop.xlane.xlu0 %5772 }
0x2639   : >> { %7761 = vrcp.f32 %v5773_v51 }
0x263c   : >> { %v5827_v9 = vpop.permute.xlu0 %5826 }
0x263d   : >> { %7318 = vmatpush3.bf16.msra.mxu0 %v5827_v9 }
0x263e   : >> { %7331 = vmatprep.subr.bf16.mxu0 %v7906_v18 }
0x2642   : >> { %v7760_v15 = vpop.eup %7759 }
0x2643   : >> { %v5776_v35 = vmul.f32 %v7760_v15, %v7756_v11 }
0x2645   : >> { %v5778_v37 = vpack.c.bf16 %v5776_v35, %v5776_v35 }
0x2646   : >> { %v7762_v16 = vpop.eup %7761 }
0x2647   : >> { %7314 = vmatmul.mubr.msk.bf16.vlgmr.msra.gmra.mxu1 %vm2048_vm3, %v5778_v37  ;;  %v5777_v31 = vmul.f32 %v7762_v16, %v7758_v47  ;;  %v7690_v47 = vld [vmem:[%s6015_s23] sm:$0xff]  }
0x2648   : >> { %7327 = vmatprep.mubr.msk.bf16.mxu1 %vm7907_vm7, %v7906_v18  ;;  %7324 = vmatpush3.bf16.msra.mxu1 %v7687_v10 }
0x2649   : >> { %v5779_v53 = vpack.c.bf16 %v5777_v31, %v5777_v31  ;;  %7325 = vmatprep.subr.bf16.mxu1 %v7906_v18 }
0x264b   : >> { %7320 = vmatmul.mubr.msk.bf16.vlgmr.msra.gmra.mxu0 %vm2048_vm3, %v5779_v53  ;;  %v6669_v53 = vld [vmem:[%s5967_s15] ss:$0 sm:$0xff] }
0x264c   : >> { %7335 = vmatprep.mubr.msk.bf16.mxu0 %vm7907_vm7, %v7906_v18  ;;  %7326 = vmatpush3.bf16.msra.mxu1 %v7688_v24 }
0x264d   : >> { %7339 = vmatprep.subr.bf16.mxu1 %v7906_v18 }
0x2707   : >> { %v5820_v40 = vpop.f32.mrf.mxu1 }
0x2709   : >> { %v7315_v54 = vpop.f32.mrf.mxu1 }
0x270a   : >> { %v6670_v54 = vld [vmem:[%s5969_s28] ss:$0 sm:$0xff] }
0x270b   : >> { %v5823_v55 = vpop.f32.mrf.mxu1  ;;  %v5866_v56 = vpop.f32.mrf.mxu0 }
0x270c   : >> { %v7668_v59 = vpack.i.bf16 %v5866_v56, %v5820_v40 }
0x270d   : >> { %v7316_v36 = vpop.f32.mrf.mxu1  ;;  %v7321_v34 = vpop.f32.mrf.mxu0 }
0x270e   : >> { %7669 = vrot.lane.b32.xlu1 %v7668_v59, %s9130_s11  ;;  %s9005_s11 = scalar_lea.vmem %s9133_s1, %s6708_s18  ;;  %s6020_s1 = scalar_lea.vmem %s9135_s10, %s7843_s26 }
0x270f   : >> { %v5869_v63 = vpop.f32.mrf.mxu0  ;;  %v7691_v14 = vld [vmem:[%s9005_s11 + $0x18] sm:$0xff]   ;;  %v7692_v34 = vld [vmem:[%s9005_s11 + $0x10] sm:$0xff]   ;;  %v6672_v22 = vld [vmem:[%s6020_s1] ss:$0 sm:$0xff]  ;;  %s6179_s18 = scalar_lea.vmem %s8172_s8, %s7843_s26 }
0x2710   : >> { %v7693_v63 = vld [vmem:[%s9005_s11 + $0x8] sm:$0xff]  }
0x2711   : >> { %v7322_v42 = vpop.f32.mrf.mxu0 }
0x2712   : >> { %v7694_v42 = vld [vmem:[%s9005_s11] sm:$0xff]  }
0x2780   : >> { %v7670_v1 = vpop.permute.xlu1 %7669 }
0x2781   : >> { %v7672_v4 = vunpack.i.h.bf16 %v7670_v1  ;;  %v7671_v28 = vunpack.i.l.bf16 %v7670_v1 }
0x2783   : >> { %v5901_v20 = vsel %vm2971_vm4, %v5899_v17, %v7672_v4  ;;  %v5900_v21 = vsel %vm2971_vm4, %v5898_v13, %v7671_v28 }
0x2784   : >> { %v5902_v23 = vpack.c.bf16 %v5901_v20, %v5900_v21 }
0x2786   : >> { %7328 = vmatmul.mubr.msk.bf16.vlgmr.msra.gmra.mxu1 %vm1729_vm0, %v5902_v23 }
0x2787   : >> { %7347 = vmatprep.mubr.msk.bf16.mxu1 %vm7907_vm7, %v7906_v18  ;;  %7340 = vmatpush3.bf16.msra.mxu1 %v7691_v14  ;;  %v6685_v14 = vld [vmem:[%s6179_s18] ss:$0 sm:$0xff] }
0x2788   : >> { %7341 = vmatprep.subr.bf16.mxu1 %v7906_v18 }
0x278b   : >> { %7342 = vmatpush3.bf16.msra.mxu1 %v7692_v34 }
0x278c   : >> { %7343 = vmatprep.subr.bf16.mxu1 %v7906_v18 }
0x278f   : >> { %7344 = vmatpush3.bf16.msra.mxu1 %v7693_v63 }
0x2790   : >> { %7345 = vmatprep.subr.bf16.mxu1 %v7906_v18 }
0x2793   : >> { %7346 = vmatpush3.bf16.msra.mxu1 %v7694_v42 }
0x2846   : >> { %v5958_v26 = vpop.f32.mrf.mxu1 }
0x2847   : >> { %v5959_v38 = vadd.f32 %v6665_v27, %v5958_v26 }
0x2848   : >> { %v7329_v30 = vpop.f32.mrf.mxu1 }
0x2849   : >> { %v5965_v61 = vadd.f32 %v5959_v38, %v8799_v5 }
0x284a   : >> { %v5961_v7 = vpop.f32.mrf.mxu1 }
0x284b   : >> { %v5962_v6 = vadd.f32 %v6665_v27, %v5961_v7  ;;  %v5971_v8 = vsel %vm1729_vm0, %v5965_v61, 0.0 }
0x284c   : >> { %5972 = vadd.xlane.f32.xlu0 %v5971_v8  ;;  %v7330_v32 = vpop.f32.mrf.mxu1 }
0x284d   : >> { %v5966_v39 = vadd.f32 %v5962_v6, %v8801_v12  ;;  %v7689_v12 = vld [vmem:[%s6015_s23 + $0x8] sm:$0xff]   ;;  %s6098_s23 = scalar_lea.vmem %s9136_s16, %s7843_s26  ;;  %s3527_s26 = sadd.s32 1, %s7843_s26  }
0x284e   : >> { %7332 = vmatpush3.bf16.msra.mxu0 %v7689_v12  ;;  %v6678_v28 = vld [vmem:[%s6098_s23] ss:$0 sm:$0xff]  ;;  %p3524_p5 = scmp.ge.s32.totalorder %s3527_s26, 2  }
0x284f   : >> { %v5974_v25 = vsel %vm1729_vm0, %v5966_v39, 0.0  ;;  %7333 = vmatprep.subr.bf16.mxu0 %v7906_v18  ;;  %v6684_v12 = vld [vmem:[%s6177_s2] ss:$0 sm:$0xff]  ;;  %s9139_s11 = sld [smem:[#allocation4_spill]] (%p3524_p5) }
0x2850   : >> { %5975 = vadd.xlane.f32.xlu1 %v5974_v25  ;;  %s9140_s15 = sld [smem:[#allocation5_spill]] (%p3524_p5) }
0x2852   : >> { %7334 = vmatpush3.bf16.msra.mxu0 %v7690_v47 }
0x2853   : > { %7351 = vmatprep.subr.bf16.mxu0 (%p3524_p5), %v7904_v62 }
0x28d5   : >> { %v5973_v29 = vpop.xlane.xlu0 %5972 }
0x28d6   : >> { %v5977_v41 = vmul.f32 0.03125, %v5973_v29 }
0x28d8   : >> { %v5979_v43 = vsub.f32 %v5965_v61, %v5977_v41 }
0x28d9   : >> { %v5976_v44 = vpop.xlane.xlu1 %5975 }
0x28da   : >> { %v5978_v5 = vmul.f32 0.03125, %v5976_v44  ;;  %v5981_v45 = vmul.f32 %v5979_v43, %v5979_v43 }
0x28dc   : >> { %v5980_v46 = vsub.f32 %v5966_v39, %v5978_v5  ;;  %v5983_v48 = vsel %vm1729_vm0, %v5981_v45, 0.0 }
0x28dd   : >> { %5984 = vadd.xlane.f32.xlu0 %v5983_v48 }
0x28de   : >> { %v5982_v11 = vmul.f32 %v5980_v46, %v5980_v46 }
0x28e0   : >> { %v5986_v49 = vsel %vm1729_vm0, %v5982_v11, 0.0 }
0x28e1   : >> { %5987 = vadd.xlane.f32.xlu0 %v5986_v49 }
0x2966   : >> { %v5985_v60 = vpop.xlane.xlu0 %5984 }
0x2967   : >> { %v5989_v51 = vmul.f32 0.03125, %v5985_v60 }
0x2969   : >> { %v5991_v9 = vadd.f32 1e-05, %v5989_v51 }
0x296a   : >> { %v5988_v15 = vpop.xlane.xlu0 %5987 }
0x296b   : >> { %7763 = vrsqrt.f32 %v5991_v9  ;;  %v5990_v35 = vmul.f32 0.03125, %v5988_v15 }
0x296d   : >> { %v5992_v37 = vadd.f32 1e-05, %v5990_v35 }
0x296f   : >> { %7765 = vrsqrt.f32 %v5992_v37 }
0x2978   : >> { %v7764_v16 = vpop.eup %7763 }
0x2979   : >> { %v5995_v31 = vmul.f32 %v7764_v16, %v5979_v43 }
0x297b   : >> { %v6003_v40 = vmul.f32 %v6669_v53, %v5995_v31  ;;  %v7771_v31 = vld [vmem:[%s9139_s11 + $0x8] sm:$0xff] (%p3524_p5)  }
0x297c   : >> { %v7766_v10 = vpop.eup %7765 }
0x297d   : >> { %v5996_v24 = vmul.f32 %v7766_v10, %v5980_v46  ;;  %v6011_v56 = vadd.f32 %v6670_v54, %v6003_v40 }
0x297f   : >> { %v6004_v55 = vmul.f32 %v6669_v53, %v5996_v24  ;;  %v7772_v53 = vld [vmem:[%s9139_s11] sm:$0xff] (%p3524_p5)  }
0x2980   : > { %v6686_v24 = vld [vmem:[%s9140_s15] ss:$0 sm:$0xff] (%p3524_p5) }
0x2981   : >> { %v6012_v59 = vadd.f32 %v6670_v54, %v6004_v55 }
0x2983   : >> { %v6013_v36 = vpack.c.bf16 %v6012_v59, %v6011_v56 }
0x2985   : >> { %7336 = vmatmul.mubr.msk.bf16.vlgmr.msra.gmra.mxu0 %vm1729_vm0, %v6013_v36 }
0x2986   : > { %7355 = vmatprep.mubr.msk.bf16.mxu0 (%p3524_p5), %vm7905_vm6, %v7904_v62  ;;  %7352 = vmatpush3.bf16.msra.mxu0 (%p3524_p5), %v7771_v31 }
0x2987   : > { %7353 = vmatprep.subr.bf16.mxu0 (%p3524_p5), %v7904_v62 }
0x298a   : > { %7354 = vmatpush3.bf16.msra.mxu0 (%p3524_p5), %v7772_v53 }
0x2a45   : >> { %v6077_v50 = vpop.f32.mrf.mxu0 }
0x2a46   : >> { %v6078_v33 = vadd.f32 %v6672_v22, %v6077_v50 }
0x2a47   : >> { %v7337_v19 = vpop.f32.mrf.mxu0 }
0x2a48   : >> { %v6084_v2 = vmax.f32 %v6078_v33, 0.0 }
0x2a49   : >> { %v6080_v0 = vpop.f32.mrf.mxu0 }
0x2a4a   : >> { %v6081_v52 = vadd.f32 %v6672_v22, %v6080_v0 }
0x2a4b   : >> { %v7338_v1 = vpop.f32.mrf.mxu0 }
0x2a4c   : >> { %v6085_v3 = vmax.f32 %v6081_v52, 0.0 }
0x2a4e   : >> { %v6086_v4 = vpack.c.bf16 %v6085_v3, %v6084_v2 }
0x2a50   : >> { %7348 = vmatmul.mubr.msk.bf16.vlgmr.msra.gmra.mxu1 %vm3264_vm5, %v6086_v4 }
0x2b10   : >> { %v6168_v13 = vpop.f32.mrf.mxu1 }
0x2b11   : >> { %v6169_v17 = vadd.f32 %v6678_v28, %v6168_v13 }
0x2b12   : >> { %v7349_v18 = vpop.f32.mrf.mxu1 }
0x2b13   : >> { %v6175_v20 = vadd.f32 %v6169_v17, %v6011_v56 }
0x2b14   : >> { %v6171_v21 = vpop.f32.mrf.mxu1 }
0x2b15   : >> { %v6172_v23 = vadd.f32 %v6678_v28, %v6171_v21  ;;  %v6181_v27 = vsel %vm1729_vm0, %v6175_v20, 0.0 }
0x2b16   : >> { %6182 = vadd.xlane.f32.xlu0 %v6181_v27  ;;  %v7350_v26 = vpop.f32.mrf.mxu1 }
0x2b17   : >> { %v6176_v38 = vadd.f32 %v6172_v23, %v6012_v59 }
0x2b19   : >> { %v6184_v30 = vsel %vm1729_vm0, %v6176_v38, 0.0 }
0x2b1a   : >> { %6185 = vadd.xlane.f32.xlu1 %v6184_v30 }
0x2b9f   : >> { %v6183_v61 = vpop.xlane.xlu0 %6182 }
0x2ba0   : >> { %v6187_v7 = vmul.f32 0.03125, %v6183_v61 }
0x2ba2   : >> { %v6189_v6 = vsub.f32 %v6175_v20, %v6187_v7 }
0x2ba3   : >> { %v6186_v8 = vpop.xlane.xlu1 %6185 }
0x2ba4   : >> { %v6188_v32 = vmul.f32 0.03125, %v6186_v8  ;;  %v6191_v39 = vmul.f32 %v6189_v6, %v6189_v6 }
0x2ba6   : >> { %v6190_v25 = vsub.f32 %v6176_v38, %v6188_v32  ;;  %v6193_v29 = vsel %vm1729_vm0, %v6191_v39, 0.0 }
0x2ba7   : >> { %6194 = vadd.xlane.f32.xlu0 %v6193_v29 }
0x2ba8   : >> { %v6192_v41 = vmul.f32 %v6190_v25, %v6190_v25 }
0x2baa   : >> { %v6196_v43 = vsel %vm1729_vm0, %v6192_v41, 0.0 }
0x2bab   : >> { %6197 = vadd.xlane.f32.xlu1 %v6196_v43 }
0x2c30   : >> { %v6195_v44 = vpop.xlane.xlu0 %6194 }
0x2c31   : >> { %v6199_v5 = vmul.f32 0.03125, %v6195_v44 }
0x2c33   : >> { %v6201_v45 = vadd.f32 1e-05, %v6199_v5 }
0x2c34   : >> { %v6198_v46 = vpop.xlane.xlu1 %6197 }
0x2c35   : >> { %7767 = vrsqrt.f32 %v6201_v45  ;;  %v6200_v48 = vmul.f32 0.03125, %v6198_v46 }
0x2c37   : >> { %v6202_v11 = vadd.f32 1e-05, %v6200_v48 }
0x2c39   : >> { %7769 = vrsqrt.f32 %v6202_v11 }
0x2c42   : >> { %v7768_v49 = vpop.eup %7767 }
0x2c43   : >> { %v6205_v47 = vmul.f32 %v7768_v49, %v6189_v6 }
0x2c45   : >> { %v6213_v60 = vmul.f32 %v6684_v12, %v6205_v47 }
0x2c46   : >> { %v7770_v51 = vpop.eup %7769 }
0x2c47   : >> { %v6221_v15 = vadd.f32 %v6685_v14, %v6213_v60   ;;  %v6206_v9 = vmul.f32 %v7770_v51, %v6190_v25 }
0x2c49   : >> { %v6214_v35 = vmul.f32 %v6684_v12, %v6206_v9  ;;  %v9138_v9 = vmov %v6221_v15  ;;  %3526 = sbr.rel (!%p3524_p5) target bundleno = 4446 (0x115e), region = 375 }
0x2c4b   : >> { %v6222_v37 = vadd.f32 %v6685_v14, %v6214_v35  }
0x2c4d   : >> { %v9137_v16 = vmov %v6222_v37  ;;  %v6223_v10 = vpack.c.bf16 (%p3524_p5), %v6222_v37, %v6221_v15 }
0x2c4f   : > { %7356 = vmatmul.mubr.msk.bf16.vlgmr.msra.gmra.mxu0 %vm1729_vm0, %v6223_v10 }
0x2d0f   : > { %v6285_v57 = vpop.f32.mrf.mxu0 }
0x2d10   : > { %v6286_v58 = vadd.f32 %v6686_v24, %v6285_v57 }
0x2d11   : > { %v7357_v16 = vpop.f32.mrf.mxu0 }
0x2d12   : > { %6292 = vst [vmem:[%s8196_s7] sm:$0xff] %v6286_v58 }
0x2d13   : > { %v6288_v40 = vpop.f32.mrf.mxu0 }
0x2d14   : > { %v6289_v54 = vadd.f32 %v6686_v24, %v6288_v40 }
0x2d15   : > { %v7358_v55 = vpop.f32.mrf.mxu0 }
0x2d16   : > { %6293 = vst [vmem:[%s8196_s7 + $0x8] sm:$0xff] %v6289_v54 }
0x2d17 PF: > { %s113_s22 = sadd.s32 1, %s7811_s22  }
0x2d18   : > { %p110_p6 = scmp.ge.s32.totalorder %s113_s22, 4  }
0x2d1a   :  { %112 = sbr.rel (!%p110_p6) target bundleno = 103 (0x67), region = 386 }

</bundles_post_ra>
